<compile_context>
chip_gen: v5e
topology: v5e:2x2
jax: 0.10.0
libtpu: 0.0.40
codegen_flags: <defaults>
</compile_context>

<pallas_src>
import jax
import jax.numpy as jnp
import numpy as np
from jax.experimental import pallas as pl
from jax.experimental.pallas import tpu as pltpu


# ----------------------------- fused Pallas kernel --------------------------

def _make_kernel(W, L):
    """Kernel factory closing over image width W and packed lane length L."""
    # tap t = ky*3 + kx reads the input at flat offset (ky-1)*W + (kx-1)
    offsets = [(ky - 1) * W + (kx - 1) for ky in range(3) for kx in range(3)]

    def kernel(x_ref, m_ref, g_ref,
               wa_ref, wa1_ref, wb_ref, wc_ref, wc1_ref, wd_ref, bias_ref,
               pool_ref, skip_ref):
        f32 = jnp.float32
        x = x_ref[...].astype(f32)          # (Cinp, L)
        masks = m_ref[...].astype(f32)      # (9, 1, L) 0/1 boundary masks

        def conv3x3_bn_relu(a, w_ref, b):
            # a: (C, L).  w_ref: (9, Cout, C), tap-major, BN scale folded in.
            # Per-tap accumulation: roll (XLU) + mask (VPU) + tiny matmul (MXU).
            acc = None
            for t, off in enumerate(offsets):
                if off == 0:
                    tap = a
                else:
                    tap = pltpu.roll(a, (-off) % L, axis=1) * masks[t]
                c = jnp.dot(w_ref[t], tap, preferred_element_type=f32)
                acc = c if acc is None else acc + c
            return jnp.maximum(acc + b, 0.0)

        def conv1x1_bn(a, w_ref, b):
            return jnp.dot(w_ref[...], a, preferred_element_type=f32) + b

        ba = bias_ref[0]
        ba1 = bias_ref[1]
        bb = bias_ref[2]
        bc = bias_ref[3]
        bc1 = bias_ref[4]
        bd = bias_ref[5]

        # ---- Initial_RecLayer ----
        r1 = conv3x3_bn_relu(x, wa_ref, ba)
        la = conv1x1_bn(x, wa1_ref, ba1)
        a1 = jnp.maximum(r1 + la, 0.0)
        r2 = conv3x3_bn_relu(a1, wb_ref, bb)
        a2 = jnp.maximum(r2 + la, 0.0)
        y = conv3x3_bn_relu(a2, wb_ref, bb)        # Dropout2d: identity (eval)

        # ---- RecLayer ----
        r1 = conv3x3_bn_relu(y, wc_ref, bc)
        la = conv1x1_bn(y, wc1_ref, bc1)
        a1 = jnp.maximum(r1 + la, 0.0)
        r2 = conv3x3_bn_relu(a1, wc_ref, bc)
        a2 = jnp.maximum(r2 + la, 0.0)
        conv1 = conv3x3_bn_relu(a2, wc_ref, bc)    # (Cout, L); Dropout: identity

        skip_ref[...] = conv1.astype(skip_ref.dtype)

        # ---- dense head: 1x1 conv + add/relu + channel concat + 2x2 maxpool ----
        cadd = conv1x1_bn(x, wd_ref, bd)
        add1 = jnp.maximum(cadd + conv1, 0.0)
        dense = jnp.concatenate([add1, conv1], axis=0)          # (2*Cout, L)

        # maxpool(2,2): neighbour maxes via rolls (XLU) + one 0/1 gather matmul.
        m1 = jnp.maximum(dense, pltpu.roll(dense, (L - 1) % L, axis=1))   # cols x, x+1
        m2 = jnp.maximum(m1, pltpu.roll(m1, (L - W) % L, axis=1))         # rows y, y+1
        pool_ref[...] = jnp.dot(m2, g_ref[...],
                                preferred_element_type=f32).astype(pool_ref.dtype)

    return kernel


# ----------------------------- constant builders (trace-time) ---------------

def _tap_masks(H, W, Bt):
    """0/1 masks (9, 1, Bt*HW): tap t valid iff (y+dy, x+dx) stays inside the image."""
    yy, xx = np.meshgrid(np.arange(H), np.arange(W), indexing="ij")
    m = np.zeros((9, 1, H * W), np.float32)
    for ky in range(3):
        for kx in range(3):
            dy, dx = ky - 1, kx - 1
            valid = ((yy + dy >= 0) & (yy + dy < H) &
                     (xx + dx >= 0) & (xx + dx < W)).reshape(-1)
            m[ky * 3 + kx, 0] = valid
    return jnp.asarray(np.tile(m, (1, 1, Bt)))


def _pool_gather(H, W, Bt):
    """0/1 gather matrix (Bt*HW, Bt*HWo): column q selects the 2x2-window anchor of q."""
    HW, Ho, Wo = H * W, H // 2, W // 2
    HWo = Ho * Wo
    g = np.zeros((Bt * HW, Bt * HWo), np.float32)
    for b in range(Bt):
        for qy in range(Ho):
            for qx in range(Wo):
                g[b * HW + (2 * qy) * W + 2 * qx, b * HWo + qy * Wo + qx] = 1.0
    return jnp.asarray(g)


# ----------------------------- weight preparation ---------------------------

def _fold_conv3x3(w, bn_scale, bn_shift, cin_pad):
    """w: (Cout, Cin, 3, 3) OIHW -> ((9, Cout, cin_pad) tap-major, (Cout, 1) bias)."""
    cout, cin = w.shape[:2]
    wf = w * bn_scale[:, None, None, None]
    wf = jnp.transpose(wf, (2, 3, 0, 1)).reshape(9, cout, cin)   # (ky*3+kx, Cout, Cin)
    wf = jnp.pad(wf, ((0, 0), (0, 0), (0, cin_pad - cin)))
    return wf, bn_shift.reshape(cout, 1)


def _fold_conv1x1(w, bn_scale, bn_shift, cin_pad):
    """w: (Cout, Cin) -> ((Cout, cin_pad), (Cout, 1))."""
    cout, cin = w.shape
    wf = jnp.pad(w * bn_scale[:, None], ((0, 0), (0, cin_pad - cin)))
    return wf, bn_shift.reshape(cout, 1)


def _pick_bt(B, HWo):
    """Samples packed per grid step: smallest divisor of B (<=8) making the pooled
    store lane-dense (Bt*HWo >= 128), keeping multiple grid steps when possible
    so v7x's two TensorCores both get work."""
    best = 1
    for bt in range(1, min(B, 8) + 1):
        if B % bt == 0:
            best = bt
            if bt * HWo >= 128:
                break
    return best


# ----------------------------- forward (Pallas) ------------------------------

def initial_dense_block(x, params, block_batch=None):
    """x: (B, Cin, H, W) NCHW.  Returns (pool1 (B,2*Cout,H//2,W//2), skip (B,Cout,H,W))."""
    B, Cin, H, W = x.shape
    assert H % 2 == 0 and W % 2 == 0, "maxpool(2,2) requires even H, W"
    ir, rl = params["initial_rec"], params["rec_layer"]
    Cout = ir["conv"]["w"].shape[0]
    HW, Ho, Wo = H * W, H // 2, W // 2
    HWo = Ho * Wo
    Cinp = max(8, ((Cin + 7) // 8) * 8)            # pad input channels to sublane multiple

    Bt = _pick_bt(B, HWo) if block_batch is None else block_batch
    steps = B // Bt
    L, Lo = Bt * HW, Bt * HWo                      # packed lane lengths

    # pack: (B, Cin, H, W) -> (steps, Cinp, Bt*HW), batch along the lane axis
    xf = x.reshape(B, Cin, HW)
    if Cinp > Cin:
        xf = jnp.pad(xf, ((0, 0), (0, Cinp - Cin), (0, 0)))
    xf = xf.reshape(steps, Bt, Cinp, HW).transpose(0, 2, 1, 3).reshape(steps, Cinp, L)

    masks = _tap_masks(H, W, Bt)                   # (9, 1, L) constant
    gmat = _pool_gather(H, W, Bt)                  # (L, Lo)   constant

    wa, ba = _fold_conv3x3(ir["conv"]["w"], ir["conv"]["bn_scale"],
                           ir["conv"]["bn_shift"], Cinp)
    wa1, ba1 = _fold_conv1x1(ir["w1"], ir["bn_scale"], ir["bn_shift"], Cinp)
    wb, bb = _fold_conv3x3(ir["conv2"]["w"], ir["conv2"]["bn_scale"],
                           ir["conv2"]["bn_shift"], Cout)
    wc, bc = _fold_conv3x3(rl["conv"]["w"], rl["conv"]["bn_scale"],
                           rl["conv"]["bn_shift"], Cout)
    wc1, bc1 = _fold_conv1x1(rl["w1"], rl["bn_scale"], rl["bn_shift"], Cout)
    wd, bd = _fold_conv1x1(params["w1x1"], params["bn_scale"],
                           params["bn_shift"], Cinp)
    biases = jnp.stack([ba, ba1, bb, bc, bc1, bd], axis=0)      # (6, Cout, 1)

    def _const(shape):
        return pl.BlockSpec(shape, lambda g: (0,) * len(shape))

    pool_flat, skip_flat = pl.pallas_call(
        _make_kernel(W, L),
        out_shape=(jax.ShapeDtypeStruct((steps, 2 * Cout, Lo), jnp.float32),
                   jax.ShapeDtypeStruct((steps, Cout, L), jnp.float32)),
        grid=(steps,),
        in_specs=[
            pl.BlockSpec((None, Cinp, L), lambda g: (g, 0, 0)),  # packed input
            _const((9, 1, L)),                                   # tap boundary masks
            _const((L, Lo)),                                     # pool gather matrix
            _const((9, Cout, Cinp)),                             # initial_rec.conv
            _const((Cout, Cinp)),                                # initial_rec conv1+bn
            _const((9, Cout, Cout)),                             # initial_rec.conv2
            _const((9, Cout, Cout)),                             # rec_layer.conv
            _const((Cout, Cout)),                                # rec_layer conv1+bn
            _const((Cout, Cinp)),                                # block conv1x1+bn
            _const((6, Cout, 1)),                                # packed biases
        ],
        out_specs=(pl.BlockSpec((None, 2 * Cout, Lo), lambda g: (g, 0, 0)),
                   pl.BlockSpec((None, Cout, L), lambda g: (g, 0, 0))),
        compiler_params=pltpu.CompilerParams(
            dimension_semantics=("parallel",)),
    )(xf, masks, gmat, wa, wa1, wb, wc, wc1, wd, biases)

    # unpack lane-packed batch back to NCHW
    pool1 = (pool_flat.reshape(steps, 2 * Cout, Bt, HWo)
             .transpose(0, 2, 1, 3).reshape(B, 2 * Cout, Ho, Wo))
    skip = (skip_flat.reshape(steps, Cout, Bt, HW)
            .transpose(0, 2, 1, 3).reshape(B, Cout, H, W))
    return pool1, skip


# ----------------------------- parameter init -------------------------------

def _fold_bn(gamma, beta, mean, var, eps=1e-5):
    scale = gamma / jnp.sqrt(var + eps)
    shift = beta - mean * scale
    return scale, shift


def _init_bn(key, C):
    k1, k2, k3, k4 = jax.random.split(key, 4)
    gamma = jax.random.uniform(k1, (C,), jnp.float32, 0.5, 1.5)
    beta = 0.1 * jax.random.normal(k2, (C,), jnp.float32)
    mean = 0.1 * jax.random.normal(k3, (C,), jnp.float32)
    var = jax.random.uniform(k4, (C,), jnp.float32, 0.5, 1.5)
    return _fold_bn(gamma, beta, mean, var)


def _init_convolution(key, cin, cout):
    k1, k2 = jax.random.split(key)
    w = 0.2 * jax.random.normal(k1, (cout, cin, 3, 3), jnp.float32)   # OIHW
    s, b = _init_bn(k2, cout)
    return {"w": w, "bn_scale": s, "bn_shift": b}


def init_params(key, cin, cout):
    keys = jax.random.split(key, 9)
    initial_rec = {
        "conv": _init_convolution(keys[0], cin, cout),
        "w1": 0.2 * jax.random.normal(keys[1], (cout, cin), jnp.float32),
        "conv2": _init_convolution(keys[2], cout, cout),
    }
    initial_rec["bn_scale"], initial_rec["bn_shift"] = _init_bn(keys[3], cout)
    rec_layer = {
        "conv": _init_convolution(keys[4], cout, cout),
        "w1": 0.2 * jax.random.normal(keys[5], (cout, cout), jnp.float32),
    }
    rec_layer["bn_scale"], rec_layer["bn_shift"] = _init_bn(keys[6], cout)
    params = {
        "initial_rec": initial_rec,
        "rec_layer": rec_layer,
        "w1x1": 0.2 * jax.random.normal(keys[7], (cout, cin), jnp.float32),
    }
    params["bn_scale"], params["bn_shift"] = _init_bn(keys[8], cout)
    return params


# ----------------------------- pure-JAX reference (NCHW) ---------------------

def _ref_convolution(x, p):
    y = jax.lax.conv_general_dilated(
        x, p["w"], (1, 1), "SAME", dimension_numbers=("NCHW", "OIHW", "NCHW"))
    y = y * p["bn_scale"][None, :, None, None] + p["bn_shift"][None, :, None, None]
    return jnp.maximum(y, 0.0)


def _ref_conv1x1_bn(x, w, scale, shift):
    y = jnp.einsum("bchw,oc->bohw", x, w)
    return y * scale[None, :, None, None] + shift[None, :, None, None]


def _ref_initial_rec(x, p):
    r1 = _ref_convolution(x, p["conv"])
    la = _ref_conv1x1_bn(x, p["w1"], p["bn_scale"], p["bn_shift"])
    a1 = jnp.maximum(r1 + la, 0.0)
    r2 = _ref_convolution(a1, p["conv2"])
    a2 = jnp.maximum(r2 + la, 0.0)
    return _ref_convolution(a2, p["conv2"])


def _ref_rec(x, p):
    r1 = _ref_convolution(x, p["conv"])
    la = _ref_conv1x1_bn(x, p["w1"], p["bn_scale"], p["bn_shift"])
    a1 = jnp.maximum(r1 + la, 0.0)
    r2 = _ref_convolution(a1, p["conv"])
    a2 = jnp.maximum(r2 + la, 0.0)
    return _ref_convolution(a2, p["conv"])


def ref_initial_dense_block(x, params):
    c1 = _ref_initial_rec(x, params["initial_rec"])
    c1 = _ref_rec(c1, params["rec_layer"])
    skip = c1
    ca = _ref_conv1x1_bn(x, params["w1x1"], params["bn_scale"], params["bn_shift"])
    add1 = jnp.maximum(ca + c1, 0.0)
    dense1 = jnp.concatenate([add1, c1], axis=1)
    B, C, H, W = dense1.shape
    pool1 = dense1.reshape(B, C, H // 2, 2, W // 2, 2).max(axis=(3, 5))
    return pool1, skip


# ----------------------------- main ------------------------------------------

if __name__ == "__main__":
    B, Cin, Cout, H, W = 2, 4, 8, 16, 16       # NCHW input, PyTorch layout
    key = jax.random.PRNGKey(0)
    kx, kp = jax.random.split(key)
    x = jax.random.normal(kx, (B, Cin, H, W), jnp.float32)
    params = init_params(kp, Cin, Cout)

    fwd = jax.jit(initial_dense_block)
    pool1, skip = fwd(x, params)
    jax.block_until_ready(pool1)
    jax.block_until_ready(skip)

    pool1_ref, skip_ref = ref_initial_dense_block(x, params)
    assert pool1.shape == (B, 2 * Cout, H // 2, W // 2)
    assert skip.shape == (B, Cout, H, W)
    assert jnp.allclose(pool1, pool1_ref, rtol=1e-3, atol=1e-3), \
        float(jnp.abs(pool1 - pool1_ref).max())
    assert jnp.allclose(skip, skip_ref, rtol=1e-3, atol=1e-3), \
        float(jnp.abs(skip - skip_ref).max())

    print("KERNEL_OK")
</pallas_src>

<mosaic_0001>
module attributes {stable_mosaic.version = 11 : i64} {
  func.func @kernel(%arg0: i32, %arg1: memref<1x8x512xf32, #tpu.memory_space<vmem>>, %arg2: memref<9x1x512xf32, #tpu.memory_space<vmem>>, %arg3: memref<512x128xf32, #tpu.memory_space<vmem>>, %arg4: memref<9x8x8xf32, #tpu.memory_space<vmem>>, %arg5: memref<8x8xf32, #tpu.memory_space<vmem>>, %arg6: memref<9x8x8xf32, #tpu.memory_space<vmem>>, %arg7: memref<9x8x8xf32, #tpu.memory_space<vmem>>, %arg8: memref<8x8xf32, #tpu.memory_space<vmem>>, %arg9: memref<8x8xf32, #tpu.memory_space<vmem>>, %arg10: memref<6x8x1xf32, #tpu.memory_space<vmem>>, %arg11: memref<1x16x128xf32, #tpu.memory_space<vmem>>, %arg12: memref<1x8x512xf32, #tpu.memory_space<vmem>>) attributes {dimension_semantics = [#tpu.dimension_semantics<parallel>], iteration_bounds = array<i64: 1>, scalar_prefetch = 0 : i64, scratch_operands = 0 : i64, tpu.core_type = #tpu.core_type<tc>, window_params = [{transform_indices = @transform_0, window_bounds = array<i64: 1, 8, 512>}, {pipeline_mode = #tpu.pipeline_mode<synchronous>, transform_indices = @transform_1, window_bounds = array<i64: 9, 1, 512>}, {pipeline_mode = #tpu.pipeline_mode<synchronous>, transform_indices = @transform_2, window_bounds = array<i64: 512, 128>}, {pipeline_mode = #tpu.pipeline_mode<synchronous>, transform_indices = @transform_3, window_bounds = array<i64: 9, 8, 8>}, {pipeline_mode = #tpu.pipeline_mode<synchronous>, transform_indices = @transform_4, window_bounds = array<i64: 8, 8>}, {pipeline_mode = #tpu.pipeline_mode<synchronous>, transform_indices = @transform_5, window_bounds = array<i64: 9, 8, 8>}, {pipeline_mode = #tpu.pipeline_mode<synchronous>, transform_indices = @transform_6, window_bounds = array<i64: 9, 8, 8>}, {pipeline_mode = #tpu.pipeline_mode<synchronous>, transform_indices = @transform_7, window_bounds = array<i64: 8, 8>}, {pipeline_mode = #tpu.pipeline_mode<synchronous>, transform_indices = @transform_8, window_bounds = array<i64: 8, 8>}, {pipeline_mode = #tpu.pipeline_mode<synchronous>, transform_indices = @transform_9, window_bounds = array<i64: 6, 8, 1>}, {transform_indices = @transform_10, window_bounds = array<i64: 1, 16, 128>}, {transform_indices = @transform_11, window_bounds = array<i64: 1, 8, 512>}]} {
    %c0 = arith.constant 0 : index
    %c0_0 = arith.constant 0 : index
    %c0_1 = arith.constant 0 : index
    %0 = vector.load %arg1[%c0, %c0_0, %c0_1] : memref<1x8x512xf32, #tpu.memory_space<vmem>>, vector<1x8x512xf32>
    %1 = vector.shape_cast %0 : vector<1x8x512xf32> to vector<8x512xf32>
    %c0_2 = arith.constant 0 : index
    %c0_3 = arith.constant 0 : index
    %c0_4 = arith.constant 0 : index
    %2 = vector.load %arg2[%c0_2, %c0_3, %c0_4] : memref<9x1x512xf32, #tpu.memory_space<vmem>>, vector<9x1x512xf32>
    %c0_5 = arith.constant 0 : index
    %c0_6 = arith.constant 0 : index
    %c0_7 = arith.constant 0 : index
    %3 = vector.load %arg10[%c0_5, %c0_6, %c0_7] : memref<6x8x1xf32, #tpu.memory_space<vmem>>, vector<1x8x1xf32>
    %4 = vector.shape_cast %3 : vector<1x8x1xf32> to vector<8x1xf32>
    %c1 = arith.constant 1 : index
    %c0_8 = arith.constant 0 : index
    %c0_9 = arith.constant 0 : index
    %5 = vector.load %arg10[%c1, %c0_8, %c0_9] : memref<6x8x1xf32, #tpu.memory_space<vmem>>, vector<1x8x1xf32>
    %6 = vector.shape_cast %5 : vector<1x8x1xf32> to vector<8x1xf32>
    %c2 = arith.constant 2 : index
    %c0_10 = arith.constant 0 : index
    %c0_11 = arith.constant 0 : index
    %7 = vector.load %arg10[%c2, %c0_10, %c0_11] : memref<6x8x1xf32, #tpu.memory_space<vmem>>, vector<1x8x1xf32>
    %8 = vector.shape_cast %7 : vector<1x8x1xf32> to vector<8x1xf32>
    %c3 = arith.constant 3 : index
    %c0_12 = arith.constant 0 : index
    %c0_13 = arith.constant 0 : index
    %9 = vector.load %arg10[%c3, %c0_12, %c0_13] : memref<6x8x1xf32, #tpu.memory_space<vmem>>, vector<1x8x1xf32>
    %10 = vector.shape_cast %9 : vector<1x8x1xf32> to vector<8x1xf32>
    %c4 = arith.constant 4 : index
    %c0_14 = arith.constant 0 : index
    %c0_15 = arith.constant 0 : index
    %11 = vector.load %arg10[%c4, %c0_14, %c0_15] : memref<6x8x1xf32, #tpu.memory_space<vmem>>, vector<1x8x1xf32>
    %12 = vector.shape_cast %11 : vector<1x8x1xf32> to vector<8x1xf32>
    %c5 = arith.constant 5 : index
    %c0_16 = arith.constant 0 : index
    %c0_17 = arith.constant 0 : index
    %13 = vector.load %arg10[%c5, %c0_16, %c0_17] : memref<6x8x1xf32, #tpu.memory_space<vmem>>, vector<1x8x1xf32>
    %14 = vector.shape_cast %13 : vector<1x8x1xf32> to vector<8x1xf32>
    %c17_i32 = arith.constant 17 : i32
    %15 = tpu.dynamic_rotate %1 by %c17_i32 dim 1 : vector<8x512xf32>, i32 -> vector<8x512xf32>
    %16 = vector.extract_strided_slice %2 {offsets = [0, 0, 0], sizes = [1, 1, 512], strides = [1, 1, 1]} : vector<9x1x512xf32> to vector<1x1x512xf32>
    %17 = vector.shape_cast %16 : vector<1x1x512xf32> to vector<1x512xf32>
    %18 = vector.broadcast %17 : vector<1x512xf32> to vector<8x512xf32>
    %19 = arith.mulf %15, %18 : vector<8x512xf32>
    %c0_18 = arith.constant 0 : index
    %c0_19 = arith.constant 0 : index
    %c0_20 = arith.constant 0 : index
    %20 = vector.load %arg4[%c0_18, %c0_19, %c0_20] : memref<9x8x8xf32, #tpu.memory_space<vmem>>, vector<1x8x8xf32>
    %21 = vector.shape_cast %20 : vector<1x8x8xf32> to vector<8x8xf32>
    %cst = arith.constant dense<0.000000e+00> : vector<8x512xf32>
    %22 = tpu.matmul %21, %19, %cst {dimension_numbers = #tpu.dot_dimension_numbers<[1], [0], [0], [1], [0, 0, 1, 1], [], []>} : vector<8x8xf32>, vector<8x512xf32>, vector<8x512xf32> -> vector<8x512xf32>
    %c16_i32 = arith.constant 16 : i32
    %23 = tpu.dynamic_rotate %1 by %c16_i32 dim 1 : vector<8x512xf32>, i32 -> vector<8x512xf32>
    %24 = vector.extract_strided_slice %2 {offsets = [1, 0, 0], sizes = [1, 1, 512], strides = [1, 1, 1]} : vector<9x1x512xf32> to vector<1x1x512xf32>
    %25 = vector.shape_cast %24 : vector<1x1x512xf32> to vector<1x512xf32>
    %26 = vector.broadcast %25 : vector<1x512xf32> to vector<8x512xf32>
    %27 = arith.mulf %23, %26 : vector<8x512xf32>
    %c1_21 = arith.constant 1 : index
    %c0_22 = arith.constant 0 : index
    %c0_23 = arith.constant 0 : index
    %28 = vector.load %arg4[%c1_21, %c0_22, %c0_23] : memref<9x8x8xf32, #tpu.memory_space<vmem>>, vector<1x8x8xf32>
    %29 = vector.shape_cast %28 : vector<1x8x8xf32> to vector<8x8xf32>
    %cst_24 = arith.constant dense<0.000000e+00> : vector<8x512xf32>
    %30 = tpu.matmul %29, %27, %cst_24 {dimension_numbers = #tpu.dot_dimension_numbers<[1], [0], [0], [1], [0, 0, 1, 1], [], []>} : vector<8x8xf32>, vector<8x512xf32>, vector<8x512xf32> -> vector<8x512xf32>
    %31 = arith.addf %22, %30 : vector<8x512xf32>
    %c15_i32 = arith.constant 15 : i32
    %32 = tpu.dynamic_rotate %1 by %c15_i32 dim 1 : vector<8x512xf32>, i32 -> vector<8x512xf32>
    %33 = vector.extract_strided_slice %2 {offsets = [2, 0, 0], sizes = [1, 1, 512], strides = [1, 1, 1]} : vector<9x1x512xf32> to vector<1x1x512xf32>
    %34 = vector.shape_cast %33 : vector<1x1x512xf32> to vector<1x512xf32>
    %35 = vector.broadcast %34 : vector<1x512xf32> to vector<8x512xf32>
    %36 = arith.mulf %32, %35 : vector<8x512xf32>
    %c2_25 = arith.constant 2 : index
    %c0_26 = arith.constant 0 : index
    %c0_27 = arith.constant 0 : index
    %37 = vector.load %arg4[%c2_25, %c0_26, %c0_27] : memref<9x8x8xf32, #tpu.memory_space<vmem>>, vector<1x8x8xf32>
    %38 = vector.shape_cast %37 : vector<1x8x8xf32> to vector<8x8xf32>
    %cst_28 = arith.constant dense<0.000000e+00> : vector<8x512xf32>
    %39 = tpu.matmul %38, %36, %cst_28 {dimension_numbers = #tpu.dot_dimension_numbers<[1], [0], [0], [1], [0, 0, 1, 1], [], []>} : vector<8x8xf32>, vector<8x512xf32>, vector<8x512xf32> -> vector<8x512xf32>
    %40 = arith.addf %31, %39 : vector<8x512xf32>
    %c1_i32 = arith.constant 1 : i32
    %41 = tpu.dynamic_rotate %1 by %c1_i32 dim 1 : vector<8x512xf32>, i32 -> vector<8x512xf32>
    %42 = vector.extract_strided_slice %2 {offsets = [3, 0, 0], sizes = [1, 1, 512], strides = [1, 1, 1]} : vector<9x1x512xf32> to vector<1x1x512xf32>
    %43 = vector.shape_cast %42 : vector<1x1x512xf32> to vector<1x512xf32>
    %44 = vector.broadcast %43 : vector<1x512xf32> to vector<8x512xf32>
    %45 = arith.mulf %41, %44 : vector<8x512xf32>
    %c3_29 = arith.constant 3 : index
    %c0_30 = arith.constant 0 : index
    %c0_31 = arith.constant 0 : index
    %46 = vector.load %arg4[%c3_29, %c0_30, %c0_31] : memref<9x8x8xf32, #tpu.memory_space<vmem>>, vector<1x8x8xf32>
    %47 = vector.shape_cast %46 : vector<1x8x8xf32> to vector<8x8xf32>
    %cst_32 = arith.constant dense<0.000000e+00> : vector<8x512xf32>
    %48 = tpu.matmul %47, %45, %cst_32 {dimension_numbers = #tpu.dot_dimension_numbers<[1], [0], [0], [1], [0, 0, 1, 1], [], []>} : vector<8x8xf32>, vector<8x512xf32>, vector<8x512xf32> -> vector<8x512xf32>
    %49 = arith.addf %40, %48 : vector<8x512xf32>
    %c4_33 = arith.constant 4 : index
    %c0_34 = arith.constant 0 : index
    %c0_35 = arith.constant 0 : index
    %50 = vector.load %arg4[%c4_33, %c0_34, %c0_35] : memref<9x8x8xf32, #tpu.memory_space<vmem>>, vector<1x8x8xf32>
    %51 = vector.shape_cast %50 : vector<1x8x8xf32> to vector<8x8xf32>
    %cst_36 = arith.constant dense<0.000000e+00> : vector<8x512xf32>
    %52 = tpu.matmul %51, %1, %cst_36 {dimension_numbers = #tpu.dot_dimension_numbers<[1], [0], [0], [1], [0, 0, 1, 1], [], []>} : vector<8x8xf32>, vector<8x512xf32>, vector<8x512xf32> -> vector<8x512xf32>
    %53 = arith.addf %49, %52 : vector<8x512xf32>
    %c511_i32 = arith.constant 511 : i32
    %54 = tpu.dynamic_rotate %1 by %c511_i32 dim 1 : vector<8x512xf32>, i32 -> vector<8x512xf32>
    %55 = vector.extract_strided_slice %2 {offsets = [5, 0, 0], sizes = [1, 1, 512], strides = [1, 1, 1]} : vector<9x1x512xf32> to vector<1x1x512xf32>
    %56 = vector.shape_cast %55 : vector<1x1x512xf32> to vector<1x512xf32>
    %57 = vector.broadcast %56 : vector<1x512xf32> to vector<8x512xf32>
    %58 = arith.mulf %54, %57 : vector<8x512xf32>
    %c5_37 = arith.constant 5 : index
    %c0_38 = arith.constant 0 : index
    %c0_39 = arith.constant 0 : index
    %59 = vector.load %arg4[%c5_37, %c0_38, %c0_39] : memref<9x8x8xf32, #tpu.memory_space<vmem>>, vector<1x8x8xf32>
    %60 = vector.shape_cast %59 : vector<1x8x8xf32> to vector<8x8xf32>
    %cst_40 = arith.constant dense<0.000000e+00> : vector<8x512xf32>
    %61 = tpu.matmul %60, %58, %cst_40 {dimension_numbers = #tpu.dot_dimension_numbers<[1], [0], [0], [1], [0, 0, 1, 1], [], []>} : vector<8x8xf32>, vector<8x512xf32>, vector<8x512xf32> -> vector<8x512xf32>
    %62 = arith.addf %53, %61 : vector<8x512xf32>
    %c497_i32 = arith.constant 497 : i32
    %63 = tpu.dynamic_rotate %1 by %c497_i32 dim 1 : vector<8x512xf32>, i32 -> vector<8x512xf32>
    %64 = vector.extract_strided_slice %2 {offsets = [6, 0, 0], sizes = [1, 1, 512], strides = [1, 1, 1]} : vector<9x1x512xf32> to vector<1x1x512xf32>
    %65 = vector.shape_cast %64 : vector<1x1x512xf32> to vector<1x512xf32>
    %66 = vector.broadcast %65 : vector<1x512xf32> to vector<8x512xf32>
    %67 = arith.mulf %63, %66 : vector<8x512xf32>
    %c6 = arith.constant 6 : index
    %c0_41 = arith.constant 0 : index
    %c0_42 = arith.constant 0 : index
    %68 = vector.load %arg4[%c6, %c0_41, %c0_42] : memref<9x8x8xf32, #tpu.memory_space<vmem>>, vector<1x8x8xf32>
    %69 = vector.shape_cast %68 : vector<1x8x8xf32> to vector<8x8xf32>
    %cst_43 = arith.constant dense<0.000000e+00> : vector<8x512xf32>
    %70 = tpu.matmul %69, %67, %cst_43 {dimension_numbers = #tpu.dot_dimension_numbers<[1], [0], [0], [1], [0, 0, 1, 1], [], []>} : vector<8x8xf32>, vector<8x512xf32>, vector<8x512xf32> -> vector<8x512xf32>
    %71 = arith.addf %62, %70 : vector<8x512xf32>
    %c496_i32 = arith.constant 496 : i32
    %72 = tpu.dynamic_rotate %1 by %c496_i32 dim 1 : vector<8x512xf32>, i32 -> vector<8x512xf32>
    %73 = vector.extract_strided_slice %2 {offsets = [7, 0, 0], sizes = [1, 1, 512], strides = [1, 1, 1]} : vector<9x1x512xf32> to vector<1x1x512xf32>
    %74 = vector.shape_cast %73 : vector<1x1x512xf32> to vector<1x512xf32>
    %75 = vector.broadcast %74 : vector<1x512xf32> to vector<8x512xf32>
    %76 = arith.mulf %72, %75 : vector<8x512xf32>
    %c7 = arith.constant 7 : index
    %c0_44 = arith.constant 0 : index
    %c0_45 = arith.constant 0 : index
    %77 = vector.load %arg4[%c7, %c0_44, %c0_45] : memref<9x8x8xf32, #tpu.memory_space<vmem>>, vector<1x8x8xf32>
    %78 = vector.shape_cast %77 : vector<1x8x8xf32> to vector<8x8xf32>
    %cst_46 = arith.constant dense<0.000000e+00> : vector<8x512xf32>
    %79 = tpu.matmul %78, %76, %cst_46 {dimension_numbers = #tpu.dot_dimension_numbers<[1], [0], [0], [1], [0, 0, 1, 1], [], []>} : vector<8x8xf32>, vector<8x512xf32>, vector<8x512xf32> -> vector<8x512xf32>
    %80 = arith.addf %71, %79 : vector<8x512xf32>
    %c495_i32 = arith.constant 495 : i32
    %81 = tpu.dynamic_rotate %1 by %c495_i32 dim 1 : vector<8x512xf32>, i32 -> vector<8x512xf32>
    %82 = vector.extract_strided_slice %2 {offsets = [8, 0, 0], sizes = [1, 1, 512], strides = [1, 1, 1]} : vector<9x1x512xf32> to vector<1x1x512xf32>
    %83 = vector.shape_cast %82 : vector<1x1x512xf32> to vector<1x512xf32>
    %84 = vector.broadcast %83 : vector<1x512xf32> to vector<8x512xf32>
    %85 = arith.mulf %81, %84 : vector<8x512xf32>
    %c8 = arith.constant 8 : index
    %c0_47 = arith.constant 0 : index
    %c0_48 = arith.constant 0 : index
    %86 = vector.load %arg4[%c8, %c0_47, %c0_48] : memref<9x8x8xf32, #tpu.memory_space<vmem>>, vector<1x8x8xf32>
    %87 = vector.shape_cast %86 : vector<1x8x8xf32> to vector<8x8xf32>
    %cst_49 = arith.constant dense<0.000000e+00> : vector<8x512xf32>
    %88 = tpu.matmul %87, %85, %cst_49 {dimension_numbers = #tpu.dot_dimension_numbers<[1], [0], [0], [1], [0, 0, 1, 1], [], []>} : vector<8x8xf32>, vector<8x512xf32>, vector<8x512xf32> -> vector<8x512xf32>
    %89 = arith.addf %80, %88 : vector<8x512xf32>
    %90 = vector.broadcast %4 : vector<8x1xf32> to vector<8x512xf32>
    %91 = arith.addf %89, %90 : vector<8x512xf32>
    %cst_50 = arith.constant 0.000000e+00 : f32
    %92 = vector.broadcast %cst_50 : f32 to vector<8x512xf32>
    %93 = arith.maximumf %91, %92 : vector<8x512xf32>
    %c0_51 = arith.constant 0 : index
    %c0_52 = arith.constant 0 : index
    %94 = vector.load %arg5[%c0_51, %c0_52] : memref<8x8xf32, #tpu.memory_space<vmem>>, vector<8x8xf32>
    %cst_53 = arith.constant dense<0.000000e+00> : vector<8x512xf32>
    %95 = tpu.matmul %94, %1, %cst_53 {dimension_numbers = #tpu.dot_dimension_numbers<[1], [0], [0], [1], [0, 0, 1, 1], [], []>} : vector<8x8xf32>, vector<8x512xf32>, vector<8x512xf32> -> vector<8x512xf32>
    %96 = vector.broadcast %6 : vector<8x1xf32> to vector<8x512xf32>
    %97 = arith.addf %95, %96 : vector<8x512xf32>
    %98 = arith.addf %93, %97 : vector<8x512xf32>
    %cst_54 = arith.constant 0.000000e+00 : f32
    %99 = vector.broadcast %cst_54 : f32 to vector<8x512xf32>
    %100 = arith.maximumf %98, %99 : vector<8x512xf32>
    %c17_i32_55 = arith.constant 17 : i32
    %101 = tpu.dynamic_rotate %100 by %c17_i32_55 dim 1 : vector<8x512xf32>, i32 -> vector<8x512xf32>
    %102 = vector.extract_strided_slice %2 {offsets = [0, 0, 0], sizes = [1, 1, 512], strides = [1, 1, 1]} : vector<9x1x512xf32> to vector<1x1x512xf32>
    %103 = vector.shape_cast %102 : vector<1x1x512xf32> to vector<1x512xf32>
    %104 = vector.broadcast %103 : vector<1x512xf32> to vector<8x512xf32>
    %105 = arith.mulf %101, %104 : vector<8x512xf32>
    %c0_56 = arith.constant 0 : index
    %c0_57 = arith.constant 0 : index
    %c0_58 = arith.constant 0 : index
    %106 = vector.load %arg6[%c0_56, %c0_57, %c0_58] : memref<9x8x8xf32, #tpu.memory_space<vmem>>, vector<1x8x8xf32>
    %107 = vector.shape_cast %106 : vector<1x8x8xf32> to vector<8x8xf32>
    %cst_59 = arith.constant dense<0.000000e+00> : vector<8x512xf32>
    %108 = tpu.matmul %107, %105, %cst_59 {dimension_numbers = #tpu.dot_dimension_numbers<[1], [0], [0], [1], [0, 0, 1, 1], [], []>} : vector<8x8xf32>, vector<8x512xf32>, vector<8x512xf32> -> vector<8x512xf32>
    %c16_i32_60 = arith.constant 16 : i32
    %109 = tpu.dynamic_rotate %100 by %c16_i32_60 dim 1 : vector<8x512xf32>, i32 -> vector<8x512xf32>
    %110 = vector.extract_strided_slice %2 {offsets = [1, 0, 0], sizes = [1, 1, 512], strides = [1, 1, 1]} : vector<9x1x512xf32> to vector<1x1x512xf32>
    %111 = vector.shape_cast %110 : vector<1x1x512xf32> to vector<1x512xf32>
    %112 = vector.broadcast %111 : vector<1x512xf32> to vector<8x512xf32>
    %113 = arith.mulf %109, %112 : vector<8x512xf32>
    %c1_61 = arith.constant 1 : index
    %c0_62 = arith.constant 0 : index
    %c0_63 = arith.constant 0 : index
    %114 = vector.load %arg6[%c1_61, %c0_62, %c0_63] : memref<9x8x8xf32, #tpu.memory_space<vmem>>, vector<1x8x8xf32>
    %115 = vector.shape_cast %114 : vector<1x8x8xf32> to vector<8x8xf32>
    %cst_64 = arith.constant dense<0.000000e+00> : vector<8x512xf32>
    %116 = tpu.matmul %115, %113, %cst_64 {dimension_numbers = #tpu.dot_dimension_numbers<[1], [0], [0], [1], [0, 0, 1, 1], [], []>} : vector<8x8xf32>, vector<8x512xf32>, vector<8x512xf32> -> vector<8x512xf32>
    %117 = arith.addf %108, %116 : vector<8x512xf32>
    %c15_i32_65 = arith.constant 15 : i32
    %118 = tpu.dynamic_rotate %100 by %c15_i32_65 dim 1 : vector<8x512xf32>, i32 -> vector<8x512xf32>
    %119 = vector.extract_strided_slice %2 {offsets = [2, 0, 0], sizes = [1, 1, 512], strides = [1, 1, 1]} : vector<9x1x512xf32> to vector<1x1x512xf32>
    %120 = vector.shape_cast %119 : vector<1x1x512xf32> to vector<1x512xf32>
    %121 = vector.broadcast %120 : vector<1x512xf32> to vector<8x512xf32>
    %122 = arith.mulf %118, %121 : vector<8x512xf32>
    %c2_66 = arith.constant 2 : index
    %c0_67 = arith.constant 0 : index
    %c0_68 = arith.constant 0 : index
    %123 = vector.load %arg6[%c2_66, %c0_67, %c0_68] : memref<9x8x8xf32, #tpu.memory_space<vmem>>, vector<1x8x8xf32>
    %124 = vector.shape_cast %123 : vector<1x8x8xf32> to vector<8x8xf32>
    %cst_69 = arith.constant dense<0.000000e+00> : vector<8x512xf32>
    %125 = tpu.matmul %124, %122, %cst_69 {dimension_numbers = #tpu.dot_dimension_numbers<[1], [0], [0], [1], [0, 0, 1, 1], [], []>} : vector<8x8xf32>, vector<8x512xf32>, vector<8x512xf32> -> vector<8x512xf32>
    %126 = arith.addf %117, %125 : vector<8x512xf32>
    %c1_i32_70 = arith.constant 1 : i32
    %127 = tpu.dynamic_rotate %100 by %c1_i32_70 dim 1 : vector<8x512xf32>, i32 -> vector<8x512xf32>
    %128 = vector.extract_strided_slice %2 {offsets = [3, 0, 0], sizes = [1, 1, 512], strides = [1, 1, 1]} : vector<9x1x512xf32> to vector<1x1x512xf32>
    %129 = vector.shape_cast %128 : vector<1x1x512xf32> to vector<1x512xf32>
    %130 = vector.broadcast %129 : vector<1x512xf32> to vector<8x512xf32>
    %131 = arith.mulf %127, %130 : vector<8x512xf32>
    %c3_71 = arith.constant 3 : index
    %c0_72 = arith.constant 0 : index
    %c0_73 = arith.constant 0 : index
    %132 = vector.load %arg6[%c3_71, %c0_72, %c0_73] : memref<9x8x8xf32, #tpu.memory_space<vmem>>, vector<1x8x8xf32>
    %133 = vector.shape_cast %132 : vector<1x8x8xf32> to vector<8x8xf32>
    %cst_74 = arith.constant dense<0.000000e+00> : vector<8x512xf32>
    %134 = tpu.matmul %133, %131, %cst_74 {dimension_numbers = #tpu.dot_dimension_numbers<[1], [0], [0], [1], [0, 0, 1, 1], [], []>} : vector<8x8xf32>, vector<8x512xf32>, vector<8x512xf32> -> vector<8x512xf32>
    %135 = arith.addf %126, %134 : vector<8x512xf32>
    %c4_75 = arith.constant 4 : index
    %c0_76 = arith.constant 0 : index
    %c0_77 = arith.constant 0 : index
    %136 = vector.load %arg6[%c4_75, %c0_76, %c0_77] : memref<9x8x8xf32, #tpu.memory_space<vmem>>, vector<1x8x8xf32>
    %137 = vector.shape_cast %136 : vector<1x8x8xf32> to vector<8x8xf32>
    %cst_78 = arith.constant dense<0.000000e+00> : vector<8x512xf32>
    %138 = tpu.matmul %137, %100, %cst_78 {dimension_numbers = #tpu.dot_dimension_numbers<[1], [0], [0], [1], [0, 0, 1, 1], [], []>} : vector<8x8xf32>, vector<8x512xf32>, vector<8x512xf32> -> vector<8x512xf32>
    %139 = arith.addf %135, %138 : vector<8x512xf32>
    %c511_i32_79 = arith.constant 511 : i32
    %140 = tpu.dynamic_rotate %100 by %c511_i32_79 dim 1 : vector<8x512xf32>, i32 -> vector<8x512xf32>
    %141 = vector.extract_strided_slice %2 {offsets = [5, 0, 0], sizes = [1, 1, 512], strides = [1, 1, 1]} : vector<9x1x512xf32> to vector<1x1x512xf32>
    %142 = vector.shape_cast %141 : vector<1x1x512xf32> to vector<1x512xf32>
    %143 = vector.broadcast %142 : vector<1x512xf32> to vector<8x512xf32>
    %144 = arith.mulf %140, %143 : vector<8x512xf32>
    %c5_80 = arith.constant 5 : index
    %c0_81 = arith.constant 0 : index
    %c0_82 = arith.constant 0 : index
    %145 = vector.load %arg6[%c5_80, %c0_81, %c0_82] : memref<9x8x8xf32, #tpu.memory_space<vmem>>, vector<1x8x8xf32>
    %146 = vector.shape_cast %145 : vector<1x8x8xf32> to vector<8x8xf32>
    %cst_83 = arith.constant dense<0.000000e+00> : vector<8x512xf32>
    %147 = tpu.matmul %146, %144, %cst_83 {dimension_numbers = #tpu.dot_dimension_numbers<[1], [0], [0], [1], [0, 0, 1, 1], [], []>} : vector<8x8xf32>, vector<8x512xf32>, vector<8x512xf32> -> vector<8x512xf32>
    %148 = arith.addf %139, %147 : vector<8x512xf32>
    %c497_i32_84 = arith.constant 497 : i32
    %149 = tpu.dynamic_rotate %100 by %c497_i32_84 dim 1 : vector<8x512xf32>, i32 -> vector<8x512xf32>
    %150 = vector.extract_strided_slice %2 {offsets = [6, 0, 0], sizes = [1, 1, 512], strides = [1, 1, 1]} : vector<9x1x512xf32> to vector<1x1x512xf32>
    %151 = vector.shape_cast %150 : vector<1x1x512xf32> to vector<1x512xf32>
    %152 = vector.broadcast %151 : vector<1x512xf32> to vector<8x512xf32>
    %153 = arith.mulf %149, %152 : vector<8x512xf32>
    %c6_85 = arith.constant 6 : index
    %c0_86 = arith.constant 0 : index
    %c0_87 = arith.constant 0 : index
    %154 = vector.load %arg6[%c6_85, %c0_86, %c0_87] : memref<9x8x8xf32, #tpu.memory_space<vmem>>, vector<1x8x8xf32>
    %155 = vector.shape_cast %154 : vector<1x8x8xf32> to vector<8x8xf32>
    %cst_88 = arith.constant dense<0.000000e+00> : vector<8x512xf32>
    %156 = tpu.matmul %155, %153, %cst_88 {dimension_numbers = #tpu.dot_dimension_numbers<[1], [0], [0], [1], [0, 0, 1, 1], [], []>} : vector<8x8xf32>, vector<8x512xf32>, vector<8x512xf32> -> vector<8x512xf32>
    %157 = arith.addf %148, %156 : vector<8x512xf32>
    %c496_i32_89 = arith.constant 496 : i32
    %158 = tpu.dynamic_rotate %100 by %c496_i32_89 dim 1 : vector<8x512xf32>, i32 -> vector<8x512xf32>
    %159 = vector.extract_strided_slice %2 {offsets = [7, 0, 0], sizes = [1, 1, 512], strides = [1, 1, 1]} : vector<9x1x512xf32> to vector<1x1x512xf32>
    %160 = vector.shape_cast %159 : vector<1x1x512xf32> to vector<1x512xf32>
    %161 = vector.broadcast %160 : vector<1x512xf32> to vector<8x512xf32>
    %162 = arith.mulf %158, %161 : vector<8x512xf32>
    %c7_90 = arith.constant 7 : index
    %c0_91 = arith.constant 0 : index
    %c0_92 = arith.constant 0 : index
    %163 = vector.load %arg6[%c7_90, %c0_91, %c0_92] : memref<9x8x8xf32, #tpu.memory_space<vmem>>, vector<1x8x8xf32>
    %164 = vector.shape_cast %163 : vector<1x8x8xf32> to vector<8x8xf32>
    %cst_93 = arith.constant dense<0.000000e+00> : vector<8x512xf32>
    %165 = tpu.matmul %164, %162, %cst_93 {dimension_numbers = #tpu.dot_dimension_numbers<[1], [0], [0], [1], [0, 0, 1, 1], [], []>} : vector<8x8xf32>, vector<8x512xf32>, vector<8x512xf32> -> vector<8x512xf32>
    %166 = arith.addf %157, %165 : vector<8x512xf32>
    %c495_i32_94 = arith.constant 495 : i32
    %167 = tpu.dynamic_rotate %100 by %c495_i32_94 dim 1 : vector<8x512xf32>, i32 -> vector<8x512xf32>
    %168 = vector.extract_strided_slice %2 {offsets = [8, 0, 0], sizes = [1, 1, 512], strides = [1, 1, 1]} : vector<9x1x512xf32> to vector<1x1x512xf32>
    %169 = vector.shape_cast %168 : vector<1x1x512xf32> to vector<1x512xf32>
    %170 = vector.broadcast %169 : vector<1x512xf32> to vector<8x512xf32>
    %171 = arith.mulf %167, %170 : vector<8x512xf32>
    %c8_95 = arith.constant 8 : index
    %c0_96 = arith.constant 0 : index
    %c0_97 = arith.constant 0 : index
    %172 = vector.load %arg6[%c8_95, %c0_96, %c0_97] : memref<9x8x8xf32, #tpu.memory_space<vmem>>, vector<1x8x8xf32>
    %173 = vector.shape_cast %172 : vector<1x8x8xf32> to vector<8x8xf32>
    %cst_98 = arith.constant dense<0.000000e+00> : vector<8x512xf32>
    %174 = tpu.matmul %173, %171, %cst_98 {dimension_numbers = #tpu.dot_dimension_numbers<[1], [0], [0], [1], [0, 0, 1, 1], [], []>} : vector<8x8xf32>, vector<8x512xf32>, vector<8x512xf32> -> vector<8x512xf32>
    %175 = arith.addf %166, %174 : vector<8x512xf32>
    %176 = vector.broadcast %8 : vector<8x1xf32> to vector<8x512xf32>
    %177 = arith.addf %175, %176 : vector<8x512xf32>
    %cst_99 = arith.constant 0.000000e+00 : f32
    %178 = vector.broadcast %cst_99 : f32 to vector<8x512xf32>
    %179 = arith.maximumf %177, %178 : vector<8x512xf32>
    %180 = arith.addf %179, %97 : vector<8x512xf32>
    %cst_100 = arith.constant 0.000000e+00 : f32
    %181 = vector.broadcast %cst_100 : f32 to vector<8x512xf32>
    %182 = arith.maximumf %180, %181 : vector<8x512xf32>
    %c17_i32_101 = arith.constant 17 : i32
    %183 = tpu.dynamic_rotate %182 by %c17_i32_101 dim 1 : vector<8x512xf32>, i32 -> vector<8x512xf32>
    %184 = vector.extract_strided_slice %2 {offsets = [0, 0, 0], sizes = [1, 1, 512], strides = [1, 1, 1]} : vector<9x1x512xf32> to vector<1x1x512xf32>
    %185 = vector.shape_cast %184 : vector<1x1x512xf32> to vector<1x512xf32>
    %186 = vector.broadcast %185 : vector<1x512xf32> to vector<8x512xf32>
    %187 = arith.mulf %183, %186 : vector<8x512xf32>
    %c0_102 = arith.constant 0 : index
    %c0_103 = arith.constant 0 : index
    %c0_104 = arith.constant 0 : index
    %188 = vector.load %arg6[%c0_102, %c0_103, %c0_104] : memref<9x8x8xf32, #tpu.memory_space<vmem>>, vector<1x8x8xf32>
    %189 = vector.shape_cast %188 : vector<1x8x8xf32> to vector<8x8xf32>
    %cst_105 = arith.constant dense<0.000000e+00> : vector<8x512xf32>
    %190 = tpu.matmul %189, %187, %cst_105 {dimension_numbers = #tpu.dot_dimension_numbers<[1], [0], [0], [1], [0, 0, 1, 1], [], []>} : vector<8x8xf32>, vector<8x512xf32>, vector<8x512xf32> -> vector<8x512xf32>
    %c16_i32_106 = arith.constant 16 : i32
    %191 = tpu.dynamic_rotate %182 by %c16_i32_106 dim 1 : vector<8x512xf32>, i32 -> vector<8x512xf32>
    %192 = vector.extract_strided_slice %2 {offsets = [1, 0, 0], sizes = [1, 1, 512], strides = [1, 1, 1]} : vector<9x1x512xf32> to vector<1x1x512xf32>
    %193 = vector.shape_cast %192 : vector<1x1x512xf32> to vector<1x512xf32>
    %194 = vector.broadcast %193 : vector<1x512xf32> to vector<8x512xf32>
    %195 = arith.mulf %191, %194 : vector<8x512xf32>
    %c1_107 = arith.constant 1 : index
    %c0_108 = arith.constant 0 : index
    %c0_109 = arith.constant 0 : index
    %196 = vector.load %arg6[%c1_107, %c0_108, %c0_109] : memref<9x8x8xf32, #tpu.memory_space<vmem>>, vector<1x8x8xf32>
    %197 = vector.shape_cast %196 : vector<1x8x8xf32> to vector<8x8xf32>
    %cst_110 = arith.constant dense<0.000000e+00> : vector<8x512xf32>
    %198 = tpu.matmul %197, %195, %cst_110 {dimension_numbers = #tpu.dot_dimension_numbers<[1], [0], [0], [1], [0, 0, 1, 1], [], []>} : vector<8x8xf32>, vector<8x512xf32>, vector<8x512xf32> -> vector<8x512xf32>
    %199 = arith.addf %190, %198 : vector<8x512xf32>
    %c15_i32_111 = arith.constant 15 : i32
    %200 = tpu.dynamic_rotate %182 by %c15_i32_111 dim 1 : vector<8x512xf32>, i32 -> vector<8x512xf32>
    %201 = vector.extract_strided_slice %2 {offsets = [2, 0, 0], sizes = [1, 1, 512], strides = [1, 1, 1]} : vector<9x1x512xf32> to vector<1x1x512xf32>
    %202 = vector.shape_cast %201 : vector<1x1x512xf32> to vector<1x512xf32>
    %203 = vector.broadcast %202 : vector<1x512xf32> to vector<8x512xf32>
    %204 = arith.mulf %200, %203 : vector<8x512xf32>
    %c2_112 = arith.constant 2 : index
    %c0_113 = arith.constant 0 : index
    %c0_114 = arith.constant 0 : index
    %205 = vector.load %arg6[%c2_112, %c0_113, %c0_114] : memref<9x8x8xf32, #tpu.memory_space<vmem>>, vector<1x8x8xf32>
    %206 = vector.shape_cast %205 : vector<1x8x8xf32> to vector<8x8xf32>
    %cst_115 = arith.constant dense<0.000000e+00> : vector<8x512xf32>
    %207 = tpu.matmul %206, %204, %cst_115 {dimension_numbers = #tpu.dot_dimension_numbers<[1], [0], [0], [1], [0, 0, 1, 1], [], []>} : vector<8x8xf32>, vector<8x512xf32>, vector<8x512xf32> -> vector<8x512xf32>
    %208 = arith.addf %199, %207 : vector<8x512xf32>
    %c1_i32_116 = arith.constant 1 : i32
    %209 = tpu.dynamic_rotate %182 by %c1_i32_116 dim 1 : vector<8x512xf32>, i32 -> vector<8x512xf32>
    %210 = vector.extract_strided_slice %2 {offsets = [3, 0, 0], sizes = [1, 1, 512], strides = [1, 1, 1]} : vector<9x1x512xf32> to vector<1x1x512xf32>
    %211 = vector.shape_cast %210 : vector<1x1x512xf32> to vector<1x512xf32>
    %212 = vector.broadcast %211 : vector<1x512xf32> to vector<8x512xf32>
    %213 = arith.mulf %209, %212 : vector<8x512xf32>
    %c3_117 = arith.constant 3 : index
    %c0_118 = arith.constant 0 : index
    %c0_119 = arith.constant 0 : index
    %214 = vector.load %arg6[%c3_117, %c0_118, %c0_119] : memref<9x8x8xf32, #tpu.memory_space<vmem>>, vector<1x8x8xf32>
    %215 = vector.shape_cast %214 : vector<1x8x8xf32> to vector<8x8xf32>
    %cst_120 = arith.constant dense<0.000000e+00> : vector<8x512xf32>
    %216 = tpu.matmul %215, %213, %cst_120 {dimension_numbers = #tpu.dot_dimension_numbers<[1], [0], [0], [1], [0, 0, 1, 1], [], []>} : vector<8x8xf32>, vector<8x512xf32>, vector<8x512xf32> -> vector<8x512xf32>
    %217 = arith.addf %208, %216 : vector<8x512xf32>
    %c4_121 = arith.constant 4 : index
    %c0_122 = arith.constant 0 : index
    %c0_123 = arith.constant 0 : index
    %218 = vector.load %arg6[%c4_121, %c0_122, %c0_123] : memref<9x8x8xf32, #tpu.memory_space<vmem>>, vector<1x8x8xf32>
    %219 = vector.shape_cast %218 : vector<1x8x8xf32> to vector<8x8xf32>
    %cst_124 = arith.constant dense<0.000000e+00> : vector<8x512xf32>
    %220 = tpu.matmul %219, %182, %cst_124 {dimension_numbers = #tpu.dot_dimension_numbers<[1], [0], [0], [1], [0, 0, 1, 1], [], []>} : vector<8x8xf32>, vector<8x512xf32>, vector<8x512xf32> -> vector<8x512xf32>
    %221 = arith.addf %217, %220 : vector<8x512xf32>
    %c511_i32_125 = arith.constant 511 : i32
    %222 = tpu.dynamic_rotate %182 by %c511_i32_125 dim 1 : vector<8x512xf32>, i32 -> vector<8x512xf32>
    %223 = vector.extract_strided_slice %2 {offsets = [5, 0, 0], sizes = [1, 1, 512], strides = [1, 1, 1]} : vector<9x1x512xf32> to vector<1x1x512xf32>
    %224 = vector.shape_cast %223 : vector<1x1x512xf32> to vector<1x512xf32>
    %225 = vector.broadcast %224 : vector<1x512xf32> to vector<8x512xf32>
    %226 = arith.mulf %222, %225 : vector<8x512xf32>
    %c5_126 = arith.constant 5 : index
    %c0_127 = arith.constant 0 : index
    %c0_128 = arith.constant 0 : index
    %227 = vector.load %arg6[%c5_126, %c0_127, %c0_128] : memref<9x8x8xf32, #tpu.memory_space<vmem>>, vector<1x8x8xf32>
    %228 = vector.shape_cast %227 : vector<1x8x8xf32> to vector<8x8xf32>
    %cst_129 = arith.constant dense<0.000000e+00> : vector<8x512xf32>
    %229 = tpu.matmul %228, %226, %cst_129 {dimension_numbers = #tpu.dot_dimension_numbers<[1], [0], [0], [1], [0, 0, 1, 1], [], []>} : vector<8x8xf32>, vector<8x512xf32>, vector<8x512xf32> -> vector<8x512xf32>
    %230 = arith.addf %221, %229 : vector<8x512xf32>
    %c497_i32_130 = arith.constant 497 : i32
    %231 = tpu.dynamic_rotate %182 by %c497_i32_130 dim 1 : vector<8x512xf32>, i32 -> vector<8x512xf32>
    %232 = vector.extract_strided_slice %2 {offsets = [6, 0, 0], sizes = [1, 1, 512], strides = [1, 1, 1]} : vector<9x1x512xf32> to vector<1x1x512xf32>
    %233 = vector.shape_cast %232 : vector<1x1x512xf32> to vector<1x512xf32>
    %234 = vector.broadcast %233 : vector<1x512xf32> to vector<8x512xf32>
    %235 = arith.mulf %231, %234 : vector<8x512xf32>
    %c6_131 = arith.constant 6 : index
    %c0_132 = arith.constant 0 : index
    %c0_133 = arith.constant 0 : index
    %236 = vector.load %arg6[%c6_131, %c0_132, %c0_133] : memref<9x8x8xf32, #tpu.memory_space<vmem>>, vector<1x8x8xf32>
    %237 = vector.shape_cast %236 : vector<1x8x8xf32> to vector<8x8xf32>
    %cst_134 = arith.constant dense<0.000000e+00> : vector<8x512xf32>
    %238 = tpu.matmul %237, %235, %cst_134 {dimension_numbers = #tpu.dot_dimension_numbers<[1], [0], [0], [1], [0, 0, 1, 1], [], []>} : vector<8x8xf32>, vector<8x512xf32>, vector<8x512xf32> -> vector<8x512xf32>
    %239 = arith.addf %230, %238 : vector<8x512xf32>
    %c496_i32_135 = arith.constant 496 : i32
    %240 = tpu.dynamic_rotate %182 by %c496_i32_135 dim 1 : vector<8x512xf32>, i32 -> vector<8x512xf32>
    %241 = vector.extract_strided_slice %2 {offsets = [7, 0, 0], sizes = [1, 1, 512], strides = [1, 1, 1]} : vector<9x1x512xf32> to vector<1x1x512xf32>
    %242 = vector.shape_cast %241 : vector<1x1x512xf32> to vector<1x512xf32>
    %243 = vector.broadcast %242 : vector<1x512xf32> to vector<8x512xf32>
    %244 = arith.mulf %240, %243 : vector<8x512xf32>
    %c7_136 = arith.constant 7 : index
    %c0_137 = arith.constant 0 : index
    %c0_138 = arith.constant 0 : index
    %245 = vector.load %arg6[%c7_136, %c0_137, %c0_138] : memref<9x8x8xf32, #tpu.memory_space<vmem>>, vector<1x8x8xf32>
    %246 = vector.shape_cast %245 : vector<1x8x8xf32> to vector<8x8xf32>
    %cst_139 = arith.constant dense<0.000000e+00> : vector<8x512xf32>
    %247 = tpu.matmul %246, %244, %cst_139 {dimension_numbers = #tpu.dot_dimension_numbers<[1], [0], [0], [1], [0, 0, 1, 1], [], []>} : vector<8x8xf32>, vector<8x512xf32>, vector<8x512xf32> -> vector<8x512xf32>
    %248 = arith.addf %239, %247 : vector<8x512xf32>
    %c495_i32_140 = arith.constant 495 : i32
    %249 = tpu.dynamic_rotate %182 by %c495_i32_140 dim 1 : vector<8x512xf32>, i32 -> vector<8x512xf32>
    %250 = vector.extract_strided_slice %2 {offsets = [8, 0, 0], sizes = [1, 1, 512], strides = [1, 1, 1]} : vector<9x1x512xf32> to vector<1x1x512xf32>
    %251 = vector.shape_cast %250 : vector<1x1x512xf32> to vector<1x512xf32>
    %252 = vector.broadcast %251 : vector<1x512xf32> to vector<8x512xf32>
    %253 = arith.mulf %249, %252 : vector<8x512xf32>
    %c8_141 = arith.constant 8 : index
    %c0_142 = arith.constant 0 : index
    %c0_143 = arith.constant 0 : index
    %254 = vector.load %arg6[%c8_141, %c0_142, %c0_143] : memref<9x8x8xf32, #tpu.memory_space<vmem>>, vector<1x8x8xf32>
    %255 = vector.shape_cast %254 : vector<1x8x8xf32> to vector<8x8xf32>
    %cst_144 = arith.constant dense<0.000000e+00> : vector<8x512xf32>
    %256 = tpu.matmul %255, %253, %cst_144 {dimension_numbers = #tpu.dot_dimension_numbers<[1], [0], [0], [1], [0, 0, 1, 1], [], []>} : vector<8x8xf32>, vector<8x512xf32>, vector<8x512xf32> -> vector<8x512xf32>
    %257 = arith.addf %248, %256 : vector<8x512xf32>
    %258 = vector.broadcast %8 : vector<8x1xf32> to vector<8x512xf32>
    %259 = arith.addf %257, %258 : vector<8x512xf32>
    %cst_145 = arith.constant 0.000000e+00 : f32
    %260 = vector.broadcast %cst_145 : f32 to vector<8x512xf32>
    %261 = arith.maximumf %259, %260 : vector<8x512xf32>
    %c17_i32_146 = arith.constant 17 : i32
    %262 = tpu.dynamic_rotate %261 by %c17_i32_146 dim 1 : vector<8x512xf32>, i32 -> vector<8x512xf32>
    %263 = vector.extract_strided_slice %2 {offsets = [0, 0, 0], sizes = [1, 1, 512], strides = [1, 1, 1]} : vector<9x1x512xf32> to vector<1x1x512xf32>
    %264 = vector.shape_cast %263 : vector<1x1x512xf32> to vector<1x512xf32>
    %265 = vector.broadcast %264 : vector<1x512xf32> to vector<8x512xf32>
    %266 = arith.mulf %262, %265 : vector<8x512xf32>
    %c0_147 = arith.constant 0 : index
    %c0_148 = arith.constant 0 : index
    %c0_149 = arith.constant 0 : index
    %267 = vector.load %arg7[%c0_147, %c0_148, %c0_149] : memref<9x8x8xf32, #tpu.memory_space<vmem>>, vector<1x8x8xf32>
    %268 = vector.shape_cast %267 : vector<1x8x8xf32> to vector<8x8xf32>
    %cst_150 = arith.constant dense<0.000000e+00> : vector<8x512xf32>
    %269 = tpu.matmul %268, %266, %cst_150 {dimension_numbers = #tpu.dot_dimension_numbers<[1], [0], [0], [1], [0, 0, 1, 1], [], []>} : vector<8x8xf32>, vector<8x512xf32>, vector<8x512xf32> -> vector<8x512xf32>
    %c16_i32_151 = arith.constant 16 : i32
    %270 = tpu.dynamic_rotate %261 by %c16_i32_151 dim 1 : vector<8x512xf32>, i32 -> vector<8x512xf32>
    %271 = vector.extract_strided_slice %2 {offsets = [1, 0, 0], sizes = [1, 1, 512], strides = [1, 1, 1]} : vector<9x1x512xf32> to vector<1x1x512xf32>
    %272 = vector.shape_cast %271 : vector<1x1x512xf32> to vector<1x512xf32>
    %273 = vector.broadcast %272 : vector<1x512xf32> to vector<8x512xf32>
    %274 = arith.mulf %270, %273 : vector<8x512xf32>
    %c1_152 = arith.constant 1 : index
    %c0_153 = arith.constant 0 : index
    %c0_154 = arith.constant 0 : index
    %275 = vector.load %arg7[%c1_152, %c0_153, %c0_154] : memref<9x8x8xf32, #tpu.memory_space<vmem>>, vector<1x8x8xf32>
    %276 = vector.shape_cast %275 : vector<1x8x8xf32> to vector<8x8xf32>
    %cst_155 = arith.constant dense<0.000000e+00> : vector<8x512xf32>
    %277 = tpu.matmul %276, %274, %cst_155 {dimension_numbers = #tpu.dot_dimension_numbers<[1], [0], [0], [1], [0, 0, 1, 1], [], []>} : vector<8x8xf32>, vector<8x512xf32>, vector<8x512xf32> -> vector<8x512xf32>
    %278 = arith.addf %269, %277 : vector<8x512xf32>
    %c15_i32_156 = arith.constant 15 : i32
    %279 = tpu.dynamic_rotate %261 by %c15_i32_156 dim 1 : vector<8x512xf32>, i32 -> vector<8x512xf32>
    %280 = vector.extract_strided_slice %2 {offsets = [2, 0, 0], sizes = [1, 1, 512], strides = [1, 1, 1]} : vector<9x1x512xf32> to vector<1x1x512xf32>
    %281 = vector.shape_cast %280 : vector<1x1x512xf32> to vector<1x512xf32>
    %282 = vector.broadcast %281 : vector<1x512xf32> to vector<8x512xf32>
    %283 = arith.mulf %279, %282 : vector<8x512xf32>
    %c2_157 = arith.constant 2 : index
    %c0_158 = arith.constant 0 : index
    %c0_159 = arith.constant 0 : index
    %284 = vector.load %arg7[%c2_157, %c0_158, %c0_159] : memref<9x8x8xf32, #tpu.memory_space<vmem>>, vector<1x8x8xf32>
    %285 = vector.shape_cast %284 : vector<1x8x8xf32> to vector<8x8xf32>
    %cst_160 = arith.constant dense<0.000000e+00> : vector<8x512xf32>
    %286 = tpu.matmul %285, %283, %cst_160 {dimension_numbers = #tpu.dot_dimension_numbers<[1], [0], [0], [1], [0, 0, 1, 1], [], []>} : vector<8x8xf32>, vector<8x512xf32>, vector<8x512xf32> -> vector<8x512xf32>
    %287 = arith.addf %278, %286 : vector<8x512xf32>
    %c1_i32_161 = arith.constant 1 : i32
    %288 = tpu.dynamic_rotate %261 by %c1_i32_161 dim 1 : vector<8x512xf32>, i32 -> vector<8x512xf32>
    %289 = vector.extract_strided_slice %2 {offsets = [3, 0, 0], sizes = [1, 1, 512], strides = [1, 1, 1]} : vector<9x1x512xf32> to vector<1x1x512xf32>
    %290 = vector.shape_cast %289 : vector<1x1x512xf32> to vector<1x512xf32>
    %291 = vector.broadcast %290 : vector<1x512xf32> to vector<8x512xf32>
    %292 = arith.mulf %288, %291 : vector<8x512xf32>
    %c3_162 = arith.constant 3 : index
    %c0_163 = arith.constant 0 : index
    %c0_164 = arith.constant 0 : index
    %293 = vector.load %arg7[%c3_162, %c0_163, %c0_164] : memref<9x8x8xf32, #tpu.memory_space<vmem>>, vector<1x8x8xf32>
    %294 = vector.shape_cast %293 : vector<1x8x8xf32> to vector<8x8xf32>
    %cst_165 = arith.constant dense<0.000000e+00> : vector<8x512xf32>
    %295 = tpu.matmul %294, %292, %cst_165 {dimension_numbers = #tpu.dot_dimension_numbers<[1], [0], [0], [1], [0, 0, 1, 1], [], []>} : vector<8x8xf32>, vector<8x512xf32>, vector<8x512xf32> -> vector<8x512xf32>
    %296 = arith.addf %287, %295 : vector<8x512xf32>
    %c4_166 = arith.constant 4 : index
    %c0_167 = arith.constant 0 : index
    %c0_168 = arith.constant 0 : index
    %297 = vector.load %arg7[%c4_166, %c0_167, %c0_168] : memref<9x8x8xf32, #tpu.memory_space<vmem>>, vector<1x8x8xf32>
    %298 = vector.shape_cast %297 : vector<1x8x8xf32> to vector<8x8xf32>
    %cst_169 = arith.constant dense<0.000000e+00> : vector<8x512xf32>
    %299 = tpu.matmul %298, %261, %cst_169 {dimension_numbers = #tpu.dot_dimension_numbers<[1], [0], [0], [1], [0, 0, 1, 1], [], []>} : vector<8x8xf32>, vector<8x512xf32>, vector<8x512xf32> -> vector<8x512xf32>
    %300 = arith.addf %296, %299 : vector<8x512xf32>
    %c511_i32_170 = arith.constant 511 : i32
    %301 = tpu.dynamic_rotate %261 by %c511_i32_170 dim 1 : vector<8x512xf32>, i32 -> vector<8x512xf32>
    %302 = vector.extract_strided_slice %2 {offsets = [5, 0, 0], sizes = [1, 1, 512], strides = [1, 1, 1]} : vector<9x1x512xf32> to vector<1x1x512xf32>
    %303 = vector.shape_cast %302 : vector<1x1x512xf32> to vector<1x512xf32>
    %304 = vector.broadcast %303 : vector<1x512xf32> to vector<8x512xf32>
    %305 = arith.mulf %301, %304 : vector<8x512xf32>
    %c5_171 = arith.constant 5 : index
    %c0_172 = arith.constant 0 : index
    %c0_173 = arith.constant 0 : index
    %306 = vector.load %arg7[%c5_171, %c0_172, %c0_173] : memref<9x8x8xf32, #tpu.memory_space<vmem>>, vector<1x8x8xf32>
    %307 = vector.shape_cast %306 : vector<1x8x8xf32> to vector<8x8xf32>
    %cst_174 = arith.constant dense<0.000000e+00> : vector<8x512xf32>
    %308 = tpu.matmul %307, %305, %cst_174 {dimension_numbers = #tpu.dot_dimension_numbers<[1], [0], [0], [1], [0, 0, 1, 1], [], []>} : vector<8x8xf32>, vector<8x512xf32>, vector<8x512xf32> -> vector<8x512xf32>
    %309 = arith.addf %300, %308 : vector<8x512xf32>
    %c497_i32_175 = arith.constant 497 : i32
    %310 = tpu.dynamic_rotate %261 by %c497_i32_175 dim 1 : vector<8x512xf32>, i32 -> vector<8x512xf32>
    %311 = vector.extract_strided_slice %2 {offsets = [6, 0, 0], sizes = [1, 1, 512], strides = [1, 1, 1]} : vector<9x1x512xf32> to vector<1x1x512xf32>
    %312 = vector.shape_cast %311 : vector<1x1x512xf32> to vector<1x512xf32>
    %313 = vector.broadcast %312 : vector<1x512xf32> to vector<8x512xf32>
    %314 = arith.mulf %310, %313 : vector<8x512xf32>
    %c6_176 = arith.constant 6 : index
    %c0_177 = arith.constant 0 : index
    %c0_178 = arith.constant 0 : index
    %315 = vector.load %arg7[%c6_176, %c0_177, %c0_178] : memref<9x8x8xf32, #tpu.memory_space<vmem>>, vector<1x8x8xf32>
    %316 = vector.shape_cast %315 : vector<1x8x8xf32> to vector<8x8xf32>
    %cst_179 = arith.constant dense<0.000000e+00> : vector<8x512xf32>
    %317 = tpu.matmul %316, %314, %cst_179 {dimension_numbers = #tpu.dot_dimension_numbers<[1], [0], [0], [1], [0, 0, 1, 1], [], []>} : vector<8x8xf32>, vector<8x512xf32>, vector<8x512xf32> -> vector<8x512xf32>
    %318 = arith.addf %309, %317 : vector<8x512xf32>
    %c496_i32_180 = arith.constant 496 : i32
    %319 = tpu.dynamic_rotate %261 by %c496_i32_180 dim 1 : vector<8x512xf32>, i32 -> vector<8x512xf32>
    %320 = vector.extract_strided_slice %2 {offsets = [7, 0, 0], sizes = [1, 1, 512], strides = [1, 1, 1]} : vector<9x1x512xf32> to vector<1x1x512xf32>
    %321 = vector.shape_cast %320 : vector<1x1x512xf32> to vector<1x512xf32>
    %322 = vector.broadcast %321 : vector<1x512xf32> to vector<8x512xf32>
    %323 = arith.mulf %319, %322 : vector<8x512xf32>
    %c7_181 = arith.constant 7 : index
    %c0_182 = arith.constant 0 : index
    %c0_183 = arith.constant 0 : index
    %324 = vector.load %arg7[%c7_181, %c0_182, %c0_183] : memref<9x8x8xf32, #tpu.memory_space<vmem>>, vector<1x8x8xf32>
    %325 = vector.shape_cast %324 : vector<1x8x8xf32> to vector<8x8xf32>
    %cst_184 = arith.constant dense<0.000000e+00> : vector<8x512xf32>
    %326 = tpu.matmul %325, %323, %cst_184 {dimension_numbers = #tpu.dot_dimension_numbers<[1], [0], [0], [1], [0, 0, 1, 1], [], []>} : vector<8x8xf32>, vector<8x512xf32>, vector<8x512xf32> -> vector<8x512xf32>
    %327 = arith.addf %318, %326 : vector<8x512xf32>
    %c495_i32_185 = arith.constant 495 : i32
    %328 = tpu.dynamic_rotate %261 by %c495_i32_185 dim 1 : vector<8x512xf32>, i32 -> vector<8x512xf32>
    %329 = vector.extract_strided_slice %2 {offsets = [8, 0, 0], sizes = [1, 1, 512], strides = [1, 1, 1]} : vector<9x1x512xf32> to vector<1x1x512xf32>
    %330 = vector.shape_cast %329 : vector<1x1x512xf32> to vector<1x512xf32>
    %331 = vector.broadcast %330 : vector<1x512xf32> to vector<8x512xf32>
    %332 = arith.mulf %328, %331 : vector<8x512xf32>
    %c8_186 = arith.constant 8 : index
    %c0_187 = arith.constant 0 : index
    %c0_188 = arith.constant 0 : index
    %333 = vector.load %arg7[%c8_186, %c0_187, %c0_188] : memref<9x8x8xf32, #tpu.memory_space<vmem>>, vector<1x8x8xf32>
    %334 = vector.shape_cast %333 : vector<1x8x8xf32> to vector<8x8xf32>
    %cst_189 = arith.constant dense<0.000000e+00> : vector<8x512xf32>
    %335 = tpu.matmul %334, %332, %cst_189 {dimension_numbers = #tpu.dot_dimension_numbers<[1], [0], [0], [1], [0, 0, 1, 1], [], []>} : vector<8x8xf32>, vector<8x512xf32>, vector<8x512xf32> -> vector<8x512xf32>
    %336 = arith.addf %327, %335 : vector<8x512xf32>
    %337 = vector.broadcast %10 : vector<8x1xf32> to vector<8x512xf32>
    %338 = arith.addf %336, %337 : vector<8x512xf32>
    %cst_190 = arith.constant 0.000000e+00 : f32
    %339 = vector.broadcast %cst_190 : f32 to vector<8x512xf32>
    %340 = arith.maximumf %338, %339 : vector<8x512xf32>
    %c0_191 = arith.constant 0 : index
    %c0_192 = arith.constant 0 : index
    %341 = vector.load %arg8[%c0_191, %c0_192] : memref<8x8xf32, #tpu.memory_space<vmem>>, vector<8x8xf32>
    %cst_193 = arith.constant dense<0.000000e+00> : vector<8x512xf32>
    %342 = tpu.matmul %341, %261, %cst_193 {dimension_numbers = #tpu.dot_dimension_numbers<[1], [0], [0], [1], [0, 0, 1, 1], [], []>} : vector<8x8xf32>, vector<8x512xf32>, vector<8x512xf32> -> vector<8x512xf32>
    %343 = vector.broadcast %12 : vector<8x1xf32> to vector<8x512xf32>
    %344 = arith.addf %342, %343 : vector<8x512xf32>
    %345 = arith.addf %340, %344 : vector<8x512xf32>
    %cst_194 = arith.constant 0.000000e+00 : f32
    %346 = vector.broadcast %cst_194 : f32 to vector<8x512xf32>
    %347 = arith.maximumf %345, %346 : vector<8x512xf32>
    %c17_i32_195 = arith.constant 17 : i32
    %348 = tpu.dynamic_rotate %347 by %c17_i32_195 dim 1 : vector<8x512xf32>, i32 -> vector<8x512xf32>
    %349 = vector.extract_strided_slice %2 {offsets = [0, 0, 0], sizes = [1, 1, 512], strides = [1, 1, 1]} : vector<9x1x512xf32> to vector<1x1x512xf32>
    %350 = vector.shape_cast %349 : vector<1x1x512xf32> to vector<1x512xf32>
    %351 = vector.broadcast %350 : vector<1x512xf32> to vector<8x512xf32>
    %352 = arith.mulf %348, %351 : vector<8x512xf32>
    %c0_196 = arith.constant 0 : index
    %c0_197 = arith.constant 0 : index
    %c0_198 = arith.constant 0 : index
    %353 = vector.load %arg7[%c0_196, %c0_197, %c0_198] : memref<9x8x8xf32, #tpu.memory_space<vmem>>, vector<1x8x8xf32>
    %354 = vector.shape_cast %353 : vector<1x8x8xf32> to vector<8x8xf32>
    %cst_199 = arith.constant dense<0.000000e+00> : vector<8x512xf32>
    %355 = tpu.matmul %354, %352, %cst_199 {dimension_numbers = #tpu.dot_dimension_numbers<[1], [0], [0], [1], [0, 0, 1, 1], [], []>} : vector<8x8xf32>, vector<8x512xf32>, vector<8x512xf32> -> vector<8x512xf32>
    %c16_i32_200 = arith.constant 16 : i32
    %356 = tpu.dynamic_rotate %347 by %c16_i32_200 dim 1 : vector<8x512xf32>, i32 -> vector<8x512xf32>
    %357 = vector.extract_strided_slice %2 {offsets = [1, 0, 0], sizes = [1, 1, 512], strides = [1, 1, 1]} : vector<9x1x512xf32> to vector<1x1x512xf32>
    %358 = vector.shape_cast %357 : vector<1x1x512xf32> to vector<1x512xf32>
    %359 = vector.broadcast %358 : vector<1x512xf32> to vector<8x512xf32>
    %360 = arith.mulf %356, %359 : vector<8x512xf32>
    %c1_201 = arith.constant 1 : index
    %c0_202 = arith.constant 0 : index
    %c0_203 = arith.constant 0 : index
    %361 = vector.load %arg7[%c1_201, %c0_202, %c0_203] : memref<9x8x8xf32, #tpu.memory_space<vmem>>, vector<1x8x8xf32>
    %362 = vector.shape_cast %361 : vector<1x8x8xf32> to vector<8x8xf32>
    %cst_204 = arith.constant dense<0.000000e+00> : vector<8x512xf32>
    %363 = tpu.matmul %362, %360, %cst_204 {dimension_numbers = #tpu.dot_dimension_numbers<[1], [0], [0], [1], [0, 0, 1, 1], [], []>} : vector<8x8xf32>, vector<8x512xf32>, vector<8x512xf32> -> vector<8x512xf32>
    %364 = arith.addf %355, %363 : vector<8x512xf32>
    %c15_i32_205 = arith.constant 15 : i32
    %365 = tpu.dynamic_rotate %347 by %c15_i32_205 dim 1 : vector<8x512xf32>, i32 -> vector<8x512xf32>
    %366 = vector.extract_strided_slice %2 {offsets = [2, 0, 0], sizes = [1, 1, 512], strides = [1, 1, 1]} : vector<9x1x512xf32> to vector<1x1x512xf32>
    %367 = vector.shape_cast %366 : vector<1x1x512xf32> to vector<1x512xf32>
    %368 = vector.broadcast %367 : vector<1x512xf32> to vector<8x512xf32>
    %369 = arith.mulf %365, %368 : vector<8x512xf32>
    %c2_206 = arith.constant 2 : index
    %c0_207 = arith.constant 0 : index
    %c0_208 = arith.constant 0 : index
    %370 = vector.load %arg7[%c2_206, %c0_207, %c0_208] : memref<9x8x8xf32, #tpu.memory_space<vmem>>, vector<1x8x8xf32>
    %371 = vector.shape_cast %370 : vector<1x8x8xf32> to vector<8x8xf32>
    %cst_209 = arith.constant dense<0.000000e+00> : vector<8x512xf32>
    %372 = tpu.matmul %371, %369, %cst_209 {dimension_numbers = #tpu.dot_dimension_numbers<[1], [0], [0], [1], [0, 0, 1, 1], [], []>} : vector<8x8xf32>, vector<8x512xf32>, vector<8x512xf32> -> vector<8x512xf32>
    %373 = arith.addf %364, %372 : vector<8x512xf32>
    %c1_i32_210 = arith.constant 1 : i32
    %374 = tpu.dynamic_rotate %347 by %c1_i32_210 dim 1 : vector<8x512xf32>, i32 -> vector<8x512xf32>
    %375 = vector.extract_strided_slice %2 {offsets = [3, 0, 0], sizes = [1, 1, 512], strides = [1, 1, 1]} : vector<9x1x512xf32> to vector<1x1x512xf32>
    %376 = vector.shape_cast %375 : vector<1x1x512xf32> to vector<1x512xf32>
    %377 = vector.broadcast %376 : vector<1x512xf32> to vector<8x512xf32>
    %378 = arith.mulf %374, %377 : vector<8x512xf32>
    %c3_211 = arith.constant 3 : index
    %c0_212 = arith.constant 0 : index
    %c0_213 = arith.constant 0 : index
    %379 = vector.load %arg7[%c3_211, %c0_212, %c0_213] : memref<9x8x8xf32, #tpu.memory_space<vmem>>, vector<1x8x8xf32>
    %380 = vector.shape_cast %379 : vector<1x8x8xf32> to vector<8x8xf32>
    %cst_214 = arith.constant dense<0.000000e+00> : vector<8x512xf32>
    %381 = tpu.matmul %380, %378, %cst_214 {dimension_numbers = #tpu.dot_dimension_numbers<[1], [0], [0], [1], [0, 0, 1, 1], [], []>} : vector<8x8xf32>, vector<8x512xf32>, vector<8x512xf32> -> vector<8x512xf32>
    %382 = arith.addf %373, %381 : vector<8x512xf32>
    %c4_215 = arith.constant 4 : index
    %c0_216 = arith.constant 0 : index
    %c0_217 = arith.constant 0 : index
    %383 = vector.load %arg7[%c4_215, %c0_216, %c0_217] : memref<9x8x8xf32, #tpu.memory_space<vmem>>, vector<1x8x8xf32>
    %384 = vector.shape_cast %383 : vector<1x8x8xf32> to vector<8x8xf32>
    %cst_218 = arith.constant dense<0.000000e+00> : vector<8x512xf32>
    %385 = tpu.matmul %384, %347, %cst_218 {dimension_numbers = #tpu.dot_dimension_numbers<[1], [0], [0], [1], [0, 0, 1, 1], [], []>} : vector<8x8xf32>, vector<8x512xf32>, vector<8x512xf32> -> vector<8x512xf32>
    %386 = arith.addf %382, %385 : vector<8x512xf32>
    %c511_i32_219 = arith.constant 511 : i32
    %387 = tpu.dynamic_rotate %347 by %c511_i32_219 dim 1 : vector<8x512xf32>, i32 -> vector<8x512xf32>
    %388 = vector.extract_strided_slice %2 {offsets = [5, 0, 0], sizes = [1, 1, 512], strides = [1, 1, 1]} : vector<9x1x512xf32> to vector<1x1x512xf32>
    %389 = vector.shape_cast %388 : vector<1x1x512xf32> to vector<1x512xf32>
    %390 = vector.broadcast %389 : vector<1x512xf32> to vector<8x512xf32>
    %391 = arith.mulf %387, %390 : vector<8x512xf32>
    %c5_220 = arith.constant 5 : index
    %c0_221 = arith.constant 0 : index
    %c0_222 = arith.constant 0 : index
    %392 = vector.load %arg7[%c5_220, %c0_221, %c0_222] : memref<9x8x8xf32, #tpu.memory_space<vmem>>, vector<1x8x8xf32>
    %393 = vector.shape_cast %392 : vector<1x8x8xf32> to vector<8x8xf32>
    %cst_223 = arith.constant dense<0.000000e+00> : vector<8x512xf32>
    %394 = tpu.matmul %393, %391, %cst_223 {dimension_numbers = #tpu.dot_dimension_numbers<[1], [0], [0], [1], [0, 0, 1, 1], [], []>} : vector<8x8xf32>, vector<8x512xf32>, vector<8x512xf32> -> vector<8x512xf32>
    %395 = arith.addf %386, %394 : vector<8x512xf32>
    %c497_i32_224 = arith.constant 497 : i32
    %396 = tpu.dynamic_rotate %347 by %c497_i32_224 dim 1 : vector<8x512xf32>, i32 -> vector<8x512xf32>
    %397 = vector.extract_strided_slice %2 {offsets = [6, 0, 0], sizes = [1, 1, 512], strides = [1, 1, 1]} : vector<9x1x512xf32> to vector<1x1x512xf32>
    %398 = vector.shape_cast %397 : vector<1x1x512xf32> to vector<1x512xf32>
    %399 = vector.broadcast %398 : vector<1x512xf32> to vector<8x512xf32>
    %400 = arith.mulf %396, %399 : vector<8x512xf32>
    %c6_225 = arith.constant 6 : index
    %c0_226 = arith.constant 0 : index
    %c0_227 = arith.constant 0 : index
    %401 = vector.load %arg7[%c6_225, %c0_226, %c0_227] : memref<9x8x8xf32, #tpu.memory_space<vmem>>, vector<1x8x8xf32>
    %402 = vector.shape_cast %401 : vector<1x8x8xf32> to vector<8x8xf32>
    %cst_228 = arith.constant dense<0.000000e+00> : vector<8x512xf32>
    %403 = tpu.matmul %402, %400, %cst_228 {dimension_numbers = #tpu.dot_dimension_numbers<[1], [0], [0], [1], [0, 0, 1, 1], [], []>} : vector<8x8xf32>, vector<8x512xf32>, vector<8x512xf32> -> vector<8x512xf32>
    %404 = arith.addf %395, %403 : vector<8x512xf32>
    %c496_i32_229 = arith.constant 496 : i32
    %405 = tpu.dynamic_rotate %347 by %c496_i32_229 dim 1 : vector<8x512xf32>, i32 -> vector<8x512xf32>
    %406 = vector.extract_strided_slice %2 {offsets = [7, 0, 0], sizes = [1, 1, 512], strides = [1, 1, 1]} : vector<9x1x512xf32> to vector<1x1x512xf32>
    %407 = vector.shape_cast %406 : vector<1x1x512xf32> to vector<1x512xf32>
    %408 = vector.broadcast %407 : vector<1x512xf32> to vector<8x512xf32>
    %409 = arith.mulf %405, %408 : vector<8x512xf32>
    %c7_230 = arith.constant 7 : index
    %c0_231 = arith.constant 0 : index
    %c0_232 = arith.constant 0 : index
    %410 = vector.load %arg7[%c7_230, %c0_231, %c0_232] : memref<9x8x8xf32, #tpu.memory_space<vmem>>, vector<1x8x8xf32>
    %411 = vector.shape_cast %410 : vector<1x8x8xf32> to vector<8x8xf32>
    %cst_233 = arith.constant dense<0.000000e+00> : vector<8x512xf32>
    %412 = tpu.matmul %411, %409, %cst_233 {dimension_numbers = #tpu.dot_dimension_numbers<[1], [0], [0], [1], [0, 0, 1, 1], [], []>} : vector<8x8xf32>, vector<8x512xf32>, vector<8x512xf32> -> vector<8x512xf32>
    %413 = arith.addf %404, %412 : vector<8x512xf32>
    %c495_i32_234 = arith.constant 495 : i32
    %414 = tpu.dynamic_rotate %347 by %c495_i32_234 dim 1 : vector<8x512xf32>, i32 -> vector<8x512xf32>
    %415 = vector.extract_strided_slice %2 {offsets = [8, 0, 0], sizes = [1, 1, 512], strides = [1, 1, 1]} : vector<9x1x512xf32> to vector<1x1x512xf32>
    %416 = vector.shape_cast %415 : vector<1x1x512xf32> to vector<1x512xf32>
    %417 = vector.broadcast %416 : vector<1x512xf32> to vector<8x512xf32>
    %418 = arith.mulf %414, %417 : vector<8x512xf32>
    %c8_235 = arith.constant 8 : index
    %c0_236 = arith.constant 0 : index
    %c0_237 = arith.constant 0 : index
    %419 = vector.load %arg7[%c8_235, %c0_236, %c0_237] : memref<9x8x8xf32, #tpu.memory_space<vmem>>, vector<1x8x8xf32>
    %420 = vector.shape_cast %419 : vector<1x8x8xf32> to vector<8x8xf32>
    %cst_238 = arith.constant dense<0.000000e+00> : vector<8x512xf32>
    %421 = tpu.matmul %420, %418, %cst_238 {dimension_numbers = #tpu.dot_dimension_numbers<[1], [0], [0], [1], [0, 0, 1, 1], [], []>} : vector<8x8xf32>, vector<8x512xf32>, vector<8x512xf32> -> vector<8x512xf32>
    %422 = arith.addf %413, %421 : vector<8x512xf32>
    %423 = vector.broadcast %10 : vector<8x1xf32> to vector<8x512xf32>
    %424 = arith.addf %422, %423 : vector<8x512xf32>
    %cst_239 = arith.constant 0.000000e+00 : f32
    %425 = vector.broadcast %cst_239 : f32 to vector<8x512xf32>
    %426 = arith.maximumf %424, %425 : vector<8x512xf32>
    %427 = arith.addf %426, %344 : vector<8x512xf32>
    %cst_240 = arith.constant 0.000000e+00 : f32
    %428 = vector.broadcast %cst_240 : f32 to vector<8x512xf32>
    %429 = arith.maximumf %427, %428 : vector<8x512xf32>
    %c17_i32_241 = arith.constant 17 : i32
    %430 = tpu.dynamic_rotate %429 by %c17_i32_241 dim 1 : vector<8x512xf32>, i32 -> vector<8x512xf32>
    %431 = vector.extract_strided_slice %2 {offsets = [0, 0, 0], sizes = [1, 1, 512], strides = [1, 1, 1]} : vector<9x1x512xf32> to vector<1x1x512xf32>
    %432 = vector.shape_cast %431 : vector<1x1x512xf32> to vector<1x512xf32>
    %433 = vector.broadcast %432 : vector<1x512xf32> to vector<8x512xf32>
    %434 = arith.mulf %430, %433 : vector<8x512xf32>
    %c0_242 = arith.constant 0 : index
    %c0_243 = arith.constant 0 : index
    %c0_244 = arith.constant 0 : index
    %435 = vector.load %arg7[%c0_242, %c0_243, %c0_244] : memref<9x8x8xf32, #tpu.memory_space<vmem>>, vector<1x8x8xf32>
    %436 = vector.shape_cast %435 : vector<1x8x8xf32> to vector<8x8xf32>
    %cst_245 = arith.constant dense<0.000000e+00> : vector<8x512xf32>
    %437 = tpu.matmul %436, %434, %cst_245 {dimension_numbers = #tpu.dot_dimension_numbers<[1], [0], [0], [1], [0, 0, 1, 1], [], []>} : vector<8x8xf32>, vector<8x512xf32>, vector<8x512xf32> -> vector<8x512xf32>
    %c16_i32_246 = arith.constant 16 : i32
    %438 = tpu.dynamic_rotate %429 by %c16_i32_246 dim 1 : vector<8x512xf32>, i32 -> vector<8x512xf32>
    %439 = vector.extract_strided_slice %2 {offsets = [1, 0, 0], sizes = [1, 1, 512], strides = [1, 1, 1]} : vector<9x1x512xf32> to vector<1x1x512xf32>
    %440 = vector.shape_cast %439 : vector<1x1x512xf32> to vector<1x512xf32>
    %441 = vector.broadcast %440 : vector<1x512xf32> to vector<8x512xf32>
    %442 = arith.mulf %438, %441 : vector<8x512xf32>
    %c1_247 = arith.constant 1 : index
    %c0_248 = arith.constant 0 : index
    %c0_249 = arith.constant 0 : index
    %443 = vector.load %arg7[%c1_247, %c0_248, %c0_249] : memref<9x8x8xf32, #tpu.memory_space<vmem>>, vector<1x8x8xf32>
    %444 = vector.shape_cast %443 : vector<1x8x8xf32> to vector<8x8xf32>
    %cst_250 = arith.constant dense<0.000000e+00> : vector<8x512xf32>
    %445 = tpu.matmul %444, %442, %cst_250 {dimension_numbers = #tpu.dot_dimension_numbers<[1], [0], [0], [1], [0, 0, 1, 1], [], []>} : vector<8x8xf32>, vector<8x512xf32>, vector<8x512xf32> -> vector<8x512xf32>
    %446 = arith.addf %437, %445 : vector<8x512xf32>
    %c15_i32_251 = arith.constant 15 : i32
    %447 = tpu.dynamic_rotate %429 by %c15_i32_251 dim 1 : vector<8x512xf32>, i32 -> vector<8x512xf32>
    %448 = vector.extract_strided_slice %2 {offsets = [2, 0, 0], sizes = [1, 1, 512], strides = [1, 1, 1]} : vector<9x1x512xf32> to vector<1x1x512xf32>
    %449 = vector.shape_cast %448 : vector<1x1x512xf32> to vector<1x512xf32>
    %450 = vector.broadcast %449 : vector<1x512xf32> to vector<8x512xf32>
    %451 = arith.mulf %447, %450 : vector<8x512xf32>
    %c2_252 = arith.constant 2 : index
    %c0_253 = arith.constant 0 : index
    %c0_254 = arith.constant 0 : index
    %452 = vector.load %arg7[%c2_252, %c0_253, %c0_254] : memref<9x8x8xf32, #tpu.memory_space<vmem>>, vector<1x8x8xf32>
    %453 = vector.shape_cast %452 : vector<1x8x8xf32> to vector<8x8xf32>
    %cst_255 = arith.constant dense<0.000000e+00> : vector<8x512xf32>
    %454 = tpu.matmul %453, %451, %cst_255 {dimension_numbers = #tpu.dot_dimension_numbers<[1], [0], [0], [1], [0, 0, 1, 1], [], []>} : vector<8x8xf32>, vector<8x512xf32>, vector<8x512xf32> -> vector<8x512xf32>
    %455 = arith.addf %446, %454 : vector<8x512xf32>
    %c1_i32_256 = arith.constant 1 : i32
    %456 = tpu.dynamic_rotate %429 by %c1_i32_256 dim 1 : vector<8x512xf32>, i32 -> vector<8x512xf32>
    %457 = vector.extract_strided_slice %2 {offsets = [3, 0, 0], sizes = [1, 1, 512], strides = [1, 1, 1]} : vector<9x1x512xf32> to vector<1x1x512xf32>
    %458 = vector.shape_cast %457 : vector<1x1x512xf32> to vector<1x512xf32>
    %459 = vector.broadcast %458 : vector<1x512xf32> to vector<8x512xf32>
    %460 = arith.mulf %456, %459 : vector<8x512xf32>
    %c3_257 = arith.constant 3 : index
    %c0_258 = arith.constant 0 : index
    %c0_259 = arith.constant 0 : index
    %461 = vector.load %arg7[%c3_257, %c0_258, %c0_259] : memref<9x8x8xf32, #tpu.memory_space<vmem>>, vector<1x8x8xf32>
    %462 = vector.shape_cast %461 : vector<1x8x8xf32> to vector<8x8xf32>
    %cst_260 = arith.constant dense<0.000000e+00> : vector<8x512xf32>
    %463 = tpu.matmul %462, %460, %cst_260 {dimension_numbers = #tpu.dot_dimension_numbers<[1], [0], [0], [1], [0, 0, 1, 1], [], []>} : vector<8x8xf32>, vector<8x512xf32>, vector<8x512xf32> -> vector<8x512xf32>
    %464 = arith.addf %455, %463 : vector<8x512xf32>
    %c4_261 = arith.constant 4 : index
    %c0_262 = arith.constant 0 : index
    %c0_263 = arith.constant 0 : index
    %465 = vector.load %arg7[%c4_261, %c0_262, %c0_263] : memref<9x8x8xf32, #tpu.memory_space<vmem>>, vector<1x8x8xf32>
    %466 = vector.shape_cast %465 : vector<1x8x8xf32> to vector<8x8xf32>
    %cst_264 = arith.constant dense<0.000000e+00> : vector<8x512xf32>
    %467 = tpu.matmul %466, %429, %cst_264 {dimension_numbers = #tpu.dot_dimension_numbers<[1], [0], [0], [1], [0, 0, 1, 1], [], []>} : vector<8x8xf32>, vector<8x512xf32>, vector<8x512xf32> -> vector<8x512xf32>
    %468 = arith.addf %464, %467 : vector<8x512xf32>
    %c511_i32_265 = arith.constant 511 : i32
    %469 = tpu.dynamic_rotate %429 by %c511_i32_265 dim 1 : vector<8x512xf32>, i32 -> vector<8x512xf32>
    %470 = vector.extract_strided_slice %2 {offsets = [5, 0, 0], sizes = [1, 1, 512], strides = [1, 1, 1]} : vector<9x1x512xf32> to vector<1x1x512xf32>
    %471 = vector.shape_cast %470 : vector<1x1x512xf32> to vector<1x512xf32>
    %472 = vector.broadcast %471 : vector<1x512xf32> to vector<8x512xf32>
    %473 = arith.mulf %469, %472 : vector<8x512xf32>
    %c5_266 = arith.constant 5 : index
    %c0_267 = arith.constant 0 : index
    %c0_268 = arith.constant 0 : index
    %474 = vector.load %arg7[%c5_266, %c0_267, %c0_268] : memref<9x8x8xf32, #tpu.memory_space<vmem>>, vector<1x8x8xf32>
    %475 = vector.shape_cast %474 : vector<1x8x8xf32> to vector<8x8xf32>
    %cst_269 = arith.constant dense<0.000000e+00> : vector<8x512xf32>
    %476 = tpu.matmul %475, %473, %cst_269 {dimension_numbers = #tpu.dot_dimension_numbers<[1], [0], [0], [1], [0, 0, 1, 1], [], []>} : vector<8x8xf32>, vector<8x512xf32>, vector<8x512xf32> -> vector<8x512xf32>
    %477 = arith.addf %468, %476 : vector<8x512xf32>
    %c497_i32_270 = arith.constant 497 : i32
    %478 = tpu.dynamic_rotate %429 by %c497_i32_270 dim 1 : vector<8x512xf32>, i32 -> vector<8x512xf32>
    %479 = vector.extract_strided_slice %2 {offsets = [6, 0, 0], sizes = [1, 1, 512], strides = [1, 1, 1]} : vector<9x1x512xf32> to vector<1x1x512xf32>
    %480 = vector.shape_cast %479 : vector<1x1x512xf32> to vector<1x512xf32>
    %481 = vector.broadcast %480 : vector<1x512xf32> to vector<8x512xf32>
    %482 = arith.mulf %478, %481 : vector<8x512xf32>
    %c6_271 = arith.constant 6 : index
    %c0_272 = arith.constant 0 : index
    %c0_273 = arith.constant 0 : index
    %483 = vector.load %arg7[%c6_271, %c0_272, %c0_273] : memref<9x8x8xf32, #tpu.memory_space<vmem>>, vector<1x8x8xf32>
    %484 = vector.shape_cast %483 : vector<1x8x8xf32> to vector<8x8xf32>
    %cst_274 = arith.constant dense<0.000000e+00> : vector<8x512xf32>
    %485 = tpu.matmul %484, %482, %cst_274 {dimension_numbers = #tpu.dot_dimension_numbers<[1], [0], [0], [1], [0, 0, 1, 1], [], []>} : vector<8x8xf32>, vector<8x512xf32>, vector<8x512xf32> -> vector<8x512xf32>
    %486 = arith.addf %477, %485 : vector<8x512xf32>
    %c496_i32_275 = arith.constant 496 : i32
    %487 = tpu.dynamic_rotate %429 by %c496_i32_275 dim 1 : vector<8x512xf32>, i32 -> vector<8x512xf32>
    %488 = vector.extract_strided_slice %2 {offsets = [7, 0, 0], sizes = [1, 1, 512], strides = [1, 1, 1]} : vector<9x1x512xf32> to vector<1x1x512xf32>
    %489 = vector.shape_cast %488 : vector<1x1x512xf32> to vector<1x512xf32>
    %490 = vector.broadcast %489 : vector<1x512xf32> to vector<8x512xf32>
    %491 = arith.mulf %487, %490 : vector<8x512xf32>
    %c7_276 = arith.constant 7 : index
    %c0_277 = arith.constant 0 : index
    %c0_278 = arith.constant 0 : index
    %492 = vector.load %arg7[%c7_276, %c0_277, %c0_278] : memref<9x8x8xf32, #tpu.memory_space<vmem>>, vector<1x8x8xf32>
    %493 = vector.shape_cast %492 : vector<1x8x8xf32> to vector<8x8xf32>
    %cst_279 = arith.constant dense<0.000000e+00> : vector<8x512xf32>
    %494 = tpu.matmul %493, %491, %cst_279 {dimension_numbers = #tpu.dot_dimension_numbers<[1], [0], [0], [1], [0, 0, 1, 1], [], []>} : vector<8x8xf32>, vector<8x512xf32>, vector<8x512xf32> -> vector<8x512xf32>
    %495 = arith.addf %486, %494 : vector<8x512xf32>
    %c495_i32_280 = arith.constant 495 : i32
    %496 = tpu.dynamic_rotate %429 by %c495_i32_280 dim 1 : vector<8x512xf32>, i32 -> vector<8x512xf32>
    %497 = vector.extract_strided_slice %2 {offsets = [8, 0, 0], sizes = [1, 1, 512], strides = [1, 1, 1]} : vector<9x1x512xf32> to vector<1x1x512xf32>
    %498 = vector.shape_cast %497 : vector<1x1x512xf32> to vector<1x512xf32>
    %499 = vector.broadcast %498 : vector<1x512xf32> to vector<8x512xf32>
    %500 = arith.mulf %496, %499 : vector<8x512xf32>
    %c8_281 = arith.constant 8 : index
    %c0_282 = arith.constant 0 : index
    %c0_283 = arith.constant 0 : index
    %501 = vector.load %arg7[%c8_281, %c0_282, %c0_283] : memref<9x8x8xf32, #tpu.memory_space<vmem>>, vector<1x8x8xf32>
    %502 = vector.shape_cast %501 : vector<1x8x8xf32> to vector<8x8xf32>
    %cst_284 = arith.constant dense<0.000000e+00> : vector<8x512xf32>
    %503 = tpu.matmul %502, %500, %cst_284 {dimension_numbers = #tpu.dot_dimension_numbers<[1], [0], [0], [1], [0, 0, 1, 1], [], []>} : vector<8x8xf32>, vector<8x512xf32>, vector<8x512xf32> -> vector<8x512xf32>
    %504 = arith.addf %495, %503 : vector<8x512xf32>
    %505 = vector.broadcast %10 : vector<8x1xf32> to vector<8x512xf32>
    %506 = arith.addf %504, %505 : vector<8x512xf32>
    %cst_285 = arith.constant 0.000000e+00 : f32
    %507 = vector.broadcast %cst_285 : f32 to vector<8x512xf32>
    %508 = arith.maximumf %506, %507 : vector<8x512xf32>
    %c0_286 = arith.constant 0 : index
    %c0_287 = arith.constant 0 : index
    %c0_288 = arith.constant 0 : index
    %509 = vector.load %arg12[%c0_286, %c0_287, %c0_288] : memref<1x8x512xf32, #tpu.memory_space<vmem>>, vector<1x8x512xf32>
    %510 = vector.shape_cast %509 : vector<1x8x512xf32> to vector<8x512xf32>
    %511 = vector.shape_cast %508 : vector<8x512xf32> to vector<1x8x512xf32>
    tpu.vector_store %arg12[%c0_286, %c0_287, %c0_288], %511 {strides = array<i32>} : memref<1x8x512xf32, #tpu.memory_space<vmem>>, vector<1x8x512xf32>,
    %c0_289 = arith.constant 0 : index
    %c0_290 = arith.constant 0 : index
    %512 = vector.load %arg9[%c0_289, %c0_290] : memref<8x8xf32, #tpu.memory_space<vmem>>, vector<8x8xf32>
    %cst_291 = arith.constant dense<0.000000e+00> : vector<8x512xf32>
    %513 = tpu.matmul %512, %1, %cst_291 {dimension_numbers = #tpu.dot_dimension_numbers<[1], [0], [0], [1], [0, 0, 1, 1], [], []>} : vector<8x8xf32>, vector<8x512xf32>, vector<8x512xf32> -> vector<8x512xf32>
    %514 = vector.broadcast %14 : vector<8x1xf32> to vector<8x512xf32>
    %515 = arith.addf %513, %514 : vector<8x512xf32>
    %516 = arith.addf %515, %508 : vector<8x512xf32>
    %cst_292 = arith.constant 0.000000e+00 : f32
    %517 = vector.broadcast %cst_292 : f32 to vector<8x512xf32>
    %518 = arith.maximumf %516, %517 : vector<8x512xf32>
    %519 = tpu.concatenate %518, %508 in 0 : vector<8x512xf32>, vector<8x512xf32> -> vector<16x512xf32>
    %c511_i32_293 = arith.constant 511 : i32
    %520 = tpu.dynamic_rotate %519 by %c511_i32_293 dim 1 : vector<16x512xf32>, i32 -> vector<16x512xf32>
    %521 = arith.maximumf %519, %520 : vector<16x512xf32>
    %c496_i32_294 = arith.constant 496 : i32
    %522 = tpu.dynamic_rotate %521 by %c496_i32_294 dim 1 : vector<16x512xf32>, i32 -> vector<16x512xf32>
    %523 = arith.maximumf %521, %522 : vector<16x512xf32>
    %c0_295 = arith.constant 0 : index
    %c0_296 = arith.constant 0 : index
    %524 = vector.load %arg3[%c0_295, %c0_296] : memref<512x128xf32, #tpu.memory_space<vmem>>, vector<512x128xf32>
    %cst_297 = arith.constant dense<0.000000e+00> : vector<16x128xf32>
    %525 = tpu.matmul %523, %524, %cst_297 {dimension_numbers = #tpu.dot_dimension_numbers<[1], [0], [0], [1], [0, 0, 1, 1], [], []>} : vector<16x512xf32>, vector<512x128xf32>, vector<16x128xf32> -> vector<16x128xf32>
    %c0_298 = arith.constant 0 : index
    %c0_299 = arith.constant 0 : index
    %c0_300 = arith.constant 0 : index
    %526 = vector.load %arg11[%c0_298, %c0_299, %c0_300] : memref<1x16x128xf32, #tpu.memory_space<vmem>>, vector<1x16x128xf32>
    %527 = vector.shape_cast %526 : vector<1x16x128xf32> to vector<16x128xf32>
    %528 = vector.shape_cast %525 : vector<16x128xf32> to vector<1x16x128xf32>
    tpu.vector_store %arg11[%c0_298, %c0_299, %c0_300], %528 {strides = array<i32>} : memref<1x16x128xf32, #tpu.memory_space<vmem>>, vector<1x16x128xf32>,
    return
  }
  func.func @transform_0(%arg0: i32) -> (i32, i32, i32) {
    %c0_i32 = arith.constant 0 : i32
    %c0_i32_0 = arith.constant 0 : i32
    %c0_i32_1 = arith.constant 0 : i32
    return %arg0, %c0_i32, %c0_i32_0 : i32, i32, i32
  }
  func.func @transform_1(%arg0: i32) -> (i32, i32, i32) {
    %c0_i32 = arith.constant 0 : i32
    %c0_i32_0 = arith.constant 0 : i32
    %c0_i32_1 = arith.constant 0 : i32
    %c0_i32_2 = arith.constant 0 : i32
    return %c0_i32, %c0_i32_0, %c0_i32_1 : i32, i32, i32
  }
  func.func @transform_2(%arg0: i32) -> (i32, i32) {
    %c0_i32 = arith.constant 0 : i32
    %c0_i32_0 = arith.constant 0 : i32
    %c0_i32_1 = arith.constant 0 : i32
    return %c0_i32, %c0_i32_0 : i32, i32
  }
  func.func @transform_3(%arg0: i32) -> (i32, i32, i32) {
    %c0_i32 = arith.constant 0 : i32
    %c0_i32_0 = arith.constant 0 : i32
    %c0_i32_1 = arith.constant 0 : i32
    %c0_i32_2 = arith.constant 0 : i32
    return %c0_i32, %c0_i32_0, %c0_i32_1 : i32, i32, i32
  }
  func.func @transform_4(%arg0: i32) -> (i32, i32) {
    %c0_i32 = arith.constant 0 : i32
    %c0_i32_0 = arith.constant 0 : i32
    %c0_i32_1 = arith.constant 0 : i32
    return %c0_i32, %c0_i32_0 : i32, i32
  }
  func.func @transform_5(%arg0: i32) -> (i32, i32, i32) {
    %c0_i32 = arith.constant 0 : i32
    %c0_i32_0 = arith.constant 0 : i32
    %c0_i32_1 = arith.constant 0 : i32
    %c0_i32_2 = arith.constant 0 : i32
    return %c0_i32, %c0_i32_0, %c0_i32_1 : i32, i32, i32
  }
  func.func @transform_6(%arg0: i32) -> (i32, i32, i32) {
    %c0_i32 = arith.constant 0 : i32
    %c0_i32_0 = arith.constant 0 : i32
    %c0_i32_1 = arith.constant 0 : i32
    %c0_i32_2 = arith.constant 0 : i32
    return %c0_i32, %c0_i32_0, %c0_i32_1 : i32, i32, i32
  }
  func.func @transform_7(%arg0: i32) -> (i32, i32) {
    %c0_i32 = arith.constant 0 : i32
    %c0_i32_0 = arith.constant 0 : i32
    %c0_i32_1 = arith.constant 0 : i32
    return %c0_i32, %c0_i32_0 : i32, i32
  }
  func.func @transform_8(%arg0: i32) -> (i32, i32) {
    %c0_i32 = arith.constant 0 : i32
    %c0_i32_0 = arith.constant 0 : i32
    %c0_i32_1 = arith.constant 0 : i32
    return %c0_i32, %c0_i32_0 : i32, i32
  }
  func.func @transform_9(%arg0: i32) -> (i32, i32, i32) {
    %c0_i32 = arith.constant 0 : i32
    %c0_i32_0 = arith.constant 0 : i32
    %c0_i32_1 = arith.constant 0 : i32
    %c0_i32_2 = arith.constant 0 : i32
    return %c0_i32, %c0_i32_0, %c0_i32_1 : i32, i32, i32
  }
  func.func @transform_10(%arg0: i32) -> (i32, i32, i32) {
    %c0_i32 = arith.constant 0 : i32
    %c0_i32_0 = arith.constant 0 : i32
    %c0_i32_1 = arith.constant 0 : i32
    return %arg0, %c0_i32, %c0_i32_0 : i32, i32, i32
  }
  func.func @transform_11(%arg0: i32) -> (i32, i32, i32) {
    %c0_i32 = arith.constant 0 : i32
    %c0_i32_0 = arith.constant 0 : i32
    %c0_i32_1 = arith.constant 0 : i32
    return %arg0, %c0_i32, %c0_i32_0 : i32, i32, i32
  }
}

</mosaic_0001>

<bundles_post_ra>
// kernel: initial_dense_block.1
= control target key start
LH: loop header
LB: loop body
LE: loop exit
PB: predicated region body
PF: predicated region fallthrough
CT: control target
= control target key end

     0   :  { %17 = vsyncpa [#allocation3], 0  ;;  %s6503_s20 = smov [#allocation2]   ;;  %s6504_s22 = smov 128   ;;  %s8501_s0 = inlined_call_operand.vmem [shape: f32[1,8,512], index: 0, kind: input, shape index: {}]   ;;  %s8502_s1 = inlined_call_operand.vmem [shape: f32[9,1,512], index: 1, kind: input, shape index: {}]   ;;  %s8503_s2 = inlined_call_operand.hbm [shape: f32[512,128], index: 2, kind: input, shape index: {}]   ;;  %s8504_s3 = inlined_call_operand.vmem [shape: f32[9,8,8], index: 3, kind: input, shape index: {}]   ;;  %s8505_s4 = inlined_call_operand.vmem [shape: f32[8,8], index: 4, kind: input, shape index: {}]   ;;  %s8506_s5 = inlined_call_operand.vmem [shape: f32[9,8,8], index: 5, kind: input, shape index: {}]   ;;  %s8507_s6 = inlined_call_operand.vmem [shape: f32[9,8,8], index: 6, kind: input, shape index: {}]   ;;  %s8508_s7 = inlined_call_operand.vmem [shape: f32[8,8], index: 7, kind: input, shape index: {}]   ;;  %s8509_s8 = inlined_call_operand.vmem [shape: f32[8,8], index: 8, kind: input, shape index: {}]   ;;  %s8510_s9 = inlined_call_operand.vmem [shape: f32[6,8,1], index: 9, kind: input, shape index: {}]   ;;  %s8511_s10 = inlined_call_operand.vmem [shape: f32[1,16,128], index: 10, kind: output, shape index: {0}]   ;;  %s8512_s11 = inlined_call_operand.vmem [shape: f32[1,8,512], index: 11, kind: output, shape index: {1}]  }
   0x1   :  { %s26_s19 = sshll.u32 %s8503_s2, 4  ;;  %s28_s21 = sshll.u32 %s6503_s20, 4  ;;  %s27_s19 = int_to_ptr.hbm [resolvable:$true] %s26_s19  ;;  %s29_s21 = int_to_ptr.vmem [resolvable:$true] %s28_s21 }
   0x2   :  { %s6505_s23 = smov 8  }
   0x3   :  { %34 = dma.hbm_to_vmem [thread:$0]  %s27_s19, 8192, %s29_s21, [#allocation3], %s6504_s22, %s6504_s22, %s6505_s23  }
   0x4   :  { %6501 = dma.done.wait [#allocation3], 8192  }
   0x5   :  { %6502 = vsyncadd [#allocation3], 4294959104  ;;  %v6581_v0 = vld [vmem:[%s8501_s0 + $0x18] sm:$0xff]  ;;  %v6586_v1 = vld [vmem:[%s8501_s0 + $0x8] sm:$0xff]  ;;  %s6506_s2 = smov 16   ;;  %s6507_s28 = smov 17   ;;  %v84_v7 = vlaneseq }
   0x6   :  { %111 = vrot.lane.b32.xlu1 %v6581_v0, %s6506_s2  ;;  %107 = vrot.lane.b32.xlu0 %v6586_v1, %s6506_s2  ;;  %v6597_v2 = vld [vmem:[%s8501_s0 + $0x10] sm:$0xff]  ;;  %v6602_v3 = vld [vmem:[%s8501_s0] sm:$0xff]  ;;  %s6508_s14 = smov 15   ;;  %s6509_s15 = smov 1   ;;  %vm133_vm2 = vcmask 64512  }
   0x7   :  { %78 = vrot.lane.b32.xlu2 %v6586_v1, %s6507_s28  ;;  %s6510_s16 = smov 127   ;;  %s6511_s17 = smov 113   ;;  %v6664_v10 = vand.u32 127, %v84_v7  ;;  %v58_v11 = vld [vmem:[%s8502_s1 + $0x4] sm:$0xf]  ;;  %v6157_v31 = vld [vmem:[%s8504_s3 + $0x8] sm:$0xff] }
   0x8   :  { %s6512_s18 = smov 112   ;;  %s6513_s19 = smov 111   ;;  %v57_v12 = vld [vmem:[%s8502_s1] sm:$0xf]  ;;  %v6676_v14 = vperm.slane %v58_v11, 0  ;;  %v6678_v15 = vperm.slane %v58_v11, 1 }
   0x9   :  { %vm113_vm0 = vcmp.lt.s32.totalorder %v6664_v10, 16  ;;  %vm86_vm1 = vcmp.lt.s32.totalorder %v6664_v10, 17  ;;  %v6680_v16 = vperm.slane %v58_v11, 2  ;;  %v6682_v17 = vperm.slane %v58_v11, 3  ;;  %v59_v30 = vld [vmem:[%s8502_s1 + $0x8] sm:$0xf] }
   0xa   :  { %v6684_v18 = vperm.slane %v57_v12, 2  ;;  %vm308_vm3 = vcmp.lt.s32.totalorder %v6664_v10, 15  ;;  %v6708_v33 = vperm.slane %v59_v30, 1  ;;  %v6712_v34 = vperm.slane %v57_v12, 0  ;;  %v104_v48 = vld [vmem:[%s8504_s3] sm:$0xff]  ;;  %v6166_v61 = vld [vmem:[%s8504_s3 + $0x10] sm:$0xff] }
   0xb   :  { %v6714_v35 = vperm.slane %v57_v12, 1  ;;  %v6716_v36 = vperm.slane %v57_v12, 3  ;;  %v6741_v49 = vperm.slane %v59_v30, 2  ;;  %v6743_v50 = vperm.slane %v59_v30, 0  ;;  %v60_v62 = vld [vmem:[%s8502_s1 + $0xc] sm:$0xf] }
   0xc   :  { %v6745_v51 = vperm.slane %v59_v30, 3  ;;  %vm423_vm4 = vcmp.lt.s32.totalorder %v6664_v10, 1  ;;  %v6771_v63 = vperm.slane %v60_v62, 2  ;;  %v6171_v12 = vld [vmem:[%s8504_s3 + $0x18] sm:$0xff]  ;;  %vm627_vm5 = vcmp.lt.s32.totalorder %v6664_v10, 127 }
   0xd   :  { %vm742_vm6 = vcmp.lt.s32.totalorder %v6664_v10, 113  ;;  %vm857_vm7 = vcmp.lt.s32.totalorder %v6664_v10, 112  ;;  %vm972_vm8 = vcmp.lt.s32.totalorder %v6664_v10, 111 }
   0xe   :  { %109 = vrot.lane.b32.xlu0 %v6597_v2, %s6506_s2  ;;  %105 = vrot.lane.b32.xlu1 %v6602_v3, %s6506_s2  ;;  %8586 = vst [vmem:[#allocation5_spill] sm:$0xff] %v6745_v51 }
   0xf   :  { %80 = vrot.lane.b32.xlu2 %v6597_v2, %s6507_s28  ;;  %8587 = vst [vmem:[#allocation6_spill] sm:$0xff] %v6771_v63 }
  0x16   :  { %82 = vrot.lane.b32.xlu0 %v6581_v0, %s6507_s28  ;;  %76 = vrot.lane.b32.xlu1 %v6602_v3, %s6507_s28 }
  0x17   :  { %302 = vrot.lane.b32.xlu2 %v6586_v1, %s6508_s14 }
  0x1e   :  { %304 = vrot.lane.b32.xlu0 %v6597_v2, %s6508_s14  ;;  %306 = vrot.lane.b32.xlu1 %v6581_v0, %s6508_s14 }
  0x1f   :  { %300 = vrot.lane.b32.xlu2 %v6602_v3, %s6508_s14 }
  0x26   :  { %417 = vrot.lane.b32.xlu0 %v6586_v1, %s6509_s15  ;;  %419 = vrot.lane.b32.xlu1 %v6597_v2, %s6509_s15 }
  0x27   :  { %421 = vrot.lane.b32.xlu2 %v6581_v0, %s6509_s15 }
  0x2e   :  { %415 = vrot.lane.b32.xlu0 %v6602_v3, %s6509_s15  ;;  %619 = vrot.lane.b32.xlu1 %v6602_v3, %s6510_s16 }
  0x2f   :  { %623 = vrot.lane.b32.xlu2 %v6597_v2, %s6510_s16 }
  0x36   :  { %625 = vrot.lane.b32.xlu0 %v6581_v0, %s6510_s16  ;;  %621 = vrot.lane.b32.xlu1 %v6586_v1, %s6510_s16 }
  0x37   :  { %734 = vrot.lane.b32.xlu2 %v6602_v3, %s6511_s17 }
  0x3e   :  { %738 = vrot.lane.b32.xlu0 %v6597_v2, %s6511_s17  ;;  %740 = vrot.lane.b32.xlu1 %v6581_v0, %s6511_s17 }
  0x3f   :  { %736 = vrot.lane.b32.xlu2 %v6586_v1, %s6511_s17 }
  0x46   :  { %849 = vrot.lane.b32.xlu0 %v6602_v3, %s6512_s18  ;;  %853 = vrot.lane.b32.xlu1 %v6597_v2, %s6512_s18 }
  0x47   :  { %855 = vrot.lane.b32.xlu2 %v6581_v0, %s6512_s18 }
  0x4e   :  { %851 = vrot.lane.b32.xlu0 %v6586_v1, %s6512_s18  ;;  %964 = vrot.lane.b32.xlu1 %v6602_v3, %s6513_s19 }
  0x4f   :  { %968 = vrot.lane.b32.xlu2 %v6597_v2, %s6513_s19 }
  0x56   :  { %970 = vrot.lane.b32.xlu0 %v6581_v0, %s6513_s19  ;;  %966 = vrot.lane.b32.xlu1 %v6586_v1, %s6513_s19 }
  0x61   :  { %v79_v4 = vpop.permute.xlu2 %78 }
  0x69   :  { %v81_v5 = vpop.permute.xlu2 %80 }
  0x6a   :  { %v88_v21 = vsel %vm86_vm1, %v79_v4, %v81_v5 }
  0x6b   :  { %v102_v32 = vmul.f32 %v6684_v18, %v88_v21 }
  0x71   :  { %v6662_v6 = vpop.permute.xlu2 %302 }
  0x78   :  { %v112_v8 = vpop.permute.xlu1 %111  ;;  %v108_v9 = vpop.permute.xlu0 %107 }
  0x79   :  { %v6674_v13 = vpop.permute.xlu2 %300 }
  0x7a   :  { %v311_v37 = vsel %vm308_vm3, %v6674_v13, %v6662_v6 }
  0x7b   :  { %v323_v44 = vmul.f32 %v6708_v33, %v311_v37 }
  0x80   :  { %v110_v19 = vpop.permute.xlu0 %109  ;;  %v106_v20 = vpop.permute.xlu1 %105 }
  0x81   :  { %v117_v22 = vsel %vm113_vm0, %v112_v8, %v106_v20  ;;  %v116_v23 = vsel %vm113_vm0, %v106_v20, %v108_v9  ;;  %v115_v24 = vsel %vm113_vm0, %v108_v9, %v110_v19  ;;  %v114_v25 = vsel %vm113_vm0, %v110_v19, %v112_v8  ;;  %v6723_v38 = vpop.permute.xlu2 %421 }
  0x82   :  { %v127_v26 = vmul.f32 %v6676_v14, %v117_v22  ;;  %v128_v27 = vmul.f32 %v6678_v15, %v116_v23  ;;  %v129_v28 = vmul.f32 %v6680_v16, %v115_v24  ;;  %v130_v29 = vmul.f32 %v6682_v17, %v114_v25 }
  0x83   :  { %v6792_v19 = vperm.slane %v60_v62, 0  ;;  %v6794_v20 = vperm.slane %v60_v62, 1 }
  0x84   :  { %152 = vmatpush.msra.mxu0 %v127_v26  ;;  %172 = vmatpush.msra.mxu1 %v128_v27  ;;  %v6176_v27 = vld [vmem:[%s8504_s3 + $0x20] sm:$0xff] }
  0x85   :  { %192 = vmatpush.msra.mxu2 %v129_v28  ;;  %212 = vmatpush.msra.mxu3 %v130_v29  ;;  %8589 = vst [vmem:[#allocation8_spill] sm:$0xff] %v6792_v19  ;;  %v61_v28 = vld [vmem:[%s8502_s1 + $0x14] sm:$0xf]  ;;  %v62_v29 = vld [vmem:[%s8502_s1 + $0x18] sm:$0xf] }
  0x86   :  { %6159 = vmatmul.msk.f32.vlgmr.msra.gmra.mxu1 %vm133_vm2, %v6157_v31  ;;  %6160 = vmatmul.msk.f32.vlgmr.msra.gmra.mxu2 %vm133_vm2, %v6157_v31  ;;  %8590 = vst [vmem:[#allocation9_spill] sm:$0xff] %v6794_v20  ;;  %v6822_v37 = vperm.slane %v61_v28, 0 }
  0x87   :  { %6161 = vmatmul.msk.f32.vlgmr.msra.gmra.mxu3 %vm133_vm2, %v6157_v31  ;;  %275 = vmatpush.msrb.mxu2 %v102_v32  ;;  %v6820_v32 = vperm.slane %v61_v28, 3 }
  0x88   :  { %v83_v39 = vpop.permute.xlu0 %82  ;;  %v77_v40 = vpop.permute.xlu1 %76  ;;  %6158 = vmatmul.msk.f32.vlgmr.msra.gmra.mxu0 %vm133_vm2, %v6157_v31  ;;  %v6818_v31 = vperm.slane %v61_v28, 2  ;;  %8593 = vst [vmem:[#allocation12_spill] sm:$0xff] %v6822_v37 }
  0x89   :  { %v90_v41 = vsel %vm86_vm1, %v83_v39, %v77_v40  ;;  %v89_v42 = vsel %vm86_vm1, %v77_v40, %v79_v4  ;;  %v87_v43 = vsel %vm86_vm1, %v81_v5, %v83_v39  ;;  %v6757_v57 = vpop.permute.xlu2 %623  ;;  %v6773_v4 = vperm.slane %v60_v62, 3  ;;  %8592 = vst [vmem:[#allocation11_spill] sm:$0xff] %v6820_v32 }
  0x8a   :  { %v100_v45 = vmul.f32 %v6712_v34, %v90_v41  ;;  %v101_v46 = vmul.f32 %v6714_v35, %v89_v42  ;;  %v103_v47 = vmul.f32 %v6716_v36, %v87_v43  ;;  %8591 = vst [vmem:[#allocation10_spill] sm:$0xff] %v6818_v31  ;;  %v6829_v41 = vperm.slane %v62_v29, 0 }
  0x8b   :  { %8588 = vst [vmem:[#allocation7_spill] sm:$0xff] %v6773_v4 }
  0x8c   :  { %235 = vmatpush.msrb.mxu0 %v100_v45  ;;  %255 = vmatpush.msrb.mxu1 %v101_v46  ;;  %8595 = vst [vmem:[#allocation14_spill] sm:$0xff] %v6829_v41 }
  0x8d   :  { %295 = vmatpush.msrb.mxu3 %v103_v47 }
  0x8e   :  { %366 = vmatpush.msra.mxu1 %v323_v44  ;;  %6164 = vmatmul.msk.f32.vlgmr.msrb.gmra.mxu2 %vm133_vm2, %v104_v48 }
  0x8f   :  { %6163 = vmatmul.msk.f32.vlgmr.msrb.gmra.mxu1 %vm133_vm2, %v104_v48  ;;  %6165 = vmatmul.msk.f32.vlgmr.msrb.gmra.mxu3 %vm133_vm2, %v104_v48 }
  0x90   :  { %v305_v52 = vpop.permute.xlu0 %304  ;;  %v307_v53 = vpop.permute.xlu1 %306  ;;  %6162 = vmatmul.msk.f32.vlgmr.msrb.gmra.mxu0 %vm133_vm2, %v104_v48 }
  0x91   :  { %v310_v54 = vsel %vm308_vm3, %v6662_v6, %v305_v52  ;;  %v309_v55 = vsel %vm308_vm3, %v305_v52, %v307_v53  ;;  %v312_v56 = vsel %vm308_vm3, %v307_v53, %v6674_v13  ;;  %v6787_v13 = vpop.permute.xlu2 %734 }
  0x92   :  { %v324_v58 = vmul.f32 %v6741_v49, %v310_v54  ;;  %v322_v59 = vmul.f32 %v6743_v50, %v312_v56  ;;  %v325_v60 = vmul.f32 %v6745_v51, %v309_v55  ;;  %v6181_v54 = vld [vmem:[%s8504_s3 + $0x28] sm:$0xff]  ;;  %v6854_v56 = vperm.slane %v62_v29, 1 }
  0x94   :  { %346 = vmatpush.msra.mxu0 %v322_v59  ;;  %386 = vmatpush.msra.mxu2 %v324_v58  ;;  %8596 = vst [vmem:[#allocation15_spill] sm:$0xff] %v6854_v56  ;;  %v6858_v58 = vperm.slane %v62_v29, 3 }
  0x95   :  { %406 = vmatpush.msra.mxu3 %v325_v60 }
  0x96   :  { %6169 = vmatmul.msk.f32.vlgmr.msra.gmra.mxu2 %vm133_vm2, %v6166_v61  ;;  %8598 = vst [vmem:[#allocation17_spill] sm:$0xff] %v6858_v58 }
  0x97   :  { %6168 = vmatmul.msk.f32.vlgmr.msra.gmra.mxu1 %vm133_vm2, %v6166_v61  ;;  %6170 = vmatmul.msk.f32.vlgmr.msra.gmra.mxu3 %vm133_vm2, %v6166_v61 }
  0x98   :  { %v418_v5 = vpop.permute.xlu0 %417  ;;  %v420_v6 = vpop.permute.xlu1 %419  ;;  %6167 = vmatmul.msk.f32.vlgmr.msra.gmra.mxu0 %vm133_vm2, %v6166_v61 }
  0x99   :  { %v424_v7 = vsel %vm423_vm4, %v420_v6, %v6723_v38  ;;  %v425_v8 = vsel %vm423_vm4, %v418_v5, %v420_v6  ;;  %v737_v30 = vpop.permute.xlu2 %736 }
  0x9a   :  { %v439_v9 = vmul.f32 %v6771_v63, %v425_v8  ;;  %v440_v11 = vmul.f32 %v6773_v4, %v424_v7  ;;  %v745_v42 = vsel %vm742_vm6, %v6787_v13, %v737_v30 }
  0x9b   :  { %v756_v55 = vmul.f32 %v6829_v41, %v745_v42 }
  0x9c   :  { %501 = vmatpush.msrb.mxu2 %v439_v9  ;;  %521 = vmatpush.msrb.mxu3 %v440_v11  ;;  %v63_v9 = vld [vmem:[%s8502_s1 + $0x1c] sm:$0xf]  ;;  %v6186_v11 = vld [vmem:[%s8504_s3 + $0x30] sm:$0xff] }
  0x9d   :  { %v6906_v42 = vperm.slane %v63_v9, 1 }
  0x9e   :  { %590 = vmatpush.msra.mxu2 %v6597_v2  ;;  %610 = vmatpush.msra.mxu3 %v6581_v0 }
  0x9f   :  { %6174 = vmatmul.msk.f32.vlgmr.msrb.gmra.mxu2 %vm133_vm2, %v6171_v12  ;;  %6175 = vmatmul.msk.f32.vlgmr.msrb.gmra.mxu3 %vm133_vm2, %v6171_v12  ;;  %8602 = vst [vmem:[#allocation21_spill] sm:$0xff] %v6906_v42 }
  0xa0   :  { %v416_v21 = vpop.permute.xlu0 %415  ;;  %v620_v22 = vpop.permute.xlu1 %619 }
  0xa1   :  { %v426_v23 = vsel %vm423_vm4, %v416_v21, %v418_v5  ;;  %v427_v24 = vsel %vm423_vm4, %v6723_v38, %v416_v21  ;;  %v6824_v38 = vperm.slane %v61_v28, 1  ;;  %v6883_v21 = vperm.slane %v63_v9, 2 }
  0xa2   :  { %v437_v25 = vmul.f32 %v6792_v19, %v427_v24  ;;  %v438_v26 = vmul.f32 %v6794_v20, %v426_v23  ;;  %v65_v23 = vld [vmem:[%s8510_s9] sm:$0xff] }
  0xa3   :  { %8594 = vst [vmem:[#allocation13_spill] sm:$0xff] %v6824_v38 }
  0xa4   :  { %461 = vmatpush.msrb.mxu0 %v437_v25  ;;  %481 = vmatpush.msrb.mxu1 %v438_v26  ;;  %8600 = vst [vmem:[#allocation19_spill] sm:$0xff] %v6883_v21  ;;  %v6514_v26 = vmov 0  }
  0xa5   :  { %6172 = vmatmul.msk.f32.vlgmr.msrb.gmra.mxu0 %vm133_vm2, %v6171_v12  ;;  %6173 = vmatmul.msk.f32.vlgmr.msrb.gmra.mxu1 %vm133_vm2, %v6171_v12  ;;  %v6881_v12 = vperm.slane %v63_v9, 3 }
  0xa6   :  { %550 = vmatpush.msra.mxu0 %v6602_v3  ;;  %570 = vmatpush.msra.mxu1 %v6586_v1 }
  0xa7   :  { %6179 = vmatmul.msk.f32.vlgmr.msra.gmra.mxu2 %vm133_vm2, %v6176_v27  ;;  %6180 = vmatmul.msk.f32.vlgmr.msra.gmra.mxu3 %vm133_vm2, %v6176_v27  ;;  %8599 = vst [vmem:[#allocation18_spill] sm:$0xff] %v6881_v12 }
  0xa8   :  { %v626_v39 = vpop.permute.xlu0 %625  ;;  %v622_v40 = vpop.permute.xlu1 %621  ;;  %6422 = vset.pattern.permute.xlu0 %v6514_v26  ;;  %6421 = vset.pattern.permute.xlu2 %v6514_v26 }
  0xa9   :  { %v628_v43 = vsel %vm627_vm5, %v6757_v57, %v626_v39  ;;  %v631_v44 = vsel %vm627_vm5, %v626_v39, %v620_v22  ;;  %v629_v45 = vsel %vm627_vm5, %v622_v40, %v6757_v57  ;;  %v630_v46 = vsel %vm627_vm5, %v620_v22, %v622_v40  ;;  %v6152_v22 = vld [vmem:[%s8510_s9 + $0x8] sm:$0xff]  ;;  %1081 = vperm.xlu2 %6421, %v65_v23   ;;  %v6191_v39 = vld [vmem:[%s8504_s3 + $0x38] sm:$0xff]  ;;  %v6196_v23 = vld [vmem:[%s8504_s3 + $0x40] sm:$0xff] }
  0xaa   :  { %v643_v47 = vmul.f32 %v6818_v31, %v628_v43  ;;  %v644_v48 = vmul.f32 %v6820_v32, %v631_v44  ;;  %v641_v52 = vmul.f32 %v6822_v37, %v630_v46  ;;  %v642_v53 = vmul.f32 %v6824_v38, %v629_v45  ;;  %1095 = vperm.xlu0 %6422, %v6152_v22  }
  0xab   :  { %v6856_v57 = vperm.slane %v62_v29, 2  ;;  %6423 = vset.pattern.permute.xlu1 %v6514_v26  ;;  %v6904_v40 = vperm.slane %v63_v9, 0 }
  0xac   :  { %665 = vmatpush.msrb.mxu0 %v641_v52  ;;  %685 = vmatpush.msrb.mxu1 %v642_v53  ;;  %v64_v52 = vld [vmem:[%s8502_s1 + $0x20] sm:$0xf] }
  0xad   :  { %705 = vmatpush.msrb.mxu2 %v643_v47  ;;  %725 = vmatpush.msrb.mxu3 %v644_v48  ;;  %8597 = vst [vmem:[#allocation16_spill] sm:$0xff] %v6856_v57  ;;  %v6922_v53 = vperm.slane %v64_v52, 3 }
  0xae   :  { %6177 = vmatmul.msk.f32.vlgmr.msra.gmra.mxu0 %vm133_vm2, %v6176_v27  ;;  %6178 = vmatmul.msk.f32.vlgmr.msra.gmra.mxu1 %vm133_vm2, %v6176_v27  ;;  %8601 = vst [vmem:[#allocation20_spill] sm:$0xff] %v6904_v40 }
  0xaf   :  { %6184 = vmatmul.msk.f32.vlgmr.msrb.gmra.mxu2 %vm133_vm2, %v6181_v54  ;;  %6185 = vmatmul.msk.f32.vlgmr.msrb.gmra.mxu3 %vm133_vm2, %v6181_v54  ;;  %8603 = vst [vmem:[#allocation22_spill] sm:$0xff] %v6922_v53 }
  0xb0   :  { %v739_v59 = vpop.permute.xlu0 %738  ;;  %v741_v60 = vpop.permute.xlu1 %740  ;;  %780 = vmatpush.msra.mxu0 %v756_v55 }
  0xb1   :  { %v744_v61 = vsel %vm742_vm6, %v737_v30, %v739_v59  ;;  %v743_v62 = vsel %vm742_vm6, %v739_v59, %v741_v60  ;;  %v746_v5 = vsel %vm742_vm6, %v741_v60, %v6787_v13  ;;  %v856_v13 = vpop.permute.xlu2 %855  ;;  %v6926_v59 = vperm.slane %v64_v52, 0 }
  0xb2   :  { %v757_v6 = vmul.f32 %v6854_v56, %v744_v61  ;;  %v758_v7 = vmul.f32 %v6856_v57, %v743_v62  ;;  %v759_v8 = vmul.f32 %v6858_v58, %v746_v5  ;;  %v6928_v60 = vperm.slane %v64_v52, 1 }
  0xb3   :  { %8605 = vst [vmem:[#allocation24_spill] sm:$0xff] %v6926_v59 }
  0xb4   :  { %800 = vmatpush.msra.mxu1 %v757_v6  ;;  %820 = vmatpush.msra.mxu2 %v758_v7  ;;  %8606 = vst [vmem:[#allocation25_spill] sm:$0xff] %v6928_v60 }
  0xb5   :  { %840 = vmatpush.msra.mxu3 %v759_v8 }
  0xb6   :  { %6182 = vmatmul.msk.f32.vlgmr.msrb.gmra.mxu0 %vm133_vm2, %v6181_v54  ;;  %6183 = vmatmul.msk.f32.vlgmr.msrb.gmra.mxu1 %vm133_vm2, %v6181_v54  ;;  %v6924_v54 = vperm.slane %v64_v52, 2 }
  0xb7   :  { %6189 = vmatmul.msk.f32.vlgmr.msra.gmra.mxu2 %vm133_vm2, %v6186_v11  ;;  %6190 = vmatmul.msk.f32.vlgmr.msra.gmra.mxu3 %vm133_vm2, %v6186_v11 }
  0xb8   :  { %v850_v24 = vpop.permute.xlu0 %849  ;;  %v854_v25 = vpop.permute.xlu1 %853  ;;  %8604 = vst [vmem:[#allocation23_spill] sm:$0xff] %v6924_v54 }
  0xb9   :  { %v861_v27 = vsel %vm857_vm7, %v856_v13, %v850_v24  ;;  %v858_v28 = vsel %vm857_vm7, %v854_v25, %v856_v13  ;;  %v969_v55 = vpop.permute.xlu2 %968 }
  0xba   :  { %v874_v29 = vmul.f32 %v6881_v12, %v861_v27  ;;  %v873_v30 = vmul.f32 %v6883_v21, %v858_v28 }
  0xbc   :  { %935 = vmatpush.msrb.mxu2 %v873_v30  ;;  %955 = vmatpush.msrb.mxu3 %v874_v29 }
  0xbe   :  { %6187 = vmatmul.msk.f32.vlgmr.msra.gmra.mxu0 %vm133_vm2, %v6186_v11  ;;  %6188 = vmatmul.msk.f32.vlgmr.msra.gmra.mxu1 %vm133_vm2, %v6186_v11 }
  0xbf   :  { %6194 = vmatmul.msk.f32.vlgmr.msrb.gmra.mxu2 %vm133_vm2, %v6191_v39  ;;  %6195 = vmatmul.msk.f32.vlgmr.msrb.gmra.mxu3 %vm133_vm2, %v6191_v39 }
  0xc0   :  { %v852_v43 = vpop.permute.xlu0 %851  ;;  %v965_v44 = vpop.permute.xlu1 %964 }
  0xc1   :  { %v859_v45 = vsel %vm857_vm7, %v852_v43, %v854_v25  ;;  %v860_v46 = vsel %vm857_vm7, %v850_v24, %v852_v43  ;;  %v1092_v24 = vld [vmem:[%s8505_s4] sm:$0xff] }
  0xc2   :  { %v871_v47 = vmul.f32 %v6904_v40, %v860_v46  ;;  %v872_v48 = vmul.f32 %v6906_v42, %v859_v45 }
  0xc4   :  { %895 = vmatpush.msrb.mxu0 %v871_v47  ;;  %915 = vmatpush.msrb.mxu1 %v872_v48 }
  0xc6   :  { %6192 = vmatmul.msk.f32.vlgmr.msrb.gmra.mxu0 %vm133_vm2, %v6191_v39  ;;  %6193 = vmatmul.msk.f32.vlgmr.msrb.gmra.mxu1 %vm133_vm2, %v6191_v39 }
  0xc8   :  { %v971_v61 = vpop.permute.xlu0 %970  ;;  %v967_v62 = vpop.permute.xlu1 %966 }
  0xc9   :  { %v976_v5 = vsel %vm972_vm8, %v971_v61, %v965_v44  ;;  %v973_v6 = vsel %vm972_vm8, %v969_v55, %v971_v61  ;;  %v974_v7 = vsel %vm972_vm8, %v967_v62, %v969_v55  ;;  %v975_v8 = vsel %vm972_vm8, %v965_v44, %v967_v62 }
  0xca   :  { %v989_v9 = vmul.f32 %v6922_v53, %v976_v5  ;;  %v988_v11 = vmul.f32 %v6924_v54, %v973_v6  ;;  %v986_v13 = vmul.f32 %v6926_v59, %v975_v8  ;;  %v987_v22 = vmul.f32 %v6928_v60, %v974_v7 }
  0xcc   :  { %1010 = vmatpush.msra.mxu0 %v986_v13  ;;  %1030 = vmatpush.msra.mxu1 %v987_v22 }
  0xcd   :  { %1050 = vmatpush.msra.mxu2 %v988_v11  ;;  %1070 = vmatpush.msra.mxu3 %v989_v9 }
  0xce   :  { %6197 = vmatmul.msk.f32.vlgmr.msra.gmra.mxu0 %vm133_vm2, %v6196_v23  ;;  %6198 = vmatmul.msk.f32.vlgmr.msra.gmra.mxu1 %vm133_vm2, %v6196_v23 }
  0xcf   :  { %6199 = vmatmul.msk.f32.vlgmr.msra.gmra.mxu2 %vm133_vm2, %v6196_v23  ;;  %6200 = vmatmul.msk.f32.vlgmr.msra.gmra.mxu3 %vm133_vm2, %v6196_v23 }
  0xd0   :  { %1116 = vmatpush.msrb.mxu0 %v6602_v3  ;;  %1136 = vmatpush.msrb.mxu1 %v6586_v1 }
  0xd1   :  { %1156 = vmatpush.msrb.mxu2 %v6597_v2  ;;  %1176 = vmatpush.msrb.mxu3 %v6581_v0 }
  0xd6   :  { %6201 = vmatmul.msk.f32.vlgmr.msrb.gmra.mxu0 %vm133_vm2, %v1092_v24  ;;  %6202 = vmatmul.msk.f32.vlgmr.msrb.gmra.mxu1 %vm133_vm2, %v1092_v24 }
  0xd7   :  { %6203 = vmatmul.msk.f32.vlgmr.msrb.gmra.mxu2 %vm133_vm2, %v1092_v24  ;;  %6204 = vmatmul.msk.f32.vlgmr.msrb.gmra.mxu3 %vm133_vm2, %v1092_v24 }
 0x103   :  { %v174_v3 = vpop.f32.mrf.mxu1 }
 0x105   :  { %v154_v25 = vpop.f32.mrf.mxu0 }
 0x109   :  { %v194_v26 = vpop.f32.mrf.mxu2 }
 0x10a   :  { %v214_v1 = vpop.f32.mrf.mxu3 }
 0x10c   :  { %v257_v2 = vpop.f32.mrf.mxu1 }
 0x10d   :  { %v237_v27 = vpop.f32.mrf.mxu0  ;;  %v258_v13 = vadd.f32 %v257_v2, %v174_v3 }
 0x10e   :  { %v238_v11 = vadd.f32 %v237_v27, %v154_v25 }
 0x111   :  { %v277_v28 = vpop.f32.mrf.mxu2 }
 0x112   :  { %v297_v0 = vpop.f32.mrf.mxu3  ;;  %v278_v22 = vadd.f32 %v277_v28, %v194_v26 }
 0x113   :  { %v298_v37 = vadd.f32 %v297_v0, %v214_v1 }
 0x114   :  { %v368_v43 = vpop.f32.mrf.mxu1 }
 0x115   :  { %v348_v29 = vpop.f32.mrf.mxu0  ;;  %v412_v23 = vadd.f32 %v368_v43, %v258_v13 }
 0x116   :  { %v411_v24 = vadd.f32 %v348_v29, %v238_v11  ;;  %v1082_v11 = vpop.permute.xlu2 %1081 }
 0x119   :  { %v388_v30 = vpop.f32.mrf.mxu2 }
 0x11a   :  { %v408_v39 = vpop.f32.mrf.mxu3  ;;  %v413_v21 = vadd.f32 %v388_v30, %v278_v22 }
 0x11b   :  { %v414_v30 = vadd.f32 %v408_v39, %v298_v37 }
 0x122   :  { %v503_v44 = vpop.f32.mrf.mxu2  ;;  %v523_v45 = vpop.f32.mrf.mxu3 }
 0x123   :  { %v463_v46 = vpop.f32.mrf.mxu0  ;;  %v483_v47 = vpop.f32.mrf.mxu1  ;;  %v528_v31 = vadd.f32 %v503_v44, %v413_v21 }
 0x124   :  { %v526_v53 = vadd.f32 %v463_v46, %v411_v24  ;;  %v527_v12 = vadd.f32 %v483_v47, %v412_v23 }
 0x12a   :  { %v592_v55 = vpop.f32.mrf.mxu2  ;;  %v612_v61 = vpop.f32.mrf.mxu3 }
 0x12b   :  { %v552_v48 = vpop.f32.mrf.mxu0  ;;  %v572_v52 = vpop.f32.mrf.mxu1  ;;  %v617_v2 = vadd.f32 %v592_v55, %v528_v31 }
 0x12c   :  { %v615_v40 = vadd.f32 %v552_v48, %v526_v53  ;;  %v616_v56 = vadd.f32 %v572_v52, %v527_v12  ;;  %v529_v53 = vadd.f32 %v523_v45, %v414_v30 }
 0x12e   :  { %v618_v21 = vadd.f32 %v612_v61, %v529_v53  ;;  %v7053_v53 = vld [vmem:[%s8506_s5 + $0x8] sm:$0xff] }
 0x132   :  { %v707_v6 = vpop.f32.mrf.mxu2  ;;  %v727_v7 = vpop.f32.mrf.mxu3 }
 0x133   :  { %v667_v62 = vpop.f32.mrf.mxu0  ;;  %v687_v5 = vpop.f32.mrf.mxu1  ;;  %v732_v47 = vadd.f32 %v707_v6, %v617_v2  ;;  %v733_v44 = vadd.f32 %v727_v7, %v618_v21 }
 0x134   :  { %v730_v41 = vadd.f32 %v667_v62, %v615_v40  ;;  %v731_v57 = vadd.f32 %v687_v5, %v616_v56 }
 0x13a   :  { %v822_v54 = vpop.f32.mrf.mxu2  ;;  %v842_v60 = vpop.f32.mrf.mxu3 }
 0x13b   :  { %v782_v8 = vpop.f32.mrf.mxu0  ;;  %v802_v9 = vpop.f32.mrf.mxu1  ;;  %v847_v12 = vadd.f32 %v822_v54, %v732_v47  ;;  %v848_v39 = vadd.f32 %v842_v60, %v733_v44 }
 0x13c   :  { %v845_v38 = vadd.f32 %v782_v8, %v730_v41  ;;  %v846_v58 = vadd.f32 %v802_v9, %v731_v57  ;;  %v1096_v57 = vpop.permute.xlu0 %1095 }
 0x142   :  { %v937_v25 = vpop.f32.mrf.mxu2  ;;  %v957_v3 = vpop.f32.mrf.mxu3 }
 0x143   :  { %v897_v59 = vpop.f32.mrf.mxu0  ;;  %v917_v42 = vpop.f32.mrf.mxu1  ;;  %v962_v41 = vadd.f32 %v937_v25, %v847_v12  ;;  %v963_v55 = vadd.f32 %v957_v3, %v848_v39 }
 0x144   :  { %v960_v26 = vadd.f32 %v897_v59, %v845_v38  ;;  %v961_v27 = vadd.f32 %v917_v42, %v846_v58 }
 0x14b   :  { %v1012_v28 = vpop.f32.mrf.mxu0  ;;  %v1032_v29 = vpop.f32.mrf.mxu1 }
 0x14c   :  { %v1075_v43 = vadd.f32 %v1012_v28, %v960_v26  ;;  %v1076_v46 = vadd.f32 %v1032_v29, %v961_v27 }
 0x14e   :  { %v1084_v40 = vadd.f32 %v1082_v11, %v1075_v43  ;;  %v1085_v56 = vadd.f32 %v1082_v11, %v1076_v46 }
 0x150   :  { %v1088_v42 = vmax.f32 %v1084_v40, 0.0  ;;  %v1089_v48 = vmax.f32 %v1085_v56, 0.0 }
 0x152   :  { %v1052_v1 = vpop.f32.mrf.mxu2  ;;  %v1072_v0 = vpop.f32.mrf.mxu3 }
 0x153   :  { %v1077_v38 = vadd.f32 %v1052_v1, %v962_v41  ;;  %v1118_v58 = vpop.f32.mrf.mxu0  ;;  %v1138_v31 = vpop.f32.mrf.mxu1  ;;  %v1078_v5 = vadd.f32 %v1072_v0, %v963_v55 }
 0x154   :  { %v6960_v59 = vadd.f32 %v1118_v58, %v1096_v57  ;;  %v6962_v37 = vadd.f32 %v1138_v31, %v1096_v57 }
 0x155   :  { %v1086_v52 = vadd.f32 %v1082_v11, %v1077_v38  ;;  %v1087_v13 = vadd.f32 %v1082_v11, %v1078_v5 }
 0x156   :  { %v1181_v54 = vadd.f32 %v6960_v59, %v1088_v42  ;;  %v1182_v45 = vadd.f32 %v6962_v37, %v1089_v48 }
 0x157   :  { %v1090_v7 = vmax.f32 %v1086_v52, 0.0  ;;  %v1091_v24 = vmax.f32 %v1087_v13, 0.0 }
 0x158   :  { %v6966_v61 = vmax.f32 %v1181_v54, 0.0  ;;  %v6968_v62 = vmax.f32 %v1182_v45, 0.0 }
 0x15a   :  { %v1158_v6 = vpop.f32.mrf.mxu2  ;;  %1206 = vrot.lane.b32.xlu2 %v6966_v61, %s6506_s2  ;;  %1191 = vrot.lane.b32.xlu0 %v6968_v62, %s6507_s28  ;;  %v1178_v9 = vpop.f32.mrf.mxu3 }
 0x15b   :  { %v6974_v60 = vadd.f32 %v1158_v6, %v1096_v57  ;;  %1208 = vrot.lane.b32.xlu1 %v6968_v62, %s6506_s2  ;;  %v6981_v23 = vadd.f32 %v1178_v9, %v1096_v57  ;;  %v7065_v57 = vld [vmem:[%s8506_s5] sm:$0xff] }
 0x15d   :  { %v1183_v8 = vadd.f32 %v6974_v60, %v1090_v7  ;;  %v1184_v25 = vadd.f32 %v6981_v23, %v1091_v24 }
 0x15f   :  { %v6979_v22 = vmax.f32 %v1183_v8, 0.0  ;;  %v6990_v3 = vmax.f32 %v1184_v25, 0.0 }
 0x162   :  { %1210 = vrot.lane.b32.xlu2 %v6979_v22, %s6506_s2  ;;  %1189 = vrot.lane.b32.xlu0 %v6966_v61, %s6507_s28 }
 0x163   :  { %1392 = vrot.lane.b32.xlu1 %v6968_v62, %s6508_s14 }
 0x16a   :  { %1497 = vrot.lane.b32.xlu2 %v6968_v62, %s6509_s15  ;;  %1396 = vrot.lane.b32.xlu0 %v6990_v3, %s6508_s14 }
 0x16b   :  { %1212 = vrot.lane.b32.xlu1 %v6990_v3, %s6506_s2 }
 0x172   :  { %1195 = vrot.lane.b32.xlu2 %v6990_v3, %s6507_s28  ;;  %1499 = vrot.lane.b32.xlu0 %v6979_v22, %s6509_s15 }
 0x173   :  { %1193 = vrot.lane.b32.xlu1 %v6979_v22, %s6507_s28 }
 0x17a   :  { %1394 = vrot.lane.b32.xlu2 %v6979_v22, %s6508_s14  ;;  %1689 = vrot.lane.b32.xlu0 %v6966_v61, %s6510_s16 }
 0x17b   :  { %1390 = vrot.lane.b32.xlu1 %v6966_v61, %s6508_s14 }
 0x182   :  { %1495 = vrot.lane.b32.xlu2 %v6966_v61, %s6509_s15  ;;  %1691 = vrot.lane.b32.xlu0 %v6968_v62, %s6510_s16 }
 0x183   :  { %1501 = vrot.lane.b32.xlu1 %v6990_v3, %s6509_s15 }
 0x18a   :  { %1899 = vrot.lane.b32.xlu2 %v6966_v61, %s6512_s18  ;;  %1800 = vrot.lane.b32.xlu0 %v6990_v3, %s6511_s17 }
 0x18b   :  { %1794 = vrot.lane.b32.xlu1 %v6966_v61, %s6511_s17 }
 0x192   :  { %1695 = vrot.lane.b32.xlu2 %v6990_v3, %s6510_s16  ;;  %1903 = vrot.lane.b32.xlu0 %v6979_v22, %s6512_s18 }
 0x193   :  { %1693 = vrot.lane.b32.xlu1 %v6979_v22, %s6510_s16 }
 0x19a   :  { %1798 = vrot.lane.b32.xlu2 %v6979_v22, %s6511_s17  ;;  %2004 = vrot.lane.b32.xlu0 %v6966_v61, %s6513_s19 }
 0x19b   :  { %1796 = vrot.lane.b32.xlu1 %v6968_v62, %s6511_s17 }
 0x1a2   :  { %1901 = vrot.lane.b32.xlu2 %v6968_v62, %s6512_s18  ;;  %2006 = vrot.lane.b32.xlu0 %v6968_v62, %s6513_s19 }
 0x1a3   :  { %1905 = vrot.lane.b32.xlu1 %v6990_v3, %s6512_s18 }
 0x1aa   :  { %2010 = vrot.lane.b32.xlu2 %v6990_v3, %s6513_s19 }
 0x1ab   :  { %2008 = vrot.lane.b32.xlu1 %v6979_v22, %s6513_s19 }
 0x1b4   :  { %v1207_v26 = vpop.permute.xlu2 %1206 }
 0x1bc   :  { %v1211_v27 = vpop.permute.xlu2 %1210 }
 0x1c4   :  { %v1498_v2 = vpop.permute.xlu2 %1497 }
 0x1cc   :  { %v1192_v28 = vpop.permute.xlu0 %1191  ;;  %v1196_v29 = vpop.permute.xlu2 %1195 }
 0x1cd   :  { %v1209_v43 = vpop.permute.xlu1 %1208 }
 0x1ce   :  { %v1215_v46 = vsel %vm113_vm0, %v1209_v43, %v1211_v27  ;;  %v1216_v30 = vsel %vm113_vm0, %v1207_v26, %v1209_v43 }
 0x1cf   :  { %v1219_v47 = vmul.f32 %v1216_v30, %v6678_v15  ;;  %v1220_v11 = vmul.f32 %v1215_v46, %v6680_v16 }
 0x1d1   :  { %1262 = vmatpush.msra.mxu1 %v1219_v47  ;;  %1282 = vmatpush.msra.mxu2 %v1220_v11  ;;  %v7116_v11 = vld [vmem:[%s8506_s5 + $0x10] sm:$0xff] }
 0x1d2   :  { %6207 = vmatmul.msk.f32.vlgmr.msra.gmra.mxu1 %vm133_vm2, %v7053_v53  ;;  %6208 = vmatmul.msk.f32.vlgmr.msra.gmra.mxu2 %vm133_vm2, %v7053_v53  ;;  %8607 = vst [vmem:[#allocation26_spill] sm:$0xff] %v7116_v11 }
 0x1d4   :  { %v1190_v12 = vpop.permute.xlu0 %1189  ;;  %v1395_v41 = vpop.permute.xlu2 %1394 }
 0x1d5   :  { %v1199_v40 = vsel %vm86_vm1, %v1190_v12, %v1192_v28  ;;  %v1393_v56 = vpop.permute.xlu1 %1392  ;;  %v1200_v44 = vsel %vm86_vm1, %v1196_v29, %v1190_v12 }
 0x1d6   :  { %v1202_v21 = vmul.f32 %v1199_v40, %v6714_v35  ;;  %v1201_v48 = vmul.f32 %v1200_v44, %v6712_v34  ;;  %v1399_v52 = vsel %vm308_vm3, %v1393_v56, %v1395_v41  ;;  %v7138_v44 = vld [vmem:[%s8506_s5 + $0x18] sm:$0xff] }
 0x1d7   :  { %v1404_v13 = vmul.f32 %v1399_v52, %v6741_v49  ;;  %8608 = vst [vmem:[#allocation27_spill] sm:$0xff] %v7138_v44 }
 0x1d8   :  { %1345 = vmatpush.msrb.mxu1 %v1202_v21 }
 0x1da   :  { %6211 = vmatmul.msk.f32.vlgmr.msrb.gmra.mxu1 %vm133_vm2, %v7065_v57 }
 0x1dc   :  { %v1397_v1 = vpop.permute.xlu0 %1396  ;;  %v1496_v39 = vpop.permute.xlu2 %1495 }
 0x1dd   :  { %v1213_v0 = vpop.permute.xlu1 %1212  ;;  %v1398_v6 = vsel %vm308_vm3, %v1395_v41, %v1397_v1  ;;  %v1505_v46 = vsel %vm423_vm4, %v1496_v39, %v1498_v2 }
 0x1de   :  { %v1214_v38 = vsel %vm113_vm0, %v1211_v27, %v1213_v0  ;;  %v1217_v58 = vsel %vm113_vm0, %v1213_v0, %v1207_v26  ;;  %v1405_v24 = vmul.f32 %v1398_v6, %v6745_v51  ;;  %v1508_v12 = vmul.f32 %v1505_v46, %v6794_v20 }
 0x1df   :  { %v1218_v31 = vmul.f32 %v1217_v58, %v6676_v14  ;;  %v1221_v42 = vmul.f32 %v1214_v38, %v6682_v17  ;;  %v8609_v58 = vld [vmem:[#allocation12_spill] sm:$0xff] }
 0x1e1   :  { %1242 = vmatpush.msra.mxu0 %v1218_v31  ;;  %1302 = vmatpush.msra.mxu3 %v1221_v42 }
 0x1e2   :  { %6206 = vmatmul.msk.f32.vlgmr.msra.gmra.mxu0 %vm133_vm2, %v7053_v53  ;;  %6209 = vmatmul.msk.f32.vlgmr.msra.gmra.mxu3 %vm133_vm2, %v7053_v53 }
 0x1e3   :  { %1325 = vmatpush.msrb.mxu0 %v1201_v48 }
 0x1e4   :  { %v1500_v54 = vpop.permute.xlu0 %1499  ;;  %v7101_v26 = vpop.permute.xlu2 %1899 }
 0x1e5   :  { %v1194_v45 = vpop.permute.xlu1 %1193  ;;  %v1504_v7 = vsel %vm423_vm4, %v1498_v2, %v1500_v54 }
 0x1e6   :  { %v1197_v55 = vsel %vm86_vm1, %v1194_v45, %v1196_v29  ;;  %v1198_v5 = vsel %vm86_vm1, %v1192_v28, %v1194_v45  ;;  %v1509_v25 = vmul.f32 %v1504_v7, %v6771_v63  ;;  %v8611_v45 = vld [vmem:[#allocation17_spill] sm:$0xff] }
 0x1e7   :  { %v1203_v8 = vmul.f32 %v1198_v5, %v6684_v18  ;;  %v1204_v9 = vmul.f32 %v1197_v55, %v6716_v36 }
 0x1e9   :  { %1365 = vmatpush.msrb.mxu2 %v1203_v8  ;;  %1385 = vmatpush.msrb.mxu3 %v1204_v9  ;;  %v8612_v9 = vld [vmem:[#allocation13_spill] sm:$0xff] }
 0x1ea   :  { %6210 = vmatmul.msk.f32.vlgmr.msrb.gmra.mxu0 %vm133_vm2, %v7065_v57  ;;  %6212 = vmatmul.msk.f32.vlgmr.msrb.gmra.mxu2 %vm133_vm2, %v7065_v57 }
 0x1eb   :  { %6213 = vmatmul.msk.f32.vlgmr.msrb.gmra.mxu3 %vm133_vm2, %v7065_v57  ;;  %1466 = vmatpush.msra.mxu2 %v1404_v13 }
 0x1ec   :  { %1486 = vmatpush.msra.mxu3 %v1405_v24  ;;  %v1690_v27 = vpop.permute.xlu0 %1689  ;;  %v1696_v40 = vpop.permute.xlu2 %1695  ;;  %v8613_v24 = vld [vmem:[#allocation10_spill] sm:$0xff] }
 0x1ed   :  { %1571 = vmatpush.msrb.mxu2 %v1509_v25  ;;  %v1391_v28 = vpop.permute.xlu1 %1390 }
 0x1ee   :  { %v1400_v29 = vsel %vm308_vm3, %v1391_v28, %v1393_v56  ;;  %v1401_v43 = vsel %vm308_vm3, %v1397_v1, %v1391_v28  ;;  %v8615_v28 = vld [vmem:[#allocation16_spill] sm:$0xff] }
 0x1ef   :  { %v1402_v30 = vmul.f32 %v1401_v43, %v6743_v50  ;;  %v1403_v47 = vmul.f32 %v1400_v29, %v6708_v33 }
 0x1f1   :  { %1426 = vmatpush.msra.mxu0 %v1402_v30  ;;  %1446 = vmatpush.msra.mxu1 %v1403_v47 }
 0x1f2   :  { %6215 = vmatmul.msk.f32.vlgmr.msra.gmra.mxu0 %vm133_vm2, %v7116_v11  ;;  %6216 = vmatmul.msk.f32.vlgmr.msra.gmra.mxu1 %vm133_vm2, %v7116_v11 }
 0x1f3   :  { %6217 = vmatmul.msk.f32.vlgmr.msra.gmra.mxu2 %vm133_vm2, %v7116_v11  ;;  %6218 = vmatmul.msk.f32.vlgmr.msra.gmra.mxu3 %vm133_vm2, %v7116_v11 }
 0x1f4   :  { %1551 = vmatpush.msrb.mxu1 %v1508_v12  ;;  %1660 = vmatpush.msra.mxu2 %v6979_v22  ;;  %v1692_v2 = vpop.permute.xlu0 %1691  ;;  %v1700_v22 = vsel %vm627_vm5, %v1696_v40, %v1690_v27  ;;  %v1799_v55 = vpop.permute.xlu2 %1798 }
 0x1f5   :  { %v1502_v56 = vpop.permute.xlu1 %1501  ;;  %v1704_v38 = vmul.f32 %v1700_v22, %v6820_v32  ;;  %v8619_v22 = vld [vmem:[#allocation20_spill] sm:$0xff] }
 0x1f6   :  { %1640 = vmatpush.msra.mxu1 %v6968_v62  ;;  %v1503_v21 = vsel %vm423_vm4, %v1500_v54, %v1502_v56  ;;  %v1506_v41 = vsel %vm423_vm4, %v1502_v56, %v1496_v39  ;;  %v1699_v62 = vsel %vm627_vm5, %v1690_v27, %v1692_v2  ;;  %v7161_v54 = vld [vmem:[%s8506_s5 + $0x20] sm:$0xff]  ;;  %v7186_v27 = vld [vmem:[%s8506_s5 + $0x28] sm:$0xff] }
 0x1f7   :  { %v1507_v1 = vmul.f32 %v1506_v41, %v6792_v19  ;;  %v1510_v0 = vmul.f32 %v1503_v21, %v6773_v4  ;;  %v1701_v31 = vmul.f32 %v1699_v62, %v8609_v58  ;;  %8610 = vst [vmem:[#allocation28_spill] sm:$0xff] %v7161_v54  ;;  %v8616_v56 = vld [vmem:[#allocation14_spill] sm:$0xff]  ;;  %v8617_v41 = vld [vmem:[#allocation15_spill] sm:$0xff] }
 0x1f8   :  { %8614 = vst [vmem:[#allocation29_spill] sm:$0xff] %v7186_v27 }
 0x1f9   :  { %1531 = vmatpush.msrb.mxu0 %v1507_v1  ;;  %1591 = vmatpush.msrb.mxu3 %v1510_v0  ;;  %v7211_v0 = vld [vmem:[%s8506_s5 + $0x30] sm:$0xff] }
 0x1fa   :  { %6220 = vmatmul.msk.f32.vlgmr.msrb.gmra.mxu0 %vm133_vm2, %v7138_v44  ;;  %6221 = vmatmul.msk.f32.vlgmr.msrb.gmra.mxu1 %vm133_vm2, %v7138_v44  ;;  %8618 = vst [vmem:[#allocation30_spill] sm:$0xff] %v7211_v0 }
 0x1fb   :  { %6222 = vmatmul.msk.f32.vlgmr.msrb.gmra.mxu2 %vm133_vm2, %v7138_v44  ;;  %6223 = vmatmul.msk.f32.vlgmr.msrb.gmra.mxu3 %vm133_vm2, %v7138_v44 }
 0x1fc   :  { %1620 = vmatpush.msra.mxu0 %v6966_v61  ;;  %1680 = vmatpush.msra.mxu3 %v6990_v3  ;;  %v1801_v42 = vpop.permute.xlu0 %1800  ;;  %v6153_v61 = vld [vmem:[%s8510_s9 + $0x10] sm:$0xff]  ;;  %v1902_v43 = vpop.permute.xlu2 %1901 }
 0x1fd   :  { %v1795_v48 = vpop.permute.xlu1 %1794  ;;  %2111 = vperm.xlu1 %6423, %v6153_v61   ;;  %v1802_v8 = vsel %vm742_vm6, %v1799_v55, %v1801_v42 }
 0x1fe   :  { %1725 = vmatpush.msrb.mxu0 %v1701_v31  ;;  %1785 = vmatpush.msrb.mxu3 %v1704_v38  ;;  %v1805_v39 = vsel %vm742_vm6, %v1801_v42, %v1795_v48  ;;  %v1808_v29 = vmul.f32 %v1802_v8, %v8615_v28  ;;  %v8620_v38 = vld [vmem:[#allocation21_spill] sm:$0xff]  ;;  %v8622_v8 = vld [vmem:[#allocation19_spill] sm:$0xff] }
 0x1ff   :  { %v1809_v52 = vmul.f32 %v1805_v39, %v8611_v45 }
 0x202   :  { %6225 = vmatmul.msk.f32.vlgmr.msra.gmra.mxu0 %vm133_vm2, %v7161_v54  ;;  %6226 = vmatmul.msk.f32.vlgmr.msra.gmra.mxu1 %vm133_vm2, %v7161_v54 }
 0x203   :  { %6227 = vmatmul.msk.f32.vlgmr.msra.gmra.mxu2 %vm133_vm2, %v7161_v54  ;;  %6228 = vmatmul.msk.f32.vlgmr.msra.gmra.mxu3 %vm133_vm2, %v7161_v54 }
 0x204   :  { %1890 = vmatpush.msra.mxu3 %v1809_v52  ;;  %v1904_v3 = vpop.permute.xlu0 %1903  ;;  %v2011_v52 = vpop.permute.xlu2 %2010 }
 0x205   :  { %v1694_v5 = vpop.permute.xlu1 %1693 }
 0x206   :  { %v1697_v6 = vsel %vm627_vm5, %v1694_v5, %v1696_v40  ;;  %v1698_v7 = vsel %vm627_vm5, %v1692_v2, %v1694_v5  ;;  %v1909_v2 = vsel %vm857_vm7, %v7101_v26, %v1902_v43  ;;  %v1908_v40 = vsel %vm857_vm7, %v1902_v43, %v1904_v3  ;;  %v7238_v43 = vld [vmem:[%s8506_s5 + $0x38] sm:$0xff] }
 0x207   :  { %v1702_v13 = vmul.f32 %v1698_v7, %v8612_v9  ;;  %v1703_v25 = vmul.f32 %v1697_v6, %v8613_v24  ;;  %v1911_v62 = vmul.f32 %v1909_v2, %v8619_v22  ;;  %v1912_v31 = vmul.f32 %v1908_v40, %v8620_v38  ;;  %8624 = vst [vmem:[#allocation31_spill] sm:$0xff] %v7238_v43  ;;  %v8627_v40 = vld [vmem:[#allocation23_spill] sm:$0xff] }
 0x209   :  { %1745 = vmatpush.msrb.mxu1 %v1702_v13  ;;  %1765 = vmatpush.msrb.mxu2 %v1703_v25  ;;  %v8623_v25 = vld [vmem:[#allocation18_spill] sm:$0xff] }
 0x20a   :  { %6230 = vmatmul.msk.f32.vlgmr.msrb.gmra.mxu0 %vm133_vm2, %v7186_v27  ;;  %6231 = vmatmul.msk.f32.vlgmr.msrb.gmra.mxu1 %vm133_vm2, %v7186_v27 }
 0x20b   :  { %6232 = vmatmul.msk.f32.vlgmr.msrb.gmra.mxu2 %vm133_vm2, %v7186_v27  ;;  %6233 = vmatmul.msk.f32.vlgmr.msrb.gmra.mxu3 %vm133_vm2, %v7186_v27 }
 0x20c   :  { %1870 = vmatpush.msra.mxu2 %v1808_v29  ;;  %v2005_v46 = vpop.permute.xlu0 %2004 }
 0x20d   :  { %v1797_v30 = vpop.permute.xlu1 %1796  ;;  %v2015_v7 = vsel %vm972_vm8, %v2011_v52, %v2005_v46 }
 0x20e   :  { %v1803_v47 = vsel %vm742_vm6, %v1797_v30, %v1799_v55  ;;  %v1804_v12 = vsel %vm742_vm6, %v1795_v48, %v1797_v30  ;;  %v8621_v55 = vld [vmem:[#allocation24_spill] sm:$0xff] }
 0x20f   :  { %v1806_v21 = vmul.f32 %v1804_v12, %v8616_v56  ;;  %v1807_v1 = vmul.f32 %v1803_v47, %v8617_v41  ;;  %v8626_v12 = vld [vmem:[#allocation25_spill] sm:$0xff] }
 0x211   :  { %1830 = vmatpush.msra.mxu0 %v1806_v21  ;;  %1850 = vmatpush.msra.mxu1 %v1807_v1  ;;  %v7258_v1 = vld [vmem:[%s8506_s5 + $0x40] sm:$0xff] }
 0x212   :  { %6235 = vmatmul.msk.f32.vlgmr.msra.gmra.mxu0 %vm133_vm2, %v7211_v0  ;;  %6236 = vmatmul.msk.f32.vlgmr.msra.gmra.mxu1 %vm133_vm2, %v7211_v0  ;;  %8628 = vst [vmem:[#allocation32_spill] sm:$0xff] %v7258_v1 }
 0x213   :  { %6237 = vmatmul.msk.f32.vlgmr.msra.gmra.mxu2 %vm133_vm2, %v7211_v0  ;;  %6238 = vmatmul.msk.f32.vlgmr.msra.gmra.mxu3 %vm133_vm2, %v7211_v0 }
 0x214   :  { %1935 = vmatpush.msrb.mxu0 %v1911_v62  ;;  %1955 = vmatpush.msrb.mxu1 %v1912_v31  ;;  %v2007_v42 = vpop.permute.xlu0 %2006 }
 0x215   :  { %v2014_v48 = vsel %vm972_vm8, %v2005_v46, %v2007_v42  ;;  %v1906_v39 = vpop.permute.xlu1 %1905 }
 0x216   :  { %v2016_v61 = vmul.f32 %v2014_v48, %v8621_v55  ;;  %v1907_v5 = vsel %vm857_vm7, %v1904_v3, %v1906_v39  ;;  %v1910_v6 = vsel %vm857_vm7, %v1906_v39, %v7101_v26  ;;  %v8625_v3 = vld [vmem:[#allocation22_spill] sm:$0xff] }
 0x217   :  { %v1913_v13 = vmul.f32 %v1907_v5, %v8622_v8  ;;  %v1914_v29 = vmul.f32 %v1910_v6, %v8623_v25  ;;  %v2019_v30 = vmul.f32 %v2015_v7, %v8625_v3 }
 0x218   :  { %2040 = vmatpush.msra.mxu0 %v2016_v61 }
 0x219   :  { %1975 = vmatpush.msrb.mxu2 %v1913_v13  ;;  %1995 = vmatpush.msrb.mxu3 %v1914_v29 }
 0x21a   :  { %6240 = vmatmul.msk.f32.vlgmr.msrb.gmra.mxu0 %vm133_vm2, %v7238_v43  ;;  %6241 = vmatmul.msk.f32.vlgmr.msrb.gmra.mxu1 %vm133_vm2, %v7238_v43 }
 0x21b   :  { %6242 = vmatmul.msk.f32.vlgmr.msrb.gmra.mxu2 %vm133_vm2, %v7238_v43  ;;  %6243 = vmatmul.msk.f32.vlgmr.msrb.gmra.mxu3 %vm133_vm2, %v7238_v43 }
 0x21c   :  { %2100 = vmatpush.msra.mxu3 %v2019_v30 }
 0x21d   :  { %v2009_v26 = vpop.permute.xlu1 %2008 }
 0x21e   :  { %v2012_v46 = vsel %vm972_vm8, %v2009_v26, %v2011_v52  ;;  %v2013_v47 = vsel %vm972_vm8, %v2007_v42, %v2009_v26 }
 0x21f   :  { %v2017_v2 = vmul.f32 %v2013_v47, %v8626_v12  ;;  %v2018_v21 = vmul.f32 %v2012_v46, %v8627_v40 }
 0x221   :  { %2060 = vmatpush.msra.mxu1 %v2017_v2  ;;  %2080 = vmatpush.msra.mxu2 %v2018_v21 }
 0x222   :  { %6245 = vmatmul.msk.f32.vlgmr.msra.gmra.mxu0 %vm133_vm2, %v7258_v1  ;;  %6246 = vmatmul.msk.f32.vlgmr.msra.gmra.mxu1 %vm133_vm2, %v7258_v1 }
 0x223   :  { %6247 = vmatmul.msk.f32.vlgmr.msra.gmra.mxu2 %vm133_vm2, %v7258_v1  ;;  %6248 = vmatmul.msk.f32.vlgmr.msra.gmra.mxu3 %vm133_vm2, %v7258_v1 }
 0x24f   :  { %v1264_v62 = vpop.f32.mrf.mxu1 }
 0x255   :  { %v1284_v42 = vpop.f32.mrf.mxu2 }
 0x257   :  { %v1347_v39 = vpop.f32.mrf.mxu1 }
 0x258   :  { %v1348_v0 = vadd.f32 %v1347_v39, %v1264_v62 }
 0x25f   :  { %v1244_v31 = vpop.f32.mrf.mxu0 }
 0x265   :  { %v1304_v48 = vpop.f32.mrf.mxu3 }
 0x267   :  { %v1327_v52 = vpop.f32.mrf.mxu0 }
 0x268   :  { %v1328_v25 = vadd.f32 %v1327_v52, %v1244_v31 }
 0x26d   :  { %v1367_v61 = vpop.f32.mrf.mxu2 }
 0x26e   :  { %v1387_v5 = vpop.f32.mrf.mxu3  ;;  %v1368_v54 = vadd.f32 %v1367_v61, %v1284_v42 }
 0x26f   :  { %v1428_v6 = vpop.f32.mrf.mxu0  ;;  %v1448_v7 = vpop.f32.mrf.mxu1  ;;  %v1388_v32 = vadd.f32 %v1387_v5, %v1304_v48 }
 0x270   :  { %v1492_v22 = vadd.f32 %v1448_v7, %v1348_v0  ;;  %v1491_v45 = vadd.f32 %v1428_v6, %v1328_v25  ;;  %v7268_v0 = vpop.permute.xlu1 %2111 }
 0x276   :  { %v1468_v13 = vpop.f32.mrf.mxu2  ;;  %v1488_v29 = vpop.f32.mrf.mxu3 }
 0x277   :  { %v1533_v30 = vpop.f32.mrf.mxu0  ;;  %v1553_v26 = vpop.f32.mrf.mxu1  ;;  %v1493_v63 = vadd.f32 %v1468_v13, %v1368_v54  ;;  %v1494_v19 = vadd.f32 %v1488_v29, %v1388_v32 }
 0x278   :  { %v1597_v28 = vadd.f32 %v1553_v26, %v1492_v22  ;;  %v1596_v27 = vadd.f32 %v1533_v30, %v1491_v45 }
 0x27e   :  { %v1573_v46 = vpop.f32.mrf.mxu2  ;;  %v1593_v47 = vpop.f32.mrf.mxu3 }
 0x27f   :  { %v1622_v2 = vpop.f32.mrf.mxu0  ;;  %v1642_v21 = vpop.f32.mrf.mxu1  ;;  %v1598_v51 = vadd.f32 %v1573_v46, %v1493_v63  ;;  %v1599_v31 = vadd.f32 %v1593_v47, %v1494_v19 }
 0x280   :  { %v1686_v24 = vadd.f32 %v1642_v21, %v1597_v28  ;;  %v1685_v44 = vadd.f32 %v1622_v2, %v1596_v27 }
 0x286   :  { %v1662_v12 = vpop.f32.mrf.mxu2  ;;  %v1682_v55 = vpop.f32.mrf.mxu3 }
 0x287   :  { %v1727_v1 = vpop.f32.mrf.mxu0  ;;  %v1747_v3 = vpop.f32.mrf.mxu1  ;;  %v1687_v45 = vadd.f32 %v1662_v12, %v1598_v51  ;;  %v1688_v52 = vadd.f32 %v1682_v55, %v1599_v31 }
 0x288   :  { %v1791_v4 = vadd.f32 %v1747_v3, %v1686_v24  ;;  %v1790_v11 = vadd.f32 %v1727_v1, %v1685_v44 }
 0x28e   :  { %v1767_v40 = vpop.f32.mrf.mxu2  ;;  %v1787_v43 = vpop.f32.mrf.mxu3 }
 0x28f   :  { %v1832_v8 = vpop.f32.mrf.mxu0  ;;  %v1852_v38 = vpop.f32.mrf.mxu1  ;;  %v1792_v27 = vadd.f32 %v1767_v40, %v1687_v45  ;;  %v1793_v24 = vadd.f32 %v1787_v43, %v1688_v52 }
 0x290   :  { %v1896_v20 = vadd.f32 %v1852_v38, %v1791_v4  ;;  %v1895_v62 = vadd.f32 %v1832_v8, %v1790_v11 }
 0x296   :  { %v1872_v41 = vpop.f32.mrf.mxu2  ;;  %v1892_v56 = vpop.f32.mrf.mxu3 }
 0x297   :  { %v1937_v9 = vpop.f32.mrf.mxu0  ;;  %v1957_v58 = vpop.f32.mrf.mxu1  ;;  %v1897_v4 = vadd.f32 %v1872_v41, %v1792_v27  ;;  %v1898_v63 = vadd.f32 %v1892_v56, %v1793_v24 }
 0x298   :  { %v2001_v22 = vadd.f32 %v1957_v58, %v1896_v20  ;;  %v2000_v6 = vadd.f32 %v1937_v9, %v1895_v62 }
 0x29e   :  { %v1977_v25 = vpop.f32.mrf.mxu2  ;;  %v1997_v39 = vpop.f32.mrf.mxu3 }
 0x29f   :  { %v2042_v28 = vpop.f32.mrf.mxu0  ;;  %v2062_v42 = vpop.f32.mrf.mxu1  ;;  %v2002_v11 = vadd.f32 %v1977_v25, %v1897_v4  ;;  %v2003_v44 = vadd.f32 %v1997_v39, %v1898_v63 }
 0x2a0   :  { %v2106_v48 = vadd.f32 %v2062_v42, %v2001_v22  ;;  %v2105_v54 = vadd.f32 %v2042_v28, %v2000_v6 }
 0x2a2   :  { %v2115_v32 = vadd.f32 %v7268_v0, %v2106_v48  ;;  %v2114_v20 = vadd.f32 %v7268_v0, %v2105_v54 }
 0x2a4   :  { %v2119_v19 = vmax.f32 %v2115_v32, 0.0  ;;  %v2118_v3 = vmax.f32 %v2114_v20, 0.0 }
 0x2a6   :  { %v2123_v58 = vadd.f32 %v2119_v19, %v6962_v37  ;;  %v2082_v51 = vpop.f32.mrf.mxu2  ;;  %v2102_v38 = vpop.f32.mrf.mxu3  ;;  %v2122_v37 = vadd.f32 %v2118_v3, %v6960_v59  ;;  %v8629_v3 = vld [vmem:[#allocation5_spill] sm:$0xff] }
 0x2a7   :  { %v2107_v9 = vadd.f32 %v2082_v51, %v2002_v11  ;;  %v2108_v55 = vadd.f32 %v2102_v38, %v2003_v44 }
 0x2a8   :  { %v7273_v8 = vmax.f32 %v2123_v58, 0.0  ;;  %v7290_v7 = vmax.f32 %v2122_v37, 0.0 }
 0x2a9   :  { %v2116_v43 = vadd.f32 %v7268_v0, %v2107_v9  ;;  %v2117_v12 = vadd.f32 %v7268_v0, %v2108_v55 }
 0x2aa   :  { %2324 = vrot.lane.b32.xlu1 %v7273_v8, %s6508_s14  ;;  %2132 = vrot.lane.b32.xlu0 %v7273_v8, %s6507_s28 }
 0x2ab   :  { %v2120_v56 = vmax.f32 %v2116_v43, 0.0  ;;  %v2121_v41 = vmax.f32 %v2117_v12, 0.0  ;;  %2148 = vrot.lane.b32.xlu2 %v7273_v8, %s6506_s2  ;;  %v8630_v12 = vld [vmem:[#allocation9_spill] sm:$0xff] }
 0x2ad   :  { %v2124_v40 = vadd.f32 %v2120_v56, %v6974_v60  ;;  %v2125_v1 = vadd.f32 %v2121_v41, %v6981_v23  ;;  %v8631_v41 = vld [vmem:[#allocation26_spill] sm:$0xff] }
 0x2af   :  { %v7286_v61 = vmax.f32 %v2124_v40, 0.0  ;;  %v7288_v5 = vmax.f32 %v2125_v1, 0.0 }
 0x2b2   :  { %2152 = vrot.lane.b32.xlu1 %v7288_v5, %s6506_s2  ;;  %2150 = vrot.lane.b32.xlu0 %v7286_v61, %s6506_s2 }
 0x2b3   :  { %2146 = vrot.lane.b32.xlu2 %v7290_v7, %s6506_s2 }
 0x2ba   :  { %2134 = vrot.lane.b32.xlu1 %v7286_v61, %s6507_s28  ;;  %2130 = vrot.lane.b32.xlu0 %v7290_v7, %s6507_s28 }
 0x2bb   :  { %2424 = vrot.lane.b32.xlu2 %v7273_v8, %s6509_s15 }
 0x2c2   :  { %2322 = vrot.lane.b32.xlu1 %v7290_v7, %s6508_s14  ;;  %2328 = vrot.lane.b32.xlu0 %v7288_v5, %s6508_s14 }
 0x2c3   :  { %2136 = vrot.lane.b32.xlu2 %v7288_v5, %s6507_s28 }
 0x2ca   :  { %2428 = vrot.lane.b32.xlu1 %v7288_v5, %s6509_s15  ;;  %2426 = vrot.lane.b32.xlu0 %v7286_v61, %s6509_s15 }
 0x2cb   :  { %2326 = vrot.lane.b32.xlu2 %v7286_v61, %s6508_s14 }
 0x2d2   :  { %2706 = vrot.lane.b32.xlu1 %v7290_v7, %s6511_s17  ;;  %2606 = vrot.lane.b32.xlu0 %v7290_v7, %s6510_s16 }
 0x2d3   :  { %2422 = vrot.lane.b32.xlu2 %v7290_v7, %s6509_s15 }
 0x2da   :  { %2610 = vrot.lane.b32.xlu1 %v7286_v61, %s6510_s16  ;;  %2608 = vrot.lane.b32.xlu0 %v7273_v8, %s6510_s16 }
 0x2db   :  { %2806 = vrot.lane.b32.xlu2 %v7290_v7, %s6512_s18 }
 0x2e2   :  { %2708 = vrot.lane.b32.xlu1 %v7273_v8, %s6511_s17  ;;  %2712 = vrot.lane.b32.xlu0 %v7288_v5, %s6511_s17 }
 0x2e3   :  { %2612 = vrot.lane.b32.xlu2 %v7288_v5, %s6510_s16 }
 0x2ea   :  { %2812 = vrot.lane.b32.xlu1 %v7288_v5, %s6512_s18  ;;  %2810 = vrot.lane.b32.xlu0 %v7286_v61, %s6512_s18 }
 0x2eb   :  { %2710 = vrot.lane.b32.xlu2 %v7286_v61, %s6511_s17 }
 0x2f2   :  { %2910 = vrot.lane.b32.xlu1 %v7286_v61, %s6513_s19  ;;  %2906 = vrot.lane.b32.xlu0 %v7290_v7, %s6513_s19 }
 0x2f3   :  { %2808 = vrot.lane.b32.xlu2 %v7273_v8, %s6512_s18 }
 0x2fa   :  { %2908 = vrot.lane.b32.xlu0 %v7273_v8, %s6513_s19 }
 0x2fb   :  { %2912 = vrot.lane.b32.xlu2 %v7288_v5, %s6513_s19 }
 0x305   :  { %v2149_v59 = vpop.permute.xlu2 %2148 }
 0x30d   :  { %v2147_v60 = vpop.permute.xlu2 %2146 }
 0x30e   :  { %v2156_v23 = vsel %vm113_vm0, %v2147_v60, %v2149_v59 }
 0x30f   :  { %v2159_v13 = vmul.f32 %v2156_v23, %v6678_v15  ;;  %v8632_v23 = vld [vmem:[#allocation8_spill] sm:$0xff] }
 0x311   :  { %2197 = vmatpush.msrb.mxu1 %v2159_v13 }
 0x312   :  { %6250 = vmatmul.msk.f32.vlgmr.msrb.gmra.mxu1 %vm133_vm2, %v7053_v53 }
 0x315   :  { %v7355_v29 = vpop.permute.xlu2 %2424 }
 0x31c   :  { %v2325_v30 = vpop.permute.xlu1 %2324  ;;  %v2133_v26 = vpop.permute.xlu0 %2132 }
 0x31d   :  { %v2137_v46 = vpop.permute.xlu2 %2136 }
 0x324   :  { %v2153_v47 = vpop.permute.xlu1 %2152  ;;  %v2151_v2 = vpop.permute.xlu0 %2150 }
 0x325   :  { %v2157_v21 = vsel %vm113_vm0, %v2153_v47, %v2147_v60  ;;  %v2154_v31 = vsel %vm113_vm0, %v2151_v2, %v2153_v47  ;;  %v2155_v62 = vsel %vm113_vm0, %v2149_v59, %v2151_v2  ;;  %v2327_v22 = vpop.permute.xlu2 %2326 }
 0x326   :  { %v2158_v25 = vmul.f32 %v2157_v21, %v6676_v14  ;;  %v2160_v39 = vmul.f32 %v2155_v62, %v6680_v16  ;;  %v2161_v45 = vmul.f32 %v2154_v31, %v6682_v17  ;;  %v2331_v63 = vsel %vm308_vm3, %v2325_v30, %v2327_v22  ;;  %v8636_v31 = vld [vmem:[#allocation11_spill] sm:$0xff] }
 0x327   :  { %v2336_v19 = vmul.f32 %v2331_v63, %v6741_v49 }
 0x328   :  { %2177 = vmatpush.msrb.mxu0 %v2158_v25  ;;  %2217 = vmatpush.msrb.mxu2 %v2160_v39  ;;  %v8637_v25 = vld [vmem:[#allocation28_spill] sm:$0xff] }
 0x329   :  { %2237 = vmatpush.msrb.mxu3 %v2161_v45  ;;  %6249 = vmatmul.msk.f32.vlgmr.msrb.gmra.mxu0 %vm133_vm2, %v7053_v53 }
 0x32a   :  { %6251 = vmatmul.msk.f32.vlgmr.msrb.gmra.mxu2 %vm133_vm2, %v7053_v53  ;;  %6252 = vmatmul.msk.f32.vlgmr.msrb.gmra.mxu3 %vm133_vm2, %v7053_v53 }
 0x32c   :  { %v2135_v52 = vpop.permute.xlu1 %2134  ;;  %v2131_v6 = vpop.permute.xlu0 %2130 }
 0x32d   :  { %v2138_v28 = vsel %vm86_vm1, %v2135_v52, %v2137_v46  ;;  %v2139_v42 = vsel %vm86_vm1, %v2133_v26, %v2135_v52  ;;  %v2140_v48 = vsel %vm86_vm1, %v2131_v6, %v2133_v26  ;;  %v2141_v27 = vsel %vm86_vm1, %v2137_v46, %v2131_v6  ;;  %v2423_v24 = vpop.permute.xlu2 %2422  ;;  %v8634_v46 = vld [vmem:[#allocation7_spill] sm:$0xff]  ;;  %v8638_v6 = vld [vmem:[#allocation10_spill] sm:$0xff] }
 0x32e   :  { %v2144_v54 = vmul.f32 %v2139_v42, %v6684_v18  ;;  %v2145_v32 = vmul.f32 %v2138_v28, %v6716_v36  ;;  %v2142_v53 = vmul.f32 %v2141_v27, %v6712_v34  ;;  %v2143_v4 = vmul.f32 %v2140_v48, %v6714_v35  ;;  %v8639_v42 = vld [vmem:[#allocation12_spill] sm:$0xff]  ;;  %v8640_v27 = vld [vmem:[#allocation13_spill] sm:$0xff] }
 0x32f   :  { %v2432_v11 = vsel %vm423_vm4, %v2423_v24, %v7355_v29 }
 0x330   :  { %2257 = vmatpush.msra.mxu0 %v2142_v53  ;;  %2277 = vmatpush.msra.mxu1 %v2143_v4  ;;  %v2435_v56 = vmul.f32 %v2432_v11, %v8630_v12 }
 0x331   :  { %2297 = vmatpush.msra.mxu2 %v2144_v54  ;;  %2317 = vmatpush.msra.mxu3 %v2145_v32  ;;  %v8641_v54 = vld [vmem:[#allocation29_spill] sm:$0xff] }
 0x332   :  { %6253 = vmatmul.msk.f32.vlgmr.msra.gmra.mxu0 %vm133_vm2, %v7065_v57  ;;  %6254 = vmatmul.msk.f32.vlgmr.msra.gmra.mxu1 %vm133_vm2, %v7065_v57 }
 0x333   :  { %6255 = vmatmul.msk.f32.vlgmr.msra.gmra.mxu2 %vm133_vm2, %v7065_v57  ;;  %6256 = vmatmul.msk.f32.vlgmr.msra.gmra.mxu3 %vm133_vm2, %v7065_v57 }
 0x334   :  { %2393 = vmatpush.msrb.mxu2 %v2336_v19  ;;  %v2323_v44 = vpop.permute.xlu1 %2322  ;;  %v2329_v20 = vpop.permute.xlu0 %2328 }
 0x335   :  { %v2332_v58 = vsel %vm308_vm3, %v2323_v44, %v2325_v30  ;;  %v2330_v51 = vsel %vm308_vm3, %v2327_v22, %v2329_v20  ;;  %v2333_v38 = vsel %vm308_vm3, %v2329_v20, %v2323_v44  ;;  %v7404_v9 = vpop.permute.xlu2 %2806  ;;  %v8633_v30 = vld [vmem:[#allocation6_spill] sm:$0xff] }
 0x336   :  { %v2335_v57 = vmul.f32 %v2332_v58, %v6708_v33  ;;  %v2334_v55 = vmul.f32 %v2333_v38, %v6743_v50  ;;  %v2337_v43 = vmul.f32 %v2330_v51, %v8629_v3  ;;  %v8642_v20 = vld [vmem:[#allocation14_spill] sm:$0xff]  ;;  %v8643_v51 = vld [vmem:[#allocation15_spill] sm:$0xff] }
 0x338   :  { %2353 = vmatpush.msrb.mxu0 %v2334_v55  ;;  %2373 = vmatpush.msrb.mxu1 %v2335_v57  ;;  %v8644_v57 = vld [vmem:[#allocation16_spill] sm:$0xff] }
 0x339   :  { %2413 = vmatpush.msrb.mxu3 %v2337_v43  ;;  %v8645_v43 = vld [vmem:[#allocation17_spill] sm:$0xff] }
 0x33a   :  { %2473 = vmatpush.msra.mxu1 %v2435_v56  ;;  %6257 = vmatmul.msk.f32.vlgmr.msrb.gmra.mxu0 %vm133_vm2, %v8631_v41 }
 0x33b   :  { %6258 = vmatmul.msk.f32.vlgmr.msrb.gmra.mxu1 %vm133_vm2, %v8631_v41  ;;  %6259 = vmatmul.msk.f32.vlgmr.msrb.gmra.mxu2 %vm133_vm2, %v8631_v41 }
 0x33c   :  { %6260 = vmatmul.msk.f32.vlgmr.msrb.gmra.mxu3 %vm133_vm2, %v8631_v41  ;;  %2557 = vmatpush.msrb.mxu1 %v7273_v8  ;;  %v2429_v37 = vpop.permute.xlu1 %2428  ;;  %v2427_v40 = vpop.permute.xlu0 %2426  ;;  %v8635_v8 = vld [vmem:[#allocation27_spill] sm:$0xff] }
 0x33d   :  { %v2433_v1 = vsel %vm423_vm4, %v2429_v37, %v2423_v24  ;;  %v2430_v59 = vsel %vm423_vm4, %v2427_v40, %v2429_v37  ;;  %v2431_v60 = vsel %vm423_vm4, %v7355_v29, %v2427_v40  ;;  %v2613_v2 = vpop.permute.xlu2 %2612  ;;  %v8646_v37 = vld [vmem:[#allocation20_spill] sm:$0xff] }
 0x33e   :  { %v2434_v13 = vmul.f32 %v2433_v1, %v8632_v23  ;;  %v2436_v26 = vmul.f32 %v2431_v60, %v8633_v30  ;;  %v2437_v47 = vmul.f32 %v2430_v59, %v8634_v46  ;;  %v8647_v1 = vld [vmem:[#allocation30_spill] sm:$0xff] }
 0x340   :  { %2453 = vmatpush.msra.mxu0 %v2434_v13  ;;  %2493 = vmatpush.msra.mxu2 %v2436_v26 }
 0x341   :  { %2513 = vmatpush.msra.mxu3 %v2437_v47 }
 0x342   :  { %2537 = vmatpush.msrb.mxu0 %v7290_v7  ;;  %2577 = vmatpush.msrb.mxu2 %v7286_v61 }
 0x343   :  { %6261 = vmatmul.msk.f32.vlgmr.msra.gmra.mxu0 %vm133_vm2, %v8635_v8  ;;  %6262 = vmatmul.msk.f32.vlgmr.msra.gmra.mxu1 %vm133_vm2, %v8635_v8 }
 0x344   :  { %6263 = vmatmul.msk.f32.vlgmr.msra.gmra.mxu2 %vm133_vm2, %v8635_v8  ;;  %6264 = vmatmul.msk.f32.vlgmr.msra.gmra.mxu3 %vm133_vm2, %v8635_v8  ;;  %v2707_v29 = vpop.permute.xlu1 %2706  ;;  %v2607_v21 = vpop.permute.xlu0 %2606 }
 0x345   :  { %2597 = vmatpush.msrb.mxu3 %v7288_v5  ;;  %v2617_v7 = vsel %vm627_vm5, %v2613_v2, %v2607_v21  ;;  %v2711_v22 = vpop.permute.xlu2 %2710 }
 0x346   :  { %v2621_v62 = vmul.f32 %v2617_v7, %v8636_v31  ;;  %v8650_v7 = vld [vmem:[#allocation19_spill] sm:$0xff] }
 0x348   :  { %2697 = vmatpush.msra.mxu3 %v2621_v62 }
 0x34b   :  { %6265 = vmatmul.msk.f32.vlgmr.msrb.gmra.mxu0 %vm133_vm2, %v8637_v25  ;;  %6266 = vmatmul.msk.f32.vlgmr.msrb.gmra.mxu1 %vm133_vm2, %v8637_v25 }
 0x34c   :  { %6267 = vmatmul.msk.f32.vlgmr.msrb.gmra.mxu2 %vm133_vm2, %v8637_v25  ;;  %6268 = vmatmul.msk.f32.vlgmr.msrb.gmra.mxu3 %vm133_vm2, %v8637_v25  ;;  %v2611_v61 = vpop.permute.xlu1 %2610  ;;  %v2609_v5 = vpop.permute.xlu0 %2608 }
 0x34d   :  { %v2614_v39 = vsel %vm627_vm5, %v2611_v61, %v2613_v2  ;;  %v2615_v45 = vsel %vm627_vm5, %v2609_v5, %v2611_v61  ;;  %v2616_v52 = vsel %vm627_vm5, %v2607_v21, %v2609_v5  ;;  %v2809_v32 = vpop.permute.xlu2 %2808  ;;  %v8648_v2 = vld [vmem:[#allocation18_spill] sm:$0xff] }
 0x34e   :  { %v2620_v28 = vmul.f32 %v2614_v39, %v8638_v6  ;;  %v2618_v48 = vmul.f32 %v2616_v52, %v8639_v42  ;;  %v2619_v24 = vmul.f32 %v2615_v45, %v8640_v27  ;;  %v2816_v41 = vsel %vm857_vm7, %v7404_v9, %v2809_v32  ;;  %v8652_v45 = vld [vmem:[#allocation23_spill] sm:$0xff] }
 0x34f   :  { %v2818_v40 = vmul.f32 %v2816_v41, %v8646_v37 }
 0x350   :  { %2637 = vmatpush.msra.mxu0 %v2618_v48  ;;  %2657 = vmatpush.msra.mxu1 %v2619_v24  ;;  %v8654_v24 = vld [vmem:[#allocation32_spill] sm:$0xff] }
 0x351   :  { %2677 = vmatpush.msra.mxu2 %v2620_v28  ;;  %v8653_v28 = vld [vmem:[#allocation22_spill] sm:$0xff] }
 0x353   :  { %6269 = vmatmul.msk.f32.vlgmr.msra.gmra.mxu0 %vm133_vm2, %v8641_v54  ;;  %6270 = vmatmul.msk.f32.vlgmr.msra.gmra.mxu1 %vm133_vm2, %v8641_v54 }
 0x354   :  { %6271 = vmatmul.msk.f32.vlgmr.msra.gmra.mxu2 %vm133_vm2, %v8641_v54  ;;  %6272 = vmatmul.msk.f32.vlgmr.msra.gmra.mxu3 %vm133_vm2, %v8641_v54  ;;  %v2709_v53 = vpop.permute.xlu1 %2708  ;;  %v2713_v4 = vpop.permute.xlu0 %2712 }
 0x355   :  { %v2715_v63 = vsel %vm742_vm6, %v2709_v53, %v2711_v22  ;;  %v2716_v19 = vsel %vm742_vm6, %v2707_v29, %v2709_v53  ;;  %v2714_v11 = vsel %vm742_vm6, %v2711_v22, %v2713_v4  ;;  %v2717_v44 = vsel %vm742_vm6, %v2713_v4, %v2707_v29  ;;  %v8649_v29 = vld [vmem:[#allocation21_spill] sm:$0xff]  ;;  %v8651_v22 = vld [vmem:[#allocation31_spill] sm:$0xff]  ;;  %v8655_v4 = vld [vmem:[#allocation24_spill] sm:$0xff] }
 0x356   :  { %v2718_v58 = vmul.f32 %v2716_v19, %v8642_v20  ;;  %v2719_v38 = vmul.f32 %v2715_v63, %v8643_v51  ;;  %v2720_v55 = vmul.f32 %v2714_v11, %v8644_v57  ;;  %v2721_v56 = vmul.f32 %v2717_v44, %v8645_v43  ;;  %v8656_v19 = vld [vmem:[#allocation25_spill] sm:$0xff] }
 0x358   :  { %2737 = vmatpush.msrb.mxu0 %v2718_v58  ;;  %2757 = vmatpush.msrb.mxu1 %v2719_v38 }
 0x359   :  { %2777 = vmatpush.msrb.mxu2 %v2720_v55  ;;  %2797 = vmatpush.msrb.mxu3 %v2721_v56 }
 0x35a   :  { %2837 = vmatpush.msra.mxu0 %v2818_v40 }
 0x35b   :  { %6273 = vmatmul.msk.f32.vlgmr.msrb.gmra.mxu0 %vm133_vm2, %v8647_v1  ;;  %6274 = vmatmul.msk.f32.vlgmr.msrb.gmra.mxu1 %vm133_vm2, %v8647_v1 }
 0x35c   :  { %6275 = vmatmul.msk.f32.vlgmr.msrb.gmra.mxu2 %vm133_vm2, %v8647_v1  ;;  %6276 = vmatmul.msk.f32.vlgmr.msrb.gmra.mxu3 %vm133_vm2, %v8647_v1  ;;  %v2813_v59 = vpop.permute.xlu1 %2812  ;;  %v2811_v60 = vpop.permute.xlu0 %2810 }
 0x35d   :  { %v2817_v13 = vsel %vm857_vm7, %v2813_v59, %v7404_v9  ;;  %v2814_v26 = vsel %vm857_vm7, %v2811_v60, %v2813_v59  ;;  %v2815_v47 = vsel %vm857_vm7, %v2809_v32, %v2811_v60  ;;  %v2913_v9 = vpop.permute.xlu2 %2912 }
 0x35e   :  { %v2821_v8 = vmul.f32 %v2817_v13, %v8648_v2  ;;  %v2819_v21 = vmul.f32 %v2815_v47, %v8649_v29  ;;  %v2820_v62 = vmul.f32 %v2814_v26, %v8650_v7 }
 0x360   :  { %2857 = vmatpush.msra.mxu1 %v2819_v21  ;;  %2877 = vmatpush.msra.mxu2 %v2820_v62 }
 0x361   :  { %2897 = vmatpush.msra.mxu3 %v2821_v8 }
 0x363   :  { %6277 = vmatmul.msk.f32.vlgmr.msra.gmra.mxu0 %vm133_vm2, %v8651_v22  ;;  %6278 = vmatmul.msk.f32.vlgmr.msra.gmra.mxu1 %vm133_vm2, %v8651_v22 }
 0x364   :  { %6279 = vmatmul.msk.f32.vlgmr.msra.gmra.mxu2 %vm133_vm2, %v8651_v22  ;;  %6280 = vmatmul.msk.f32.vlgmr.msra.gmra.mxu3 %vm133_vm2, %v8651_v22  ;;  %v2911_v25 = vpop.permute.xlu1 %2910  ;;  %v2907_v61 = vpop.permute.xlu0 %2906 }
 0x365   :  { %v2914_v5 = vsel %vm972_vm8, %v2911_v25, %v2913_v9  ;;  %v2917_v39 = vsel %vm972_vm8, %v2913_v9, %v2907_v61 }
 0x366   :  { %v2920_v52 = vmul.f32 %v2914_v5, %v8652_v45  ;;  %v2921_v48 = vmul.f32 %v2917_v39, %v8653_v28 }
 0x368   :  { %2977 = vmatpush.msrb.mxu2 %v2920_v52  ;;  %2997 = vmatpush.msrb.mxu3 %v2921_v48 }
 0x36c   :  { %6283 = vmatmul.msk.f32.vlgmr.msrb.gmra.mxu2 %vm133_vm2, %v8654_v24  ;;  %6284 = vmatmul.msk.f32.vlgmr.msrb.gmra.mxu3 %vm133_vm2, %v8654_v24  ;;  %v2909_v54 = vpop.permute.xlu0 %2908 }
 0x36d   :  { %v2915_v32 = vsel %vm972_vm8, %v2909_v54, %v2911_v25  ;;  %v2916_v53 = vsel %vm972_vm8, %v2907_v61, %v2909_v54 }
 0x36e   :  { %v2918_v63 = vmul.f32 %v2916_v53, %v8655_v4  ;;  %v2919_v11 = vmul.f32 %v2915_v32, %v8656_v19 }
 0x370   :  { %2937 = vmatpush.msrb.mxu0 %v2918_v63  ;;  %2957 = vmatpush.msrb.mxu1 %v2919_v11 }
 0x371   :  { %6281 = vmatmul.msk.f32.vlgmr.msrb.gmra.mxu0 %vm133_vm2, %v8654_v24  ;;  %6282 = vmatmul.msk.f32.vlgmr.msrb.gmra.mxu1 %vm133_vm2, %v8654_v24 }
 0x38f   :  { %v2199_v44 = vpop.f32.mrf.mxu1 }
 0x3a6   :  { %v2179_v58 = vpop.f32.mrf.mxu0 }
 0x3ad   :  { %v2219_v38 = vpop.f32.mrf.mxu2  ;;  %v2239_v55 = vpop.f32.mrf.mxu3 }
 0x3af   :  { %v2259_v56 = vpop.f32.mrf.mxu0  ;;  %v2279_v41 = vpop.f32.mrf.mxu1 }
 0x3b0   :  { %v2280_v11 = vadd.f32 %v2279_v41, %v2199_v44  ;;  %v2260_v19 = vadd.f32 %v2259_v56, %v2179_v58 }
 0x3b6   :  { %v2299_v40 = vpop.f32.mrf.mxu2  ;;  %v2319_v1 = vpop.f32.mrf.mxu3 }
 0x3b7   :  { %v2355_v59 = vpop.f32.mrf.mxu0  ;;  %v2300_v53 = vadd.f32 %v2299_v40, %v2219_v38  ;;  %v2320_v28 = vadd.f32 %v2319_v1, %v2239_v55 }
 0x3b8   :  { %v2375_v60 = vpop.f32.mrf.mxu1  ;;  %v2418_v31 = vadd.f32 %v2355_v59, %v2260_v19 }
 0x3b9   :  { %v2419_v45 = vadd.f32 %v2375_v60, %v2280_v11 }
 0x3be   :  { %v2395_v13 = vpop.f32.mrf.mxu2 }
 0x3bf   :  { %v2415_v26 = vpop.f32.mrf.mxu3  ;;  %v2420_v4 = vadd.f32 %v2395_v13, %v2300_v53 }
 0x3c0   :  { %v2475_v47 = vpop.f32.mrf.mxu1  ;;  %v2455_v8 = vpop.f32.mrf.mxu0  ;;  %v2421_v51 = vadd.f32 %v2415_v26, %v2320_v28 }
 0x3c1   :  { %v2519_v29 = vadd.f32 %v2475_v47, %v2419_v45  ;;  %v2518_v42 = vadd.f32 %v2455_v8, %v2418_v31  ;;  %v6155_v47 = vld [vmem:[%s8510_s9 + $0x20] sm:$0xff] }
 0x3c7   :  { %v2495_v21 = vpop.f32.mrf.mxu2  ;;  %v2515_v62 = vpop.f32.mrf.mxu3 }
 0x3c8   :  { %v2559_v22 = vpop.f32.mrf.mxu1  ;;  %v2539_v9 = vpop.f32.mrf.mxu0  ;;  %v2520_v2 = vadd.f32 %v2495_v21, %v2420_v4  ;;  %v2521_v6 = vadd.f32 %v2515_v62, %v2421_v51 }
 0x3c9   :  { %v2603_v43 = vadd.f32 %v2559_v22, %v2519_v29  ;;  %v2602_v44 = vadd.f32 %v2539_v9, %v2518_v42 }
 0x3cf   :  { %v2579_v25 = vpop.f32.mrf.mxu2  ;;  %v2599_v61 = vpop.f32.mrf.mxu3 }
 0x3d0   :  { %v2659_v5 = vpop.f32.mrf.mxu1  ;;  %v2639_v39 = vpop.f32.mrf.mxu0  ;;  %v2604_v12 = vadd.f32 %v2579_v25, %v2520_v2  ;;  %v2605_v38 = vadd.f32 %v2599_v61, %v2521_v6 }
 0x3d1   :  { %v2703_v20 = vadd.f32 %v2659_v5, %v2603_v43  ;;  %v2702_v58 = vadd.f32 %v2639_v39, %v2602_v44  ;;  %v7618_v39 = vld [vmem:[%s8507_s6 + $0x8] sm:$0xff] }
 0x3d7   :  { %v2679_v52 = vpop.f32.mrf.mxu2  ;;  %v2699_v48 = vpop.f32.mrf.mxu3 }
 0x3d8   :  { %v2759_v24 = vpop.f32.mrf.mxu1  ;;  %v2739_v63 = vpop.f32.mrf.mxu0  ;;  %v2704_v55 = vadd.f32 %v2679_v52, %v2604_v12  ;;  %v2705_v41 = vadd.f32 %v2699_v48, %v2605_v38 }
 0x3d9   :  { %v2803_v40 = vadd.f32 %v2759_v24, %v2703_v20  ;;  %v2802_v28 = vadd.f32 %v2739_v63, %v2702_v58 }
 0x3df   :  { %v2779_v54 = vpop.f32.mrf.mxu2  ;;  %v2799_v32 = vpop.f32.mrf.mxu3 }
 0x3e0   :  { %v2859_v37 = vpop.f32.mrf.mxu1  ;;  %v2839_v27 = vpop.f32.mrf.mxu0  ;;  %v2804_v56 = vadd.f32 %v2779_v54, %v2704_v55  ;;  %v2805_v60 = vadd.f32 %v2799_v32, %v2705_v41 }
 0x3e1   :  { %v2903_v1 = vadd.f32 %v2859_v37, %v2803_v40  ;;  %v2902_v2 = vadd.f32 %v2839_v27, %v2802_v28 }
 0x3e7   :  { %v2879_v7 = vpop.f32.mrf.mxu2  ;;  %v2899_v57 = vpop.f32.mrf.mxu3 }
 0x3e8   :  { %v2904_v19 = vadd.f32 %v2879_v7, %v2804_v56  ;;  %v2905_v51 = vadd.f32 %v2899_v57, %v2805_v60 }
 0x3ee   :  { %v2959_v45 = vpop.f32.mrf.mxu1  ;;  %v2939_v43 = vpop.f32.mrf.mxu0 }
 0x3ef   :  { %v3003_v13 = vadd.f32 %v2959_v45, %v2903_v1  ;;  %v2979_v4 = vpop.f32.mrf.mxu2  ;;  %v2999_v29 = vpop.f32.mrf.mxu3  ;;  %v3002_v12 = vadd.f32 %v2939_v43, %v2902_v2  ;;  %v7646_v45 = vld [vmem:[%s8507_s6] sm:$0xff] }
 0x3f0   :  { %v3004_v6 = vadd.f32 %v2979_v4, %v2904_v19  ;;  %v3005_v20 = vadd.f32 %v2999_v29, %v2905_v51 }
 0x3f1   :  { %v3007_v31 = vadd.f32 %v3003_v13, %v7268_v0  ;;  %v3006_v27 = vadd.f32 %v3002_v12, %v7268_v0 }
 0x3f2   :  { %v3008_v57 = vadd.f32 %v3004_v6, %v7268_v0  ;;  %v3009_v37 = vadd.f32 %v3005_v20, %v7268_v0  ;;  %v6154_v0 = vld [vmem:[%s8510_s9 + $0x18] sm:$0xff]  ;;  %v7669_v6 = vld [vmem:[%s8507_s6 + $0x10] sm:$0xff] }
 0x3f3   :  { %v7531_v42 = vmax.f32 %v3007_v31, 0.0  ;;  %v7546_v26 = vmax.f32 %v3006_v27, 0.0 }
 0x3f4   :  { %v7542_v7 = vmax.f32 %v3008_v57, 0.0  ;;  %v7544_v59 = vmax.f32 %v3009_v37, 0.0 }
 0x3f5   :  { %3217 = vrot.lane.b32.xlu0 %v7531_v42, %s6508_s14  ;;  %3016 = vrot.lane.b32.xlu2 %v7531_v42, %s6507_s28 }
 0x3f6   :  { %3033 = vrot.lane.b32.xlu1 %v7531_v42, %s6506_s2 }
 0x3fd   :  { %3037 = vrot.lane.b32.xlu0 %v7544_v59, %s6506_s2  ;;  %3035 = vrot.lane.b32.xlu2 %v7542_v7, %s6506_s2 }
 0x3fe   :  { %3031 = vrot.lane.b32.xlu1 %v7546_v26, %s6506_s2 }
 0x405   :  { %3018 = vrot.lane.b32.xlu0 %v7542_v7, %s6507_s28  ;;  %3014 = vrot.lane.b32.xlu2 %v7546_v26, %s6507_s28 }
 0x406   :  { %3322 = vrot.lane.b32.xlu1 %v7531_v42, %s6509_s15 }
 0x40d   :  { %3215 = vrot.lane.b32.xlu0 %v7546_v26, %s6508_s14  ;;  %3221 = vrot.lane.b32.xlu2 %v7544_v59, %s6508_s14 }
 0x40e   :  { %3020 = vrot.lane.b32.xlu1 %v7544_v59, %s6507_s28 }
 0x415   :  { %3326 = vrot.lane.b32.xlu0 %v7544_v59, %s6509_s15  ;;  %3324 = vrot.lane.b32.xlu2 %v7542_v7, %s6509_s15 }
 0x416   :  { %3219 = vrot.lane.b32.xlu1 %v7542_v7, %s6508_s14 }
 0x41d   :  { %3619 = vrot.lane.b32.xlu0 %v7546_v26, %s6511_s17  ;;  %3514 = vrot.lane.b32.xlu2 %v7546_v26, %s6510_s16 }
 0x41e   :  { %3320 = vrot.lane.b32.xlu1 %v7546_v26, %s6509_s15 }
 0x425   :  { %3518 = vrot.lane.b32.xlu0 %v7542_v7, %s6510_s16  ;;  %3516 = vrot.lane.b32.xlu2 %v7531_v42, %s6510_s16 }
 0x426   :  { %3724 = vrot.lane.b32.xlu1 %v7546_v26, %s6512_s18 }
 0x42d   :  { %3621 = vrot.lane.b32.xlu0 %v7531_v42, %s6511_s17  ;;  %3625 = vrot.lane.b32.xlu2 %v7544_v59, %s6511_s17 }
 0x42e   :  { %3520 = vrot.lane.b32.xlu1 %v7544_v59, %s6510_s16 }
 0x435   :  { %3730 = vrot.lane.b32.xlu0 %v7544_v59, %s6512_s18  ;;  %3728 = vrot.lane.b32.xlu2 %v7542_v7, %s6512_s18 }
 0x436   :  { %3623 = vrot.lane.b32.xlu1 %v7542_v7, %s6511_s17 }
 0x43d   :  { %3833 = vrot.lane.b32.xlu0 %v7542_v7, %s6513_s19  ;;  %3829 = vrot.lane.b32.xlu2 %v7546_v26, %s6513_s19 }
 0x43e   :  { %3726 = vrot.lane.b32.xlu1 %v7531_v42, %s6512_s18 }
 0x445   :  { %3936 = vperm.xlu0 %6422, %v6154_v0   ;;  %3831 = vrot.lane.b32.xlu2 %v7531_v42, %s6513_s19 }
 0x446   :  { %3835 = vrot.lane.b32.xlu1 %v7544_v59, %s6513_s19 }
 0x44e   :  { %3950 = vperm.xlu1 %6423, %v6155_v47  }
 0x44f   :  { %v3017_v8 = vpop.permute.xlu2 %3016 }
 0x457   :  { %v3036_v21 = vpop.permute.xlu2 %3035 }
 0x45f   :  { %v3015_v62 = vpop.permute.xlu2 %3014 }
 0x460   :  { %v3024_v54 = vsel %vm86_vm1, %v3015_v62, %v3017_v8 }
 0x461   :  { %v3027_v44 = vmul.f32 %v3024_v54, %v6714_v35 }
 0x467   :  { %v3218_v22 = vpop.permute.xlu0 %3217  ;;  %v3222_v61 = vpop.permute.xlu2 %3221 }
 0x468   :  { %v3034_v9 = vpop.permute.xlu1 %3033 }
 0x469   :  { %v3040_v25 = vsel %vm113_vm0, %v3034_v9, %v3036_v21 }
 0x46a   :  { %v3045_v5 = vmul.f32 %v3040_v25, %v6680_v16 }
 0x46c   :  { %3107 = vmatpush.msra.mxu2 %v3045_v5 }
 0x46d   :  { %6288 = vmatmul.msk.f32.vlgmr.msra.gmra.mxu2 %vm133_vm2, %v7618_v39 }
 0x46f   :  { %v3038_v52 = vpop.permute.xlu0 %3037  ;;  %v3325_v40 = vpop.permute.xlu2 %3324 }
 0x470   :  { %v3032_v48 = vpop.permute.xlu1 %3031  ;;  %v3039_v24 = vsel %vm113_vm0, %v3036_v21, %v3038_v52 }
 0x471   :  { %v3041_v32 = vsel %vm113_vm0, %v3032_v48, %v3034_v9  ;;  %v3042_v53 = vsel %vm113_vm0, %v3038_v52, %v3032_v48  ;;  %v3046_v63 = vmul.f32 %v3039_v24, %v6682_v17  ;;  %v8657_v24 = vld [vmem:[#allocation9_spill] sm:$0xff] }
 0x472   :  { %v3044_v11 = vmul.f32 %v3041_v32, %v6678_v15  ;;  %v3043_v38 = vmul.f32 %v3042_v53, %v6676_v14  ;;  %v7706_v32 = vld [vmem:[%s8507_s6 + $0x18] sm:$0xff] }
 0x473   :  { %3127 = vmatpush.msra.mxu3 %v3046_v63  ;;  %8658 = vst [vmem:[#allocation26_spill] sm:$0xff] %v7706_v32  ;;  %v8659_v63 = vld [vmem:[#allocation12_spill] sm:$0xff] }
 0x474   :  { %3067 = vmatpush.msra.mxu0 %v3043_v38  ;;  %3087 = vmatpush.msra.mxu1 %v3044_v11 }
 0x475   :  { %6287 = vmatmul.msk.f32.vlgmr.msra.gmra.mxu1 %vm133_vm2, %v7618_v39  ;;  %6286 = vmatmul.msk.f32.vlgmr.msra.gmra.mxu0 %vm133_vm2, %v7618_v39 }
 0x476   :  { %3170 = vmatpush.msrb.mxu1 %v3027_v44  ;;  %6289 = vmatmul.msk.f32.vlgmr.msra.gmra.mxu3 %vm133_vm2, %v7618_v39 }
 0x477   :  { %v3019_v55 = vpop.permute.xlu0 %3018  ;;  %v7650_v56 = vpop.permute.xlu2 %3514 }
 0x478   :  { %v3323_v41 = vpop.permute.xlu1 %3322  ;;  %v3023_v1 = vsel %vm86_vm1, %v3017_v8, %v3019_v55 }
 0x479   :  { %v3028_v58 = vmul.f32 %v3023_v1, %v6684_v18  ;;  %v3329_v27 = vsel %vm423_vm4, %v3323_v41, %v3325_v40  ;;  %v7728_v1 = vld [vmem:[%s8507_s6 + $0x20] sm:$0xff] }
 0x47a   :  { %v3334_v9 = vmul.f32 %v3329_v27, %v8633_v30  ;;  %8661 = vst [vmem:[#allocation27_spill] sm:$0xff] %v7728_v1 }
 0x47b   :  { %3190 = vmatpush.msrb.mxu2 %v3028_v58 }
 0x47c   :  { %6292 = vmatmul.msk.f32.vlgmr.msrb.gmra.mxu2 %vm133_vm2, %v7646_v45 }
 0x47d   :  { %6291 = vmatmul.msk.f32.vlgmr.msrb.gmra.mxu1 %vm133_vm2, %v7646_v45 }
 0x47f   :  { %v3216_v60 = vpop.permute.xlu0 %3215  ;;  %v3517_v20 = vpop.permute.xlu2 %3516 }
 0x480   :  { %v3021_v13 = vpop.permute.xlu1 %3020  ;;  %v3225_v28 = vsel %vm308_vm3, %v3216_v60, %v3218_v22  ;;  %v3226_v4 = vsel %vm308_vm3, %v3222_v61, %v3216_v60  ;;  %v3524_v53 = vsel %vm627_vm5, %v7650_v56, %v3517_v20 }
 0x481   :  { %v3022_v29 = vsel %vm86_vm1, %v3019_v55, %v3021_v13  ;;  %v3025_v19 = vsel %vm86_vm1, %v3021_v13, %v3015_v62  ;;  %v3228_v51 = vmul.f32 %v3225_v28, %v6708_v33  ;;  %v3227_v2 = vmul.f32 %v3226_v4, %v6743_v50  ;;  %v8660_v55 = vld [vmem:[#allocation13_spill] sm:$0xff] }
 0x482   :  { %v3026_v43 = vmul.f32 %v3025_v19, %v6712_v34  ;;  %v3029_v31 = vmul.f32 %v3022_v29, %v6716_v36  ;;  %v3526_v11 = vmul.f32 %v3524_v53, %v8659_v63  ;;  %v8662_v19 = vld [vmem:[#allocation14_spill] sm:$0xff]  ;;  %v7778_v53 = vld [vmem:[%s8507_s6 + $0x30] sm:$0xff] }
 0x483   :  { %3271 = vmatpush.msra.mxu1 %v3228_v51  ;;  %8670 = vst [vmem:[#allocation29_spill] sm:$0xff] %v7778_v53 }
 0x484   :  { %3150 = vmatpush.msrb.mxu0 %v3026_v43  ;;  %3210 = vmatpush.msrb.mxu3 %v3029_v31  ;;  %v8663_v31 = vld [vmem:[#allocation10_spill] sm:$0xff] }
 0x485   :  { %6290 = vmatmul.msk.f32.vlgmr.msrb.gmra.mxu0 %vm133_vm2, %v7646_v45  ;;  %6293 = vmatmul.msk.f32.vlgmr.msrb.gmra.mxu3 %vm133_vm2, %v7646_v45 }
 0x486   :  { %3251 = vmatpush.msra.mxu0 %v3227_v2  ;;  %6296 = vmatmul.msk.f32.vlgmr.msra.gmra.mxu1 %vm133_vm2, %v7669_v6 }
 0x487   :  { %v3327_v12 = vpop.permute.xlu0 %3326 }
 0x488   :  { %v3220_v57 = vpop.permute.xlu1 %3219  ;;  %v3328_v37 = vsel %vm423_vm4, %v3325_v40, %v3327_v12 }
 0x489   :  { %v3223_v0 = vsel %vm308_vm3, %v3220_v57, %v3222_v61  ;;  %v3224_v47 = vsel %vm308_vm3, %v3218_v22, %v3220_v57  ;;  %v3335_v62 = vmul.f32 %v3328_v37, %v8634_v46  ;;  %v3626_v61 = vpop.permute.xlu2 %3625  ;;  %v7753_v57 = vld [vmem:[%s8507_s6 + $0x28] sm:$0xff]  ;;  %v8666_v37 = vld [vmem:[#allocation17_spill] sm:$0xff] }
 0x48a   :  { %v3229_v8 = vmul.f32 %v3224_v47, %v6741_v49  ;;  %v3230_v21 = vmul.f32 %v3223_v0, %v8629_v3  ;;  %8665 = vst [vmem:[#allocation28_spill] sm:$0xff] %v7753_v57 }
 0x48c   :  { %3291 = vmatpush.msra.mxu2 %v3229_v8  ;;  %3311 = vmatpush.msra.mxu3 %v3230_v21 }
 0x48d   :  { %6295 = vmatmul.msk.f32.vlgmr.msra.gmra.mxu0 %vm133_vm2, %v7669_v6  ;;  %6297 = vmatmul.msk.f32.vlgmr.msra.gmra.mxu2 %vm133_vm2, %v7669_v6 }
 0x48e   :  { %6298 = vmatmul.msk.f32.vlgmr.msra.gmra.mxu3 %vm133_vm2, %v7669_v6  ;;  %3396 = vmatpush.msrb.mxu2 %v3334_v9 }
 0x48f   :  { %3416 = vmatpush.msrb.mxu3 %v3335_v62  ;;  %v3620_v22 = vpop.permute.xlu0 %3619 }
 0x490   :  { %3485 = vmatpush.msra.mxu2 %v7542_v7  ;;  %v3321_v25 = vpop.permute.xlu1 %3320  ;;  %v3630_v43 = vsel %vm742_vm6, %v3626_v61, %v3620_v22 }
 0x491   :  { %3505 = vmatpush.msra.mxu3 %v7544_v59  ;;  %v3330_v5 = vsel %vm423_vm4, %v3321_v25, %v3323_v41  ;;  %v3331_v52 = vsel %vm423_vm4, %v3327_v12, %v3321_v25  ;;  %v3729_v58 = vpop.permute.xlu2 %3728  ;;  %v3634_v27 = vmul.f32 %v3630_v43, %v8666_v37  ;;  %v8673_v43 = vld [vmem:[#allocation21_spill] sm:$0xff] }
 0x492   :  { %v3332_v48 = vmul.f32 %v3331_v52, %v8632_v23  ;;  %v3333_v54 = vmul.f32 %v3330_v5, %v8657_v24  ;;  %v8668_v5 = vld [vmem:[#allocation15_spill] sm:$0xff] }
 0x494   :  { %3356 = vmatpush.msrb.mxu0 %v3332_v48  ;;  %3376 = vmatpush.msrb.mxu1 %v3333_v54  ;;  %v8669_v48 = vld [vmem:[#allocation16_spill] sm:$0xff] }
 0x495   :  { %6300 = vmatmul.msk.f32.vlgmr.msrb.gmra.mxu0 %vm133_vm2, %v7706_v32  ;;  %6301 = vmatmul.msk.f32.vlgmr.msrb.gmra.mxu1 %vm133_vm2, %v7706_v32 }
 0x496   :  { %6302 = vmatmul.msk.f32.vlgmr.msrb.gmra.mxu2 %vm133_vm2, %v7706_v32  ;;  %6303 = vmatmul.msk.f32.vlgmr.msrb.gmra.mxu3 %vm133_vm2, %v7706_v32 }
 0x497   :  { %3445 = vmatpush.msra.mxu0 %v7546_v26  ;;  %3465 = vmatpush.msra.mxu1 %v7531_v42  ;;  %v3519_v38 = vpop.permute.xlu0 %3518 }
 0x498   :  { %v3725_v40 = vpop.permute.xlu1 %3724  ;;  %v3523_v44 = vsel %vm627_vm5, %v3517_v20, %v3519_v38  ;;  %v8664_v20 = vld [vmem:[#allocation11_spill] sm:$0xff] }
 0x499   :  { %3550 = vmatpush.msrb.mxu0 %v3526_v11  ;;  %v3527_v41 = vmul.f32 %v3523_v44, %v8660_v55  ;;  %v8671_v11 = vld [vmem:[#allocation19_spill] sm:$0xff] }
 0x49b   :  { %3570 = vmatpush.msrb.mxu1 %v3527_v41 }
 0x49d   :  { %6305 = vmatmul.msk.f32.vlgmr.msra.gmra.mxu0 %vm133_vm2, %v7728_v1  ;;  %6306 = vmatmul.msk.f32.vlgmr.msra.gmra.mxu1 %vm133_vm2, %v7728_v1 }
 0x49e   :  { %6307 = vmatmul.msk.f32.vlgmr.msra.gmra.mxu2 %vm133_vm2, %v7728_v1  ;;  %6308 = vmatmul.msk.f32.vlgmr.msra.gmra.mxu3 %vm133_vm2, %v7728_v1 }
 0x49f   :  { %v3622_v60 = vpop.permute.xlu0 %3621 }
 0x4a0   :  { %v3521_v13 = vpop.permute.xlu1 %3520  ;;  %v3629_v28 = vsel %vm742_vm6, %v3620_v22, %v3622_v60  ;;  %v8667_v22 = vld [vmem:[#allocation18_spill] sm:$0xff] }
 0x4a1   :  { %v3522_v4 = vsel %vm627_vm5, %v3519_v38, %v3521_v13  ;;  %v3525_v29 = vsel %vm627_vm5, %v3521_v13, %v7650_v56  ;;  %v3631_v51 = vmul.f32 %v3629_v28, %v8662_v19  ;;  %v3830_v56 = vpop.permute.xlu2 %3829 }
 0x4a2   :  { %v3528_v2 = vmul.f32 %v3522_v4, %v8663_v31  ;;  %v3529_v12 = vmul.f32 %v3525_v29, %v8664_v20  ;;  %v8672_v29 = vld [vmem:[#allocation20_spill] sm:$0xff] }
 0x4a3   :  { %3655 = vmatpush.msra.mxu0 %v3631_v51 }
 0x4a4   :  { %3590 = vmatpush.msrb.mxu2 %v3528_v2  ;;  %3610 = vmatpush.msrb.mxu3 %v3529_v12  ;;  %v7802_v12 = vld [vmem:[%s8507_s6 + $0x38] sm:$0xff] }
 0x4a5   :  { %6310 = vmatmul.msk.f32.vlgmr.msrb.gmra.mxu0 %vm133_vm2, %v7753_v57  ;;  %6311 = vmatmul.msk.f32.vlgmr.msrb.gmra.mxu1 %vm133_vm2, %v7753_v57  ;;  %8674 = vst [vmem:[#allocation30_spill] sm:$0xff] %v7802_v12 }
 0x4a6   :  { %6312 = vmatmul.msk.f32.vlgmr.msrb.gmra.mxu2 %vm133_vm2, %v7753_v57  ;;  %6313 = vmatmul.msk.f32.vlgmr.msrb.gmra.mxu3 %vm133_vm2, %v7753_v57 }
 0x4a7   :  { %3715 = vmatpush.msra.mxu3 %v3634_v27  ;;  %v3731_v0 = vpop.permute.xlu0 %3730  ;;  %v8675_v27 = vld [vmem:[#allocation25_spill] sm:$0xff] }
 0x4a8   :  { %v3624_v47 = vpop.permute.xlu1 %3623  ;;  %v3732_v8 = vsel %vm857_vm7, %v3729_v58, %v3731_v0  ;;  %v3735_v21 = vsel %vm857_vm7, %v3731_v0, %v3725_v40 }
 0x4a9   :  { %v3627_v62 = vsel %vm742_vm6, %v3624_v47, %v3626_v61  ;;  %v3628_v9 = vsel %vm742_vm6, %v3622_v60, %v3624_v47  ;;  %v3739_v25 = vmul.f32 %v3735_v21, %v8667_v22  ;;  %v3738_v38 = vmul.f32 %v3732_v8, %v8671_v11  ;;  %v3832_v61 = vpop.permute.xlu2 %3831 }
 0x4aa   :  { %v3632_v52 = vmul.f32 %v3628_v9, %v8668_v5  ;;  %v3633_v54 = vmul.f32 %v3627_v62, %v8669_v48  ;;  %v3839_v4 = vsel %vm972_vm8, %v3830_v56, %v3832_v61  ;;  %v8677_v62 = vld [vmem:[#allocation23_spill] sm:$0xff] }
 0x4ab   :  { %3820 = vmatpush.msrb.mxu3 %v3739_v25  ;;  %v8678_v25 = vld [vmem:[#allocation22_spill] sm:$0xff] }
 0x4ac   :  { %3675 = vmatpush.msra.mxu1 %v3632_v52  ;;  %3695 = vmatpush.msra.mxu2 %v3633_v54  ;;  %v7825_v54 = vld [vmem:[%s8507_s6 + $0x40] sm:$0xff] }
 0x4ad   :  { %6315 = vmatmul.msk.f32.vlgmr.msra.gmra.mxu0 %vm133_vm2, %v7778_v53  ;;  %6316 = vmatmul.msk.f32.vlgmr.msra.gmra.mxu1 %vm133_vm2, %v7778_v53  ;;  %8679 = vst [vmem:[#allocation31_spill] sm:$0xff] %v7825_v54 }
 0x4ae   :  { %6317 = vmatmul.msk.f32.vlgmr.msra.gmra.mxu2 %vm133_vm2, %v7778_v53  ;;  %6318 = vmatmul.msk.f32.vlgmr.msra.gmra.mxu3 %vm133_vm2, %v7778_v53 }
 0x4af   :  { %3800 = vmatpush.msrb.mxu2 %v3738_v38  ;;  %v3834_v44 = vpop.permute.xlu0 %3833 }
 0x4b0   :  { %v3727_v41 = vpop.permute.xlu1 %3726  ;;  %v3838_v60 = vsel %vm972_vm8, %v3832_v61, %v3834_v44 }
 0x4b1   :  { %v3733_v13 = vsel %vm857_vm7, %v3727_v41, %v3729_v58  ;;  %v3734_v28 = vsel %vm857_vm7, %v3725_v40, %v3727_v41  ;;  %v3842_v0 = vmul.f32 %v3838_v60, %v8675_v27  ;;  %v8676_v58 = vld [vmem:[#allocation24_spill] sm:$0xff] }
 0x4b2   :  { %v3736_v51 = vmul.f32 %v3734_v28, %v8672_v29  ;;  %v3737_v2 = vmul.f32 %v3733_v13, %v8673_v43  ;;  %v3841_v47 = vmul.f32 %v3839_v4, %v8676_v58 }
 0x4b4   :  { %3760 = vmatpush.msrb.mxu0 %v3736_v51  ;;  %3780 = vmatpush.msrb.mxu1 %v3737_v2 }
 0x4b5   :  { %6320 = vmatmul.msk.f32.vlgmr.msrb.gmra.mxu0 %vm133_vm2, %v7802_v12  ;;  %6321 = vmatmul.msk.f32.vlgmr.msrb.gmra.mxu1 %vm133_vm2, %v7802_v12 }
 0x4b6   :  { %6322 = vmatmul.msk.f32.vlgmr.msrb.gmra.mxu2 %vm133_vm2, %v7802_v12  ;;  %6323 = vmatmul.msk.f32.vlgmr.msrb.gmra.mxu3 %vm133_vm2, %v7802_v12 }
 0x4b7   :  { %3865 = vmatpush.msra.mxu0 %v3841_v47  ;;  %3885 = vmatpush.msra.mxu1 %v3842_v0 }
 0x4b8   :  { %v3836_v40 = vpop.permute.xlu1 %3835 }
 0x4b9   :  { %3971 = vmatpush.msrb.mxu0 %v7546_v26  ;;  %3991 = vmatpush.msrb.mxu1 %v7531_v42  ;;  %v3837_v8 = vsel %vm972_vm8, %v3834_v44, %v3836_v40  ;;  %v3840_v21 = vsel %vm972_vm8, %v3836_v40, %v3830_v56  ;;  %v3947_v42 = vld [vmem:[%s8508_s7] sm:$0xff] }
 0x4ba   :  { %v3843_v9 = vmul.f32 %v3837_v8, %v8677_v62  ;;  %v3844_v52 = vmul.f32 %v3840_v21, %v8678_v25 }
 0x4bc   :  { %3905 = vmatpush.msra.mxu2 %v3843_v9  ;;  %3925 = vmatpush.msra.mxu3 %v3844_v52 }
 0x4bd   :  { %6325 = vmatmul.msk.f32.vlgmr.msra.gmra.mxu0 %vm133_vm2, %v7825_v54  ;;  %6326 = vmatmul.msk.f32.vlgmr.msra.gmra.mxu1 %vm133_vm2, %v7825_v54 }
 0x4be   :  { %6327 = vmatmul.msk.f32.vlgmr.msra.gmra.mxu2 %vm133_vm2, %v7825_v54  ;;  %6328 = vmatmul.msk.f32.vlgmr.msra.gmra.mxu3 %vm133_vm2, %v7825_v54 }
 0x4bf   :  { %4011 = vmatpush.msrb.mxu2 %v7542_v7  ;;  %4031 = vmatpush.msrb.mxu3 %v7544_v59 }
 0x4c5   :  { %6329 = vmatmul.msk.f32.vlgmr.msrb.gmra.mxu0 %vm133_vm2, %v3947_v42  ;;  %6330 = vmatmul.msk.f32.vlgmr.msrb.gmra.mxu1 %vm133_vm2, %v3947_v42 }
 0x4c6   :  { %6331 = vmatmul.msk.f32.vlgmr.msrb.gmra.mxu2 %vm133_vm2, %v3947_v42  ;;  %6332 = vmatmul.msk.f32.vlgmr.msrb.gmra.mxu3 %vm133_vm2, %v3947_v42 }
 0x4f0   :  { %v3109_v38 = vpop.f32.mrf.mxu2 }
 0x4f2   :  { %v3089_v26 = vpop.f32.mrf.mxu1  ;;  %v3069_v56 = vpop.f32.mrf.mxu0 }
 0x4f9   :  { %v3129_v61 = vpop.f32.mrf.mxu3 }
 0x4fa   :  { %v3172_v44 = vpop.f32.mrf.mxu1 }
 0x4fb   :  { %v3173_v62 = vadd.f32 %v3172_v44, %v3089_v26 }
 0x4ff   :  { %v3192_v41 = vpop.f32.mrf.mxu2 }
 0x500   :  { %v3193_v5 = vadd.f32 %v3192_v41, %v3109_v38 }
 0x502   :  { %v3152_v7 = vpop.f32.mrf.mxu0 }
 0x503   :  { %v3273_v60 = vpop.f32.mrf.mxu1  ;;  %v3153_v11 = vadd.f32 %v3152_v7, %v3069_v56 }
 0x504   :  { %v3317_v12 = vadd.f32 %v3273_v60, %v3173_v62 }
 0x508   :  { %v3212_v59 = vpop.f32.mrf.mxu3 }
 0x509   :  { %v3213_v19 = vadd.f32 %v3212_v59, %v3129_v61 }
 0x50a   :  { %v3253_v13 = vpop.f32.mrf.mxu0 }
 0x50b   :  { %v3316_v57 = vadd.f32 %v3253_v13, %v3153_v11 }
 0x510   :  { %v3293_v28 = vpop.f32.mrf.mxu2 }
 0x511   :  { %v3313_v4 = vpop.f32.mrf.mxu3  ;;  %v3318_v63 = vadd.f32 %v3293_v28, %v3193_v5 }
 0x512   :  { %v3358_v51 = vpop.f32.mrf.mxu0  ;;  %v3378_v2 = vpop.f32.mrf.mxu1  ;;  %v3319_v31 = vadd.f32 %v3313_v4, %v3213_v19 }
 0x513   :  { %v3422_v43 = vadd.f32 %v3378_v2, %v3317_v12  ;;  %v3421_v1 = vadd.f32 %v3358_v51, %v3316_v57 }
 0x519   :  { %v3398_v0 = vpop.f32.mrf.mxu2  ;;  %v3418_v47 = vpop.f32.mrf.mxu3 }
 0x51a   :  { %v3447_v40 = vpop.f32.mrf.mxu0  ;;  %v3467_v8 = vpop.f32.mrf.mxu1  ;;  %v3423_v32 = vadd.f32 %v3398_v0, %v3318_v63  ;;  %v3424_v46 = vadd.f32 %v3418_v47, %v3319_v31 }
 0x51b   :  { %v3511_v48 = vadd.f32 %v3467_v8, %v3422_v43  ;;  %v3510_v30 = vadd.f32 %v3447_v40, %v3421_v1 }
 0x521   :  { %v3487_v21 = vpop.f32.mrf.mxu2  ;;  %v3507_v9 = vpop.f32.mrf.mxu3 }
 0x522   :  { %v3552_v52 = vpop.f32.mrf.mxu0  ;;  %v3572_v42 = vpop.f32.mrf.mxu1  ;;  %v3512_v12 = vadd.f32 %v3487_v21, %v3423_v32  ;;  %v3513_v44 = vadd.f32 %v3507_v9, %v3424_v46 }
 0x523   :  { %v3616_v55 = vadd.f32 %v3572_v42, %v3511_v48  ;;  %v3615_v60 = vadd.f32 %v3552_v52, %v3510_v30  ;;  %v7844_v48 = vpop.permute.xlu0 %3936  ;;  %v3951_v46 = vpop.permute.xlu1 %3950 }
 0x529   :  { %v3592_v27 = vpop.f32.mrf.mxu2  ;;  %v3612_v58 = vpop.f32.mrf.mxu3 }
 0x52a   :  { %v3657_v54 = vpop.f32.mrf.mxu0  ;;  %v3677_v25 = vpop.f32.mrf.mxu1  ;;  %v3617_v38 = vadd.f32 %v3592_v27, %v3512_v12  ;;  %v3618_v61 = vadd.f32 %v3612_v58, %v3513_v44 }
 0x52b   :  { %v3721_v20 = vadd.f32 %v3677_v25, %v3616_v55  ;;  %v3720_v11 = vadd.f32 %v3657_v54, %v3615_v60 }
 0x531   :  { %v3697_v22 = vpop.f32.mrf.mxu2  ;;  %v3717_v53 = vpop.f32.mrf.mxu3 }
 0x532   :  { %v3762_v29 = vpop.f32.mrf.mxu0  ;;  %v3782_v37 = vpop.f32.mrf.mxu1  ;;  %v3722_v19 = vadd.f32 %v3697_v22, %v3617_v38  ;;  %v3723_v57 = vadd.f32 %v3717_v53, %v3618_v61 }
 0x533   :  { %v3826_v26 = vadd.f32 %v3782_v37, %v3721_v20  ;;  %v3825_v55 = vadd.f32 %v3762_v29, %v3720_v11 }
 0x539   :  { %v3802_v62 = vpop.f32.mrf.mxu2  ;;  %v3822_v56 = vpop.f32.mrf.mxu3 }
 0x53a   :  { %v3887_v7 = vpop.f32.mrf.mxu1  ;;  %v3867_v2 = vpop.f32.mrf.mxu0  ;;  %v3827_v1 = vadd.f32 %v3802_v62, %v3722_v19  ;;  %v3828_v31 = vadd.f32 %v3822_v56, %v3723_v57 }
 0x53b   :  { %v3931_v43 = vadd.f32 %v3887_v7, %v3826_v26  ;;  %v3930_v20 = vadd.f32 %v3867_v2, %v3825_v55 }
 0x53d   :  { %v3940_v63 = vadd.f32 %v7844_v48, %v3931_v43  ;;  %v3939_v58 = vadd.f32 %v7844_v48, %v3930_v20 }
 0x53f   :  { %v3944_v41 = vmax.f32 %v3940_v63, 0.0  ;;  %v3943_v28 = vmax.f32 %v3939_v58, 0.0 }
 0x541   :  { %v3907_v37 = vpop.f32.mrf.mxu2  ;;  %v3927_v32 = vpop.f32.mrf.mxu3 }
 0x542   :  { %v3932_v5 = vadd.f32 %v3907_v37, %v3827_v1  ;;  %v3933_v30 = vadd.f32 %v3927_v32, %v3828_v31  ;;  %v3993_v25 = vpop.f32.mrf.mxu1  ;;  %v3973_v54 = vpop.f32.mrf.mxu0 }
 0x543   :  { %v7847_v27 = vadd.f32 %v3993_v25, %v3951_v46  ;;  %v7855_v13 = vadd.f32 %v3973_v54, %v3951_v46 }
 0x544   :  { %v3941_v53 = vadd.f32 %v7844_v48, %v3932_v5  ;;  %v3942_v29 = vadd.f32 %v7844_v48, %v3933_v30 }
 0x545   :  { %v4037_v22 = vadd.f32 %v7847_v27, %v3944_v41  ;;  %v4036_v21 = vadd.f32 %v7855_v13, %v3943_v28 }
 0x546   :  { %v3945_v0 = vmax.f32 %v3941_v53, 0.0  ;;  %v3946_v47 = vmax.f32 %v3942_v29, 0.0 }
 0x547   :  { %v7853_v59 = vmax.f32 %v4037_v22, 0.0  ;;  %v7874_v62 = vmax.f32 %v4036_v21, 0.0 }
 0x549   :  { %v4013_v4 = vpop.f32.mrf.mxu2  ;;  %v4033_v51 = vpop.f32.mrf.mxu3  ;;  %4238 = vrot.lane.b32.xlu1 %v7853_v59, %s6508_s14  ;;  %4046 = vrot.lane.b32.xlu0 %v7853_v59, %s6507_s28 }
 0x54a   :  { %v7861_v40 = vadd.f32 %v4013_v4, %v3951_v46  ;;  %v7863_v8 = vadd.f32 %v4033_v51, %v3951_v46  ;;  %4062 = vrot.lane.b32.xlu2 %v7853_v59, %s6506_s2 }
 0x54c   :  { %v4038_v9 = vadd.f32 %v7861_v40, %v3945_v0  ;;  %v4039_v52 = vadd.f32 %v7863_v8, %v3946_v47 }
 0x54e   :  { %v7870_v42 = vmax.f32 %v4038_v9, 0.0  ;;  %v7872_v26 = vmax.f32 %v4039_v52, 0.0 }
 0x551   :  { %4066 = vrot.lane.b32.xlu1 %v7872_v26, %s6506_s2  ;;  %4064 = vrot.lane.b32.xlu0 %v7870_v42, %s6506_s2 }
 0x552   :  { %4060 = vrot.lane.b32.xlu2 %v7874_v62, %s6506_s2 }
 0x559   :  { %4048 = vrot.lane.b32.xlu1 %v7870_v42, %s6507_s28  ;;  %4044 = vrot.lane.b32.xlu0 %v7874_v62, %s6507_s28 }
 0x55a   :  { %4338 = vrot.lane.b32.xlu2 %v7853_v59, %s6509_s15 }
 0x561   :  { %4236 = vrot.lane.b32.xlu1 %v7874_v62, %s6508_s14  ;;  %4242 = vrot.lane.b32.xlu0 %v7872_v26, %s6508_s14 }
 0x562   :  { %4050 = vrot.lane.b32.xlu2 %v7872_v26, %s6507_s28 }
 0x569   :  { %4342 = vrot.lane.b32.xlu1 %v7872_v26, %s6509_s15  ;;  %4340 = vrot.lane.b32.xlu0 %v7870_v42, %s6509_s15 }
 0x56a   :  { %4240 = vrot.lane.b32.xlu2 %v7870_v42, %s6508_s14 }
 0x571   :  { %4620 = vrot.lane.b32.xlu1 %v7874_v62, %s6511_s17  ;;  %4520 = vrot.lane.b32.xlu0 %v7874_v62, %s6510_s16 }
 0x572   :  { %4336 = vrot.lane.b32.xlu2 %v7874_v62, %s6509_s15 }
 0x579   :  { %4524 = vrot.lane.b32.xlu1 %v7870_v42, %s6510_s16  ;;  %4522 = vrot.lane.b32.xlu0 %v7853_v59, %s6510_s16 }
 0x57a   :  { %4720 = vrot.lane.b32.xlu2 %v7874_v62, %s6512_s18 }
 0x581   :  { %4622 = vrot.lane.b32.xlu1 %v7853_v59, %s6511_s17  ;;  %4626 = vrot.lane.b32.xlu0 %v7872_v26, %s6511_s17 }
 0x582   :  { %4526 = vrot.lane.b32.xlu2 %v7872_v26, %s6510_s16 }
 0x589   :  { %4726 = vrot.lane.b32.xlu1 %v7872_v26, %s6512_s18  ;;  %4724 = vrot.lane.b32.xlu0 %v7870_v42, %s6512_s18 }
 0x58a   :  { %4624 = vrot.lane.b32.xlu2 %v7870_v42, %s6511_s17 }
 0x591   :  { %4824 = vrot.lane.b32.xlu1 %v7870_v42, %s6513_s19  ;;  %4820 = vrot.lane.b32.xlu0 %v7874_v62, %s6513_s19 }
 0x592   :  { %4722 = vrot.lane.b32.xlu2 %v7853_v59, %s6512_s18 }
 0x599   :  { %4822 = vrot.lane.b32.xlu0 %v7853_v59, %s6513_s19 }
 0x59a   :  { %4826 = vrot.lane.b32.xlu2 %v7872_v26, %s6513_s19 }
 0x5a4   :  { %v4063_v56 = vpop.permute.xlu2 %4062 }
 0x5ac   :  { %v4061_v12 = vpop.permute.xlu2 %4060 }
 0x5ad   :  { %v4070_v44 = vsel %vm113_vm0, %v4061_v12, %v4063_v56 }
 0x5ae   :  { %v4073_v7 = vmul.f32 %v4070_v44, %v6678_v15 }
 0x5b0   :  { %4111 = vmatpush.msra.mxu1 %v4073_v7 }
 0x5b1   :  { %6334 = vmatmul.msk.f32.vlgmr.msra.gmra.mxu1 %vm133_vm2, %v7618_v39 }
 0x5b4   :  { %v7939_v60 = vpop.permute.xlu2 %4338 }
 0x5bb   :  { %v4239_v2 = vpop.permute.xlu1 %4238  ;;  %v4047_v43 = vpop.permute.xlu0 %4046 }
 0x5bc   :  { %v4051_v38 = vpop.permute.xlu2 %4050 }
 0x5c3   :  { %v4067_v61 = vpop.permute.xlu1 %4066  ;;  %v4065_v11 = vpop.permute.xlu0 %4064 }
 0x5c4   :  { %v4071_v19 = vsel %vm113_vm0, %v4067_v61, %v4061_v12  ;;  %v4068_v57 = vsel %vm113_vm0, %v4065_v11, %v4067_v61  ;;  %v4069_v55 = vsel %vm113_vm0, %v4063_v56, %v4065_v11  ;;  %v4241_v63 = vpop.permute.xlu2 %4240  ;;  %v8680_v11 = vld [vmem:[#allocation6_spill] sm:$0xff] }
 0x5c5   :  { %v4072_v1 = vmul.f32 %v4071_v19, %v6676_v14  ;;  %v4074_v31 = vmul.f32 %v4069_v55, %v6680_v16  ;;  %v4075_v20 = vmul.f32 %v4068_v57, %v6682_v17  ;;  %v4245_v53 = vsel %vm308_vm3, %v4239_v2, %v4241_v63  ;;  %v8681_v57 = vld [vmem:[#allocation7_spill] sm:$0xff] }
 0x5c6   :  { %v4250_v29 = vmul.f32 %v4245_v53, %v6741_v49 }
 0x5c7   :  { %4091 = vmatpush.msra.mxu0 %v4072_v1  ;;  %4131 = vmatpush.msra.mxu2 %v4074_v31  ;;  %v8683_v1 = vld [vmem:[#allocation11_spill] sm:$0xff] }
 0x5c8   :  { %4151 = vmatpush.msra.mxu3 %v4075_v20  ;;  %6333 = vmatmul.msk.f32.vlgmr.msra.gmra.mxu0 %vm133_vm2, %v7618_v39 }
 0x5c9   :  { %6335 = vmatmul.msk.f32.vlgmr.msra.gmra.mxu2 %vm133_vm2, %v7618_v39  ;;  %6336 = vmatmul.msk.f32.vlgmr.msra.gmra.mxu3 %vm133_vm2, %v7618_v39 }
 0x5cb   :  { %v4049_v37 = vpop.permute.xlu1 %4048  ;;  %v4045_v32 = vpop.permute.xlu0 %4044 }
 0x5cc   :  { %v4052_v46 = vsel %vm86_vm1, %v4049_v37, %v4051_v38  ;;  %v4053_v5 = vsel %vm86_vm1, %v4047_v43, %v4049_v37  ;;  %v4054_v30 = vsel %vm86_vm1, %v4045_v32, %v4047_v43  ;;  %v4055_v25 = vsel %vm86_vm1, %v4051_v38, %v4045_v32  ;;  %v4337_v41 = vpop.permute.xlu2 %4336  ;;  %v8684_v37 = vld [vmem:[#allocation27_spill] sm:$0xff] }
 0x5cd   :  { %v4058_v58 = vmul.f32 %v4053_v5, %v6684_v18  ;;  %v4059_v54 = vmul.f32 %v4052_v46, %v6716_v36  ;;  %v4056_v39 = vmul.f32 %v4055_v25, %v6712_v34  ;;  %v4057_v22 = vmul.f32 %v4054_v30, %v6714_v35  ;;  %v8685_v30 = vld [vmem:[#allocation10_spill] sm:$0xff] }
 0x5ce   :  { %v4346_v28 = vsel %vm423_vm4, %v4337_v41, %v7939_v60 }
 0x5cf   :  { %4171 = vmatpush.msrb.mxu0 %v4056_v39  ;;  %4191 = vmatpush.msrb.mxu1 %v4057_v22  ;;  %v4349_v12 = vmul.f32 %v4346_v28, %v8657_v24  ;;  %v8688_v22 = vld [vmem:[#allocation28_spill] sm:$0xff] }
 0x5d0   :  { %4211 = vmatpush.msrb.mxu2 %v4058_v58  ;;  %4231 = vmatpush.msrb.mxu3 %v4059_v54  ;;  %v8687_v54 = vld [vmem:[#allocation13_spill] sm:$0xff] }
 0x5d1   :  { %6337 = vmatmul.msk.f32.vlgmr.msrb.gmra.mxu0 %vm133_vm2, %v7646_v45  ;;  %6338 = vmatmul.msk.f32.vlgmr.msrb.gmra.mxu1 %vm133_vm2, %v7646_v45 }
 0x5d2   :  { %6339 = vmatmul.msk.f32.vlgmr.msrb.gmra.mxu2 %vm133_vm2, %v7646_v45  ;;  %6340 = vmatmul.msk.f32.vlgmr.msrb.gmra.mxu3 %vm133_vm2, %v7646_v45 }
 0x5d3   :  { %4307 = vmatpush.msra.mxu2 %v4250_v29  ;;  %v4237_v4 = vpop.permute.xlu1 %4236  ;;  %v4243_v51 = vpop.permute.xlu0 %4242 }
 0x5d4   :  { %v4246_v0 = vsel %vm308_vm3, %v4237_v4, %v4239_v2  ;;  %v4244_v47 = vsel %vm308_vm3, %v4241_v63, %v4243_v51  ;;  %v4247_v21 = vsel %vm308_vm3, %v4243_v51, %v4237_v4  ;;  %v7988_v9 = vpop.permute.xlu2 %4720 }
 0x5d5   :  { %v4249_v45 = vmul.f32 %v4246_v0, %v6708_v33  ;;  %v4248_v52 = vmul.f32 %v4247_v21, %v6743_v50  ;;  %v4251_v56 = vmul.f32 %v4244_v47, %v8629_v3  ;;  %v8689_v21 = vld [vmem:[#allocation14_spill] sm:$0xff] }
 0x5d7   :  { %4267 = vmatpush.msra.mxu0 %v4248_v52  ;;  %4287 = vmatpush.msra.mxu1 %v4249_v45  ;;  %v8690_v52 = vld [vmem:[#allocation15_spill] sm:$0xff] }
 0x5d8   :  { %4327 = vmatpush.msra.mxu3 %v4251_v56 }
 0x5d9   :  { %4387 = vmatpush.msrb.mxu1 %v4349_v12  ;;  %6341 = vmatmul.msk.f32.vlgmr.msra.gmra.mxu0 %vm133_vm2, %v7669_v6  ;;  %v8691_v12 = vld [vmem:[#allocation16_spill] sm:$0xff] }
 0x5da   :  { %6342 = vmatmul.msk.f32.vlgmr.msra.gmra.mxu1 %vm133_vm2, %v7669_v6  ;;  %6343 = vmatmul.msk.f32.vlgmr.msra.gmra.mxu2 %vm133_vm2, %v7669_v6 }
 0x5db   :  { %6344 = vmatmul.msk.f32.vlgmr.msra.gmra.mxu3 %vm133_vm2, %v7669_v6  ;;  %4471 = vmatpush.msra.mxu1 %v7853_v59  ;;  %v4343_v44 = vpop.permute.xlu1 %4342  ;;  %v4341_v7 = vpop.permute.xlu0 %4340  ;;  %v8682_v59 = vld [vmem:[#allocation26_spill] sm:$0xff] }
 0x5dc   :  { %v4347_v2 = vsel %vm423_vm4, %v4343_v44, %v4337_v41  ;;  %v4344_v43 = vsel %vm423_vm4, %v4341_v7, %v4343_v44  ;;  %v4345_v38 = vsel %vm423_vm4, %v7939_v60, %v4341_v7  ;;  %v4527_v55 = vpop.permute.xlu2 %4526  ;;  %v8686_v41 = vld [vmem:[#allocation12_spill] sm:$0xff]  ;;  %v8692_v7 = vld [vmem:[#allocation17_spill] sm:$0xff] }
 0x5dd   :  { %v4348_v61 = vmul.f32 %v4347_v2, %v8632_v23  ;;  %v4350_v19 = vmul.f32 %v4345_v38, %v8680_v11  ;;  %v4351_v6 = vmul.f32 %v4344_v43, %v8681_v57  ;;  %v8693_v38 = vld [vmem:[#allocation20_spill] sm:$0xff] }
 0x5df   :  { %4367 = vmatpush.msrb.mxu0 %v4348_v61  ;;  %4407 = vmatpush.msrb.mxu2 %v4350_v19  ;;  %v8694_v19 = vld [vmem:[#allocation29_spill] sm:$0xff] }
 0x5e0   :  { %4427 = vmatpush.msrb.mxu3 %v4351_v6 }
 0x5e1   :  { %4451 = vmatpush.msra.mxu0 %v7874_v62  ;;  %4491 = vmatpush.msra.mxu2 %v7870_v42 }
 0x5e2   :  { %6345 = vmatmul.msk.f32.vlgmr.msrb.gmra.mxu0 %vm133_vm2, %v8682_v59  ;;  %6346 = vmatmul.msk.f32.vlgmr.msrb.gmra.mxu1 %vm133_vm2, %v8682_v59 }
 0x5e3   :  { %6347 = vmatmul.msk.f32.vlgmr.msrb.gmra.mxu2 %vm133_vm2, %v8682_v59  ;;  %6348 = vmatmul.msk.f32.vlgmr.msrb.gmra.mxu3 %vm133_vm2, %v8682_v59  ;;  %v4621_v60 = vpop.permute.xlu1 %4620  ;;  %v4521_v63 = vpop.permute.xlu0 %4520 }
 0x5e4   :  { %4511 = vmatpush.msra.mxu3 %v7872_v26  ;;  %v4531_v62 = vsel %vm627_vm5, %v4527_v55, %v4521_v63  ;;  %v4625_v20 = vpop.permute.xlu2 %4624 }
 0x5e5   :  { %v4535_v31 = vmul.f32 %v4531_v62, %v8683_v1  ;;  %v8695_v62 = vld [vmem:[#allocation18_spill] sm:$0xff] }
 0x5e7   :  { %4611 = vmatpush.msrb.mxu3 %v4535_v31 }
 0x5ea   :  { %6349 = vmatmul.msk.f32.vlgmr.msra.gmra.mxu0 %vm133_vm2, %v8684_v37  ;;  %6350 = vmatmul.msk.f32.vlgmr.msra.gmra.mxu1 %vm133_vm2, %v8684_v37 }
 0x5eb   :  { %6351 = vmatmul.msk.f32.vlgmr.msra.gmra.mxu2 %vm133_vm2, %v8684_v37  ;;  %6352 = vmatmul.msk.f32.vlgmr.msra.gmra.mxu3 %vm133_vm2, %v8684_v37  ;;  %v4525_v42 = vpop.permute.xlu1 %4524  ;;  %v4523_v26 = vpop.permute.xlu0 %4522 }
 0x5ec   :  { %v4528_v32 = vsel %vm627_vm5, %v4525_v42, %v4527_v55  ;;  %v4529_v46 = vsel %vm627_vm5, %v4523_v26, %v4525_v42  ;;  %v4530_v5 = vsel %vm627_vm5, %v4521_v63, %v4523_v26  ;;  %v4723_v53 = vpop.permute.xlu2 %4722  ;;  %v8697_v42 = vld [vmem:[#allocation19_spill] sm:$0xff] }
 0x5ed   :  { %v4534_v25 = vmul.f32 %v4528_v32, %v8685_v30  ;;  %v4532_v58 = vmul.f32 %v4530_v5, %v8686_v41  ;;  %v4533_v39 = vmul.f32 %v4529_v46, %v8687_v54  ;;  %v4730_v43 = vsel %vm857_vm7, %v7988_v9, %v4723_v53  ;;  %v8698_v32 = vld [vmem:[#allocation30_spill] sm:$0xff] }
 0x5ee   :  { %v4732_v61 = vmul.f32 %v4730_v43, %v8693_v38 }
 0x5ef   :  { %4551 = vmatpush.msrb.mxu0 %v4532_v58  ;;  %4571 = vmatpush.msrb.mxu1 %v4533_v39  ;;  %v8699_v39 = vld [vmem:[#allocation23_spill] sm:$0xff] }
 0x5f0   :  { %4591 = vmatpush.msrb.mxu2 %v4534_v25 }
 0x5f2   :  { %6353 = vmatmul.msk.f32.vlgmr.msrb.gmra.mxu0 %vm133_vm2, %v8688_v22  ;;  %6354 = vmatmul.msk.f32.vlgmr.msrb.gmra.mxu1 %vm133_vm2, %v8688_v22 }
 0x5f3   :  { %6355 = vmatmul.msk.f32.vlgmr.msrb.gmra.mxu2 %vm133_vm2, %v8688_v22  ;;  %6356 = vmatmul.msk.f32.vlgmr.msrb.gmra.mxu3 %vm133_vm2, %v8688_v22  ;;  %v4623_v29 = vpop.permute.xlu1 %4622  ;;  %v4627_v28 = vpop.permute.xlu0 %4626 }
 0x5f4   :  { %v4629_v4 = vsel %vm742_vm6, %v4623_v29, %v4625_v20  ;;  %v4630_v51 = vsel %vm742_vm6, %v4621_v60, %v4623_v29  ;;  %v4628_v0 = vsel %vm742_vm6, %v4625_v20, %v4627_v28  ;;  %v4631_v47 = vsel %vm742_vm6, %v4627_v28, %v4621_v60  ;;  %v8696_v20 = vld [vmem:[#allocation21_spill] sm:$0xff]  ;;  %v8701_v28 = vld [vmem:[#allocation31_spill] sm:$0xff] }
 0x5f5   :  { %v4632_v45 = vmul.f32 %v4630_v51, %v8689_v21  ;;  %v4633_v56 = vmul.f32 %v4629_v4, %v8690_v52  ;;  %v4634_v44 = vmul.f32 %v4628_v0, %v8691_v12  ;;  %v4635_v2 = vmul.f32 %v4631_v47, %v8692_v7  ;;  %v8702_v47 = vld [vmem:[#allocation24_spill] sm:$0xff] }
 0x5f7   :  { %4651 = vmatpush.msra.mxu0 %v4632_v45  ;;  %4671 = vmatpush.msra.mxu1 %v4633_v56  ;;  %v8703_v56 = vld [vmem:[#allocation25_spill] sm:$0xff] }
 0x5f8   :  { %4691 = vmatpush.msra.mxu2 %v4634_v44  ;;  %4711 = vmatpush.msra.mxu3 %v4635_v2 }
 0x5f9   :  { %4751 = vmatpush.msrb.mxu0 %v4732_v61 }
 0x5fa   :  { %6357 = vmatmul.msk.f32.vlgmr.msra.gmra.mxu0 %vm133_vm2, %v8694_v19  ;;  %6358 = vmatmul.msk.f32.vlgmr.msra.gmra.mxu1 %vm133_vm2, %v8694_v19 }
 0x5fb   :  { %6359 = vmatmul.msk.f32.vlgmr.msra.gmra.mxu2 %vm133_vm2, %v8694_v19  ;;  %6360 = vmatmul.msk.f32.vlgmr.msra.gmra.mxu3 %vm133_vm2, %v8694_v19  ;;  %v4727_v6 = vpop.permute.xlu1 %4726  ;;  %v4725_v55 = vpop.permute.xlu0 %4724 }
 0x5fc   :  { %v4731_v59 = vsel %vm857_vm7, %v4727_v6, %v7988_v9  ;;  %v4728_v60 = vsel %vm857_vm7, %v4725_v55, %v4727_v6  ;;  %v4729_v63 = vsel %vm857_vm7, %v4723_v53, %v4725_v55  ;;  %v4827_v9 = vpop.permute.xlu2 %4826  ;;  %v8700_v53 = vld [vmem:[#allocation22_spill] sm:$0xff] }
 0x5fd   :  { %v4735_v31 = vmul.f32 %v4731_v59, %v8695_v62  ;;  %v4733_v37 = vmul.f32 %v4729_v63, %v8696_v20  ;;  %v4734_v26 = vmul.f32 %v4728_v60, %v8697_v42 }
 0x5ff   :  { %4771 = vmatpush.msrb.mxu1 %v4733_v37  ;;  %4791 = vmatpush.msrb.mxu2 %v4734_v26 }
 0x600   :  { %4811 = vmatpush.msrb.mxu3 %v4735_v31 }
 0x602   :  { %6361 = vmatmul.msk.f32.vlgmr.msrb.gmra.mxu0 %vm133_vm2, %v8698_v32  ;;  %6362 = vmatmul.msk.f32.vlgmr.msrb.gmra.mxu1 %vm133_vm2, %v8698_v32 }
 0x603   :  { %6363 = vmatmul.msk.f32.vlgmr.msrb.gmra.mxu2 %vm133_vm2, %v8698_v32  ;;  %6364 = vmatmul.msk.f32.vlgmr.msrb.gmra.mxu3 %vm133_vm2, %v8698_v32  ;;  %v4825_v46 = vpop.permute.xlu1 %4824  ;;  %v4821_v5 = vpop.permute.xlu0 %4820 }
 0x604   :  { %v4828_v25 = vsel %vm972_vm8, %v4825_v46, %v4827_v9  ;;  %v4831_v58 = vsel %vm972_vm8, %v4827_v9, %v4821_v5 }
 0x605   :  { %v4834_v22 = vmul.f32 %v4828_v25, %v8699_v39  ;;  %v4835_v29 = vmul.f32 %v4831_v58, %v8700_v53 }
 0x607   :  { %4891 = vmatpush.msra.mxu2 %v4834_v22  ;;  %4911 = vmatpush.msra.mxu3 %v4835_v29 }
 0x60b   :  { %6367 = vmatmul.msk.f32.vlgmr.msra.gmra.mxu2 %vm133_vm2, %v8701_v28  ;;  %6368 = vmatmul.msk.f32.vlgmr.msra.gmra.mxu3 %vm133_vm2, %v8701_v28  ;;  %v4823_v4 = vpop.permute.xlu0 %4822 }
 0x60c   :  { %v4829_v51 = vsel %vm972_vm8, %v4823_v4, %v4825_v46  ;;  %v4830_v0 = vsel %vm972_vm8, %v4821_v5, %v4823_v4 }
 0x60d   :  { %v4832_v45 = vmul.f32 %v4830_v0, %v8702_v47  ;;  %v4833_v44 = vmul.f32 %v4829_v51, %v8703_v56 }
 0x60f   :  { %4851 = vmatpush.msra.mxu0 %v4832_v45  ;;  %4871 = vmatpush.msra.mxu1 %v4833_v44 }
 0x610   :  { %6365 = vmatmul.msk.f32.vlgmr.msra.gmra.mxu0 %vm133_vm2, %v8701_v28  ;;  %6366 = vmatmul.msk.f32.vlgmr.msra.gmra.mxu1 %vm133_vm2, %v8701_v28 }
 0x62e   :  { %v4113_v2 = vpop.f32.mrf.mxu1 }
 0x645   :  { %v4093_v43 = vpop.f32.mrf.mxu0 }
 0x64c   :  { %v4133_v61 = vpop.f32.mrf.mxu2  ;;  %v4153_v19 = vpop.f32.mrf.mxu3 }
 0x64e   :  { %v4173_v6 = vpop.f32.mrf.mxu0  ;;  %v4193_v55 = vpop.f32.mrf.mxu1 }
 0x64f   :  { %v4174_v38 = vadd.f32 %v4173_v6, %v4093_v43  ;;  %v4194_v42 = vadd.f32 %v4193_v55, %v4113_v2 }
 0x655   :  { %v4213_v59 = vpop.f32.mrf.mxu2  ;;  %v4233_v60 = vpop.f32.mrf.mxu3 }
 0x656   :  { %v4269_v63 = vpop.f32.mrf.mxu0  ;;  %v4214_v45 = vadd.f32 %v4213_v59, %v4133_v61  ;;  %v4234_v56 = vadd.f32 %v4233_v60, %v4153_v19 }
 0x657   :  { %v4289_v31 = vpop.f32.mrf.mxu1  ;;  %v4332_v7 = vadd.f32 %v4269_v63, %v4174_v38 }
 0x658   :  { %v4333_v12 = vadd.f32 %v4289_v31, %v4194_v42 }
 0x65d   :  { %v4309_v37 = vpop.f32.mrf.mxu2 }
 0x65e   :  { %v4329_v26 = vpop.f32.mrf.mxu3  ;;  %v4334_v20 = vadd.f32 %v4309_v37, %v4214_v45 }
 0x65f   :  { %v4369_v32 = vpop.f32.mrf.mxu0  ;;  %v4389_v9 = vpop.f32.mrf.mxu1  ;;  %v4335_v52 = vadd.f32 %v4329_v26, %v4234_v56 }
 0x660   :  { %v4433_v1 = vadd.f32 %v4389_v9, %v4333_v12  ;;  %v4432_v41 = vadd.f32 %v4369_v32, %v4332_v7 }
 0x666   :  { %v4409_v46 = vpop.f32.mrf.mxu2  ;;  %v4429_v5 = vpop.f32.mrf.mxu3 }
 0x667   :  { %v4453_v25 = vpop.f32.mrf.mxu0  ;;  %v4473_v58 = vpop.f32.mrf.mxu1  ;;  %v4434_v62 = vadd.f32 %v4409_v46, %v4334_v20  ;;  %v4435_v30 = vadd.f32 %v4429_v5, %v4335_v52 }
 0x668   :  { %v4517_v61 = vadd.f32 %v4473_v58, %v4433_v1  ;;  %v4516_v57 = vadd.f32 %v4453_v25, %v4432_v41 }
 0x66e   :  { %v4493_v22 = vpop.f32.mrf.mxu2  ;;  %v4513_v29 = vpop.f32.mrf.mxu3 }
 0x66f   :  { %v4553_v28 = vpop.f32.mrf.mxu0  ;;  %v4573_v4 = vpop.f32.mrf.mxu1  ;;  %v4518_v59 = vadd.f32 %v4493_v22, %v4434_v62  ;;  %v4519_v11 = vadd.f32 %v4513_v29, %v4435_v30 }
 0x670   :  { %v4617_v3 = vadd.f32 %v4573_v4, %v4517_v61  ;;  %v4616_v43 = vadd.f32 %v4553_v28, %v4516_v57  ;;  %v6464_v4 = vld [vmem:[%s8507_s6 + $0x8] sm:$0xff] }
 0x676   :  { %v4593_v51 = vpop.f32.mrf.mxu2  ;;  %v4613_v0 = vpop.f32.mrf.mxu3 }
 0x677   :  { %v4653_v44 = vpop.f32.mrf.mxu0  ;;  %v4673_v53 = vpop.f32.mrf.mxu1  ;;  %v4618_v19 = vadd.f32 %v4593_v51, %v4518_v59  ;;  %v4619_v60 = vadd.f32 %v4613_v0, %v4519_v11 }
 0x678   :  { %v4717_v2 = vadd.f32 %v4673_v53, %v4617_v3  ;;  %v4716_v20 = vadd.f32 %v4653_v44, %v4616_v43 }
 0x67e   :  { %v4693_v39 = vpop.f32.mrf.mxu2  ;;  %v4713_v47 = vpop.f32.mrf.mxu3 }
 0x67f   :  { %v4753_v24 = vpop.f32.mrf.mxu0  ;;  %v4773_v23 = vpop.f32.mrf.mxu1  ;;  %v4718_v42 = vadd.f32 %v4693_v39, %v4618_v19  ;;  %v4719_v56 = vadd.f32 %v4713_v47, %v4619_v60 }
 0x680   :  { %v4817_v38 = vadd.f32 %v4773_v23, %v4717_v2  ;;  %v4816_v7 = vadd.f32 %v4753_v24, %v4716_v20 }
 0x686   :  { %v4793_v21 = vpop.f32.mrf.mxu2  ;;  %v4813_v54 = vpop.f32.mrf.mxu3 }
 0x687   :  { %v4818_v12 = vadd.f32 %v4793_v21, %v4718_v42  ;;  %v4819_v52 = vadd.f32 %v4813_v54, %v4719_v56 }
 0x68d   :  { %v4853_v63 = vpop.f32.mrf.mxu0  ;;  %v4873_v31 = vpop.f32.mrf.mxu1 }
 0x68e   :  { %v4893_v6 = vpop.f32.mrf.mxu2  ;;  %v4913_v55 = vpop.f32.mrf.mxu3  ;;  %v4917_v30 = vadd.f32 %v4873_v31, %v4817_v38  ;;  %v4916_v41 = vadd.f32 %v4853_v63, %v4816_v7 }
 0x68f   :  { %v4918_v1 = vadd.f32 %v4893_v6, %v4818_v12  ;;  %v4919_v62 = vadd.f32 %v4913_v55, %v4819_v52 }
 0x690   :  { %v4921_v37 = vadd.f32 %v4917_v30, %v7844_v48  ;;  %v4920_v23 = vadd.f32 %v4916_v41, %v7844_v48 }
 0x691   :  { %v4922_v11 = vadd.f32 %v4918_v1, %v7844_v48  ;;  %v4923_v3 = vadd.f32 %v4919_v62, %v7844_v48  ;;  %v6466_v1 = vld [vmem:[%s8507_s6 + $0x10] sm:$0xff] }
 0x692   :  { %v4925_v57 = vmax.f32 %v4921_v37, 0.0  ;;  %v4924_v53 = vmax.f32 %v4920_v23, 0.0 }
 0x693   :  { %v4926_v21 = vmax.f32 %v4922_v11, 0.0  ;;  %v4927_v39 = vmax.f32 %v4923_v3, 0.0  ;;  %v8704_v11 = vld [vmem:[#allocation5_spill] sm:$0xff] }
 0x694   :  { %v4929_v54 = vadd.f32 %v4925_v57, %v7847_v27  ;;  %v4928_v27 = vadd.f32 %v4924_v53, %v7855_v13  ;;  %v6156_v13 = vld [vmem:[%s8510_s9 + $0x28] sm:$0xff]  ;;  %v8705_v57 = vld [vmem:[#allocation7_spill] sm:$0xff] }
 0x695   :  { %v4930_v47 = vadd.f32 %v4926_v21, %v7861_v40  ;;  %v4931_v26 = vadd.f32 %v4927_v39, %v7863_v8 }
 0x696   :  { %v8119_v24 = vmax.f32 %v4929_v54, 0.0  ;;  %v8134_v46 = vmax.f32 %v4928_v27, 0.0  ;;  %v8706_v54 = vld [vmem:[#allocation6_spill] sm:$0xff]  ;;  %v8707_v27 = vld [vmem:[#allocation8_spill] sm:$0xff] }
 0x697   :  { %v8130_v32 = vmax.f32 %v4930_v47, 0.0  ;;  %v8132_v9 = vmax.f32 %v4931_v26, 0.0 }
 0x698   :  { %5130 = vrot.lane.b32.xlu0 %v8119_v24, %s6508_s14  ;;  %4938 = vrot.lane.b32.xlu2 %v8119_v24, %s6507_s28 }
 0x699   :  { %4954 = vrot.lane.b32.xlu1 %v8119_v24, %s6506_s2 }
 0x6a0   :  { %4958 = vrot.lane.b32.xlu0 %v8132_v9, %s6506_s2  ;;  %4956 = vrot.lane.b32.xlu2 %v8130_v32, %s6506_s2 }
 0x6a1   :  { %4952 = vrot.lane.b32.xlu1 %v8134_v46, %s6506_s2 }
 0x6a8   :  { %4940 = vrot.lane.b32.xlu0 %v8130_v32, %s6507_s28  ;;  %4936 = vrot.lane.b32.xlu2 %v8134_v46, %s6507_s28 }
 0x6a9   :  { %5230 = vrot.lane.b32.xlu1 %v8119_v24, %s6509_s15 }
 0x6b0   :  { %5128 = vrot.lane.b32.xlu0 %v8134_v46, %s6508_s14  ;;  %5134 = vrot.lane.b32.xlu2 %v8132_v9, %s6508_s14 }
 0x6b1   :  { %4942 = vrot.lane.b32.xlu1 %v8132_v9, %s6507_s28 }
 0x6b8   :  { %5234 = vrot.lane.b32.xlu0 %v8132_v9, %s6509_s15  ;;  %5232 = vrot.lane.b32.xlu2 %v8130_v32, %s6509_s15 }
 0x6b9   :  { %5132 = vrot.lane.b32.xlu1 %v8130_v32, %s6508_s14 }
 0x6c0   :  { %5512 = vrot.lane.b32.xlu0 %v8134_v46, %s6511_s17  ;;  %5412 = vrot.lane.b32.xlu2 %v8134_v46, %s6510_s16 }
 0x6c1   :  { %5228 = vrot.lane.b32.xlu1 %v8134_v46, %s6509_s15 }
 0x6c8   :  { %5416 = vrot.lane.b32.xlu0 %v8130_v32, %s6510_s16  ;;  %5414 = vrot.lane.b32.xlu2 %v8119_v24, %s6510_s16 }
 0x6c9   :  { %5612 = vrot.lane.b32.xlu1 %v8134_v46, %s6512_s18 }
 0x6d0   :  { %5514 = vrot.lane.b32.xlu0 %v8119_v24, %s6511_s17  ;;  %5518 = vrot.lane.b32.xlu2 %v8132_v9, %s6511_s17 }
 0x6d1   :  { %5418 = vrot.lane.b32.xlu1 %v8132_v9, %s6510_s16 }
 0x6d8   :  { %5618 = vrot.lane.b32.xlu0 %v8132_v9, %s6512_s18  ;;  %5616 = vrot.lane.b32.xlu2 %v8130_v32, %s6512_s18 }
 0x6d9   :  { %5516 = vrot.lane.b32.xlu1 %v8130_v32, %s6511_s17 }
 0x6e0   :  { %5716 = vrot.lane.b32.xlu0 %v8130_v32, %s6513_s19  ;;  %5712 = vrot.lane.b32.xlu2 %v8134_v46, %s6513_s19 }
 0x6e1   :  { %5614 = vrot.lane.b32.xlu1 %v8119_v24, %s6512_s18 }
 0x6e8   :  { %5827 = vperm.xlu0 %6422, %v6156_v13   ;;  %5714 = vrot.lane.b32.xlu2 %v8119_v24, %s6513_s19 }
 0x6e9   :  { %5718 = vrot.lane.b32.xlu1 %v8132_v9, %s6513_s19 }
 0x6f2   :  { %v4939_v40 = vpop.permute.xlu2 %4938 }
 0x6fa   :  { %v4957_v8 = vpop.permute.xlu2 %4956 }
 0x702   :  { %v4937_v5 = vpop.permute.xlu2 %4936 }
 0x703   :  { %v4946_v0 = vsel %vm86_vm1, %v4937_v5, %v4939_v40 }
 0x704   :  { %v4949_v43 = vmul.f32 %v4946_v0, %v6714_v35  ;;  %v6468_v0 = vld [vmem:[%s8507_s6 + $0x20] sm:$0xff] }
 0x70a   :  { %v5131_v25 = vpop.permute.xlu0 %5130  ;;  %v5135_v29 = vpop.permute.xlu2 %5134 }
 0x70b   :  { %v4955_v58 = vpop.permute.xlu1 %4954 }
 0x70c   :  { %v4961_v22 = vsel %vm113_vm0, %v4955_v58, %v4957_v8 }
 0x70d   :  { %v4966_v28 = vmul.f32 %v4961_v22, %v6680_v16 }
 0x70f   :  { %5023 = vmatpush.msrb.mxu2 %v4966_v28  ;;  %v8710_v28 = vld [vmem:[#allocation13_spill] sm:$0xff] }
 0x710   :  { %6371 = vmatmul.msk.f32.vlgmr.msrb.gmra.mxu2 %vm133_vm2, %v6464_v4 }
 0x712   :  { %v4959_v51 = vpop.permute.xlu0 %4958  ;;  %v5233_v2 = vpop.permute.xlu2 %5232 }
 0x713   :  { %v4953_v45 = vpop.permute.xlu1 %4952  ;;  %v4960_v44 = vsel %vm113_vm0, %v4957_v8, %v4959_v51 }
 0x714   :  { %v4962_v61 = vsel %vm113_vm0, %v4953_v45, %v4955_v58  ;;  %v4963_v16 = vsel %vm113_vm0, %v4959_v51, %v4953_v45  ;;  %v4967_v59 = vmul.f32 %v4960_v44, %v6682_v17  ;;  %v6465_v17 = vld [vmem:[%s8507_s6] sm:$0xff] }
 0x715   :  { %v4965_v19 = vmul.f32 %v4962_v61, %v6678_v15  ;;  %v4964_v60 = vmul.f32 %v4963_v16, %v6676_v14  ;;  %v8711_v16 = vld [vmem:[#allocation14_spill] sm:$0xff] }
 0x716   :  { %5043 = vmatpush.msrb.mxu3 %v4967_v59 }
 0x717   :  { %4983 = vmatpush.msrb.mxu0 %v4964_v60  ;;  %5003 = vmatpush.msrb.mxu1 %v4965_v19  ;;  %v8712_v60 = vld [vmem:[#allocation10_spill] sm:$0xff] }
 0x718   :  { %6369 = vmatmul.msk.f32.vlgmr.msrb.gmra.mxu0 %vm133_vm2, %v6464_v4  ;;  %6370 = vmatmul.msk.f32.vlgmr.msrb.gmra.mxu1 %vm133_vm2, %v6464_v4 }
 0x719   :  { %5083 = vmatpush.msra.mxu1 %v4949_v43  ;;  %6372 = vmatmul.msk.f32.vlgmr.msrb.gmra.mxu3 %vm133_vm2, %v6464_v4 }
 0x71a   :  { %v4941_v42 = vpop.permute.xlu0 %4940  ;;  %v8226_v35 = vpop.permute.xlu2 %5412 }
 0x71b   :  { %v5231_v56 = vpop.permute.xlu1 %5230  ;;  %v4945_v15 = vsel %vm86_vm1, %v4939_v40, %v4941_v42  ;;  %v8708_v40 = vld [vmem:[#allocation9_spill] sm:$0xff] }
 0x71c   :  { %v4950_v14 = vmul.f32 %v4945_v15, %v6684_v18 }
 0x71e   :  { %5103 = vmatpush.msra.mxu2 %v4950_v14 }
 0x71f   :  { %6375 = vmatmul.msk.f32.vlgmr.msra.gmra.mxu2 %vm133_vm2, %v6465_v17 }
 0x720   :  { %6374 = vmatmul.msk.f32.vlgmr.msra.gmra.mxu1 %vm133_vm2, %v6465_v17 }
 0x722   :  { %v5129_v20 = vpop.permute.xlu0 %5128 }
 0x723   :  { %v4943_v38 = vpop.permute.xlu1 %4942  ;;  %v5138_v12 = vsel %vm308_vm3, %v5129_v20, %v5131_v25  ;;  %v5139_v52 = vsel %vm308_vm3, %v5135_v29, %v5129_v20 }
 0x724   :  { %v4944_v18 = vsel %vm86_vm1, %v4941_v42, %v4943_v38  ;;  %v4947_v6 = vsel %vm86_vm1, %v4943_v38, %v4937_v5  ;;  %v5141_v55 = vmul.f32 %v5138_v12, %v6708_v33  ;;  %v5140_v31 = vmul.f32 %v5139_v52, %v6743_v50  ;;  %v5415_v33 = vpop.permute.xlu2 %5414 }
 0x725   :  { %v4948_v7 = vmul.f32 %v4947_v6, %v6712_v34  ;;  %v4951_v63 = vmul.f32 %v4944_v18, %v6716_v36  ;;  %v5237_v50 = vsel %vm423_vm4, %v5231_v56, %v5233_v2  ;;  %v5422_v5 = vsel %vm627_vm5, %v8226_v35, %v5415_v33  ;;  %v8715_v6 = vld [vmem:[#allocation18_spill] sm:$0xff] }
 0x726   :  { %5179 = vmatpush.msrb.mxu1 %v5141_v55  ;;  %v5242_v21 = vmul.f32 %v5237_v50, %v8706_v54  ;;  %v8720_v54 = vld [vmem:[#allocation21_spill] sm:$0xff] }
 0x727   :  { %5063 = vmatpush.msra.mxu0 %v4948_v7  ;;  %5123 = vmatpush.msra.mxu3 %v4951_v63  ;;  %v8716_v7 = vld [vmem:[#allocation15_spill] sm:$0xff] }
 0x728   :  { %6373 = vmatmul.msk.f32.vlgmr.msra.gmra.mxu0 %vm133_vm2, %v6465_v17  ;;  %6376 = vmatmul.msk.f32.vlgmr.msra.gmra.mxu3 %vm133_vm2, %v6465_v17  ;;  %v6469_v17 = vld [vmem:[%s8507_s6 + $0x28] sm:$0xff] }
 0x729   :  { %5159 = vmatpush.msrb.mxu0 %v5140_v31  ;;  %6378 = vmatmul.msk.f32.vlgmr.msrb.gmra.mxu1 %vm133_vm2, %v6466_v1  ;;  %v8717_v31 = vld [vmem:[#allocation16_spill] sm:$0xff] }
 0x72a   :  { %v5235_v34 = vpop.permute.xlu0 %5234 }
 0x72b   :  { %v5133_v62 = vpop.permute.xlu1 %5132  ;;  %v5236_v36 = vsel %vm423_vm4, %v5233_v2, %v5235_v34  ;;  %v8713_v2 = vld [vmem:[#allocation11_spill] sm:$0xff] }
 0x72c   :  { %v5136_v30 = vsel %vm308_vm3, %v5133_v62, %v5135_v29  ;;  %v5137_v41 = vsel %vm308_vm3, %v5131_v25, %v5133_v62  ;;  %v5243_v23 = vmul.f32 %v5236_v36, %v8705_v57  ;;  %v5519_v53 = vpop.permute.xlu2 %5518  ;;  %v6470_v62 = vld [vmem:[%s8507_s6 + $0x30] sm:$0xff]  ;;  %v8719_v57 = vld [vmem:[#allocation20_spill] sm:$0xff] }
 0x72d   :  { %v5142_v37 = vmul.f32 %v5137_v41, %v6741_v49  ;;  %v5143_v3 = vmul.f32 %v5136_v30, %v8704_v11 }
 0x72f   :  { %5199 = vmatpush.msrb.mxu2 %v5142_v37  ;;  %5219 = vmatpush.msrb.mxu3 %v5143_v3 }
 0x730   :  { %6377 = vmatmul.msk.f32.vlgmr.msrb.gmra.mxu0 %vm133_vm2, %v6466_v1  ;;  %6379 = vmatmul.msk.f32.vlgmr.msrb.gmra.mxu2 %vm133_vm2, %v6466_v1 }
 0x731   :  { %6380 = vmatmul.msk.f32.vlgmr.msrb.gmra.mxu3 %vm133_vm2, %v6466_v1  ;;  %5299 = vmatpush.msra.mxu2 %v5242_v21 }
 0x732   :  { %5319 = vmatpush.msra.mxu3 %v5243_v23  ;;  %v5513_v39 = vpop.permute.xlu0 %5512 }
 0x733   :  { %5383 = vmatpush.msrb.mxu2 %v8130_v32  ;;  %v5229_v49 = vpop.permute.xlu1 %5228  ;;  %v6467_v32 = vld [vmem:[%s8507_s6 + $0x18] sm:$0xff]  ;;  %v5523_v19 = vsel %vm742_vm6, %v5519_v53, %v5513_v39 }
 0x734   :  { %5403 = vmatpush.msrb.mxu3 %v8132_v9  ;;  %v5238_v47 = vsel %vm423_vm4, %v5229_v49, %v5231_v56  ;;  %v5239_v26 = vsel %vm423_vm4, %v5235_v34, %v5229_v49  ;;  %v8709_v9 = vld [vmem:[#allocation12_spill] sm:$0xff]  ;;  %v5617_v51 = vpop.permute.xlu2 %5616  ;;  %v8714_v56 = vld [vmem:[#allocation17_spill] sm:$0xff] }
 0x735   :  { %v5240_v13 = vmul.f32 %v5239_v26, %v8707_v27  ;;  %v5241_v8 = vmul.f32 %v5238_v47, %v8708_v40  ;;  %v5424_v25 = vmul.f32 %v5422_v5, %v8709_v9  ;;  %v5527_v15 = vmul.f32 %v5523_v19, %v8714_v56  ;;  %v6471_v26 = vld [vmem:[%s8507_s6 + $0x38] sm:$0xff]  ;;  %v6473_v40 = vld [vmem:[%s8501_s0 + $0x8] sm:$0xff] }
 0x737   :  { %5259 = vmatpush.msra.mxu0 %v5240_v13  ;;  %5279 = vmatpush.msra.mxu1 %v5241_v8  ;;  %v6472_v13 = vld [vmem:[%s8501_s0] sm:$0xff] }
 0x738   :  { %6381 = vmatmul.msk.f32.vlgmr.msra.gmra.mxu0 %vm133_vm2, %v6467_v32  ;;  %6382 = vmatmul.msk.f32.vlgmr.msra.gmra.mxu1 %vm133_vm2, %v6467_v32 }
 0x739   :  { %6383 = vmatmul.msk.f32.vlgmr.msra.gmra.mxu2 %vm133_vm2, %v6467_v32  ;;  %6384 = vmatmul.msk.f32.vlgmr.msra.gmra.mxu3 %vm133_vm2, %v6467_v32  ;;  %v8723_v32 = vld [vmem:[#allocation23_spill] sm:$0xff] }
 0x73a   :  { %5343 = vmatpush.msrb.mxu0 %v8134_v46  ;;  %5363 = vmatpush.msrb.mxu1 %v8119_v24  ;;  %v5417_v58 = vpop.permute.xlu0 %5416 }
 0x73b   :  { %v5613_v22 = vpop.permute.xlu1 %5612  ;;  %v5421_v29 = vsel %vm627_vm5, %v5415_v33, %v5417_v58  ;;  %v8718_v33 = vld [vmem:[#allocation19_spill] sm:$0xff] }
 0x73c   :  { %5443 = vmatpush.msra.mxu0 %v5424_v25  ;;  %v5425_v4 = vmul.f32 %v5421_v29, %v8710_v28  ;;  %v5713_v14 = vpop.permute.xlu2 %5712  ;;  %v8724_v25 = vld [vmem:[#allocation22_spill] sm:$0xff]  ;;  %v6475_v29 = vld [vmem:[%s8501_s0 + $0x10] sm:$0xff]  ;;  %v6476_v28 = vld [vmem:[%s8501_s0 + $0x18] sm:$0xff] }
 0x73e   :  { %5463 = vmatpush.msra.mxu1 %v5425_v4  ;;  %v5824_v4 = vld [vmem:[%s8509_s8] sm:$0xff] }
 0x740   :  { %6385 = vmatmul.msk.f32.vlgmr.msrb.gmra.mxu0 %vm133_vm2, %v6468_v0  ;;  %6386 = vmatmul.msk.f32.vlgmr.msrb.gmra.mxu1 %vm133_vm2, %v6468_v0 }
 0x741   :  { %6387 = vmatmul.msk.f32.vlgmr.msrb.gmra.mxu2 %vm133_vm2, %v6468_v0  ;;  %6388 = vmatmul.msk.f32.vlgmr.msrb.gmra.mxu3 %vm133_vm2, %v6468_v0 }
 0x742   :  { %v5515_v24 = vpop.permute.xlu0 %5514 }
 0x743   :  { %v5419_v46 = vpop.permute.xlu1 %5418  ;;  %v5522_v45 = vsel %vm742_vm6, %v5513_v39, %v5515_v24  ;;  %v8721_v39 = vld [vmem:[#allocation25_spill] sm:$0xff] }
 0x744   :  { %v5420_v44 = vsel %vm627_vm5, %v5417_v58, %v5419_v46  ;;  %v5423_v61 = vsel %vm627_vm5, %v5419_v46, %v8226_v35  ;;  %v5524_v59 = vmul.f32 %v5522_v45, %v8711_v16  ;;  %v5715_v36 = vpop.permute.xlu2 %5714 }
 0x745   :  { %v5426_v43 = vmul.f32 %v5420_v44, %v8712_v60  ;;  %v5427_v42 = vmul.f32 %v5423_v61, %v8713_v2  ;;  %v5722_v3 = vsel %vm972_vm8, %v5713_v14, %v5715_v36 }
 0x746   :  { %5543 = vmatpush.msrb.mxu0 %v5524_v59 }
 0x747   :  { %5483 = vmatpush.msra.mxu2 %v5426_v43  ;;  %5503 = vmatpush.msra.mxu3 %v5427_v42 }
 0x748   :  { %6389 = vmatmul.msk.f32.vlgmr.msra.gmra.mxu0 %vm133_vm2, %v6469_v17  ;;  %6390 = vmatmul.msk.f32.vlgmr.msra.gmra.mxu1 %vm133_vm2, %v6469_v17 }
 0x749   :  { %6391 = vmatmul.msk.f32.vlgmr.msra.gmra.mxu2 %vm133_vm2, %v6469_v17  ;;  %6392 = vmatmul.msk.f32.vlgmr.msra.gmra.mxu3 %vm133_vm2, %v6469_v17 }
 0x74a   :  { %5603 = vmatpush.msrb.mxu3 %v5527_v15  ;;  %v5619_v35 = vpop.permute.xlu0 %5618 }
 0x74b   :  { %v5517_v20 = vpop.permute.xlu1 %5516  ;;  %v5620_v38 = vsel %vm857_vm7, %v5617_v51, %v5619_v35  ;;  %v5623_v12 = vsel %vm857_vm7, %v5619_v35, %v5613_v22 }
 0x74c   :  { %v5520_v52 = vsel %vm742_vm6, %v5517_v20, %v5519_v53  ;;  %v5521_v18 = vsel %vm742_vm6, %v5515_v24, %v5517_v20  ;;  %v5627_v55 = vmul.f32 %v5623_v12, %v8715_v6  ;;  %v5626_v34 = vmul.f32 %v5620_v38, %v8718_v33  ;;  %v8722_v53 = vld [vmem:[#allocation24_spill] sm:$0xff] }
 0x74d   :  { %v5525_v63 = vmul.f32 %v5521_v18, %v8716_v7  ;;  %v5526_v1 = vmul.f32 %v5520_v52, %v8717_v31  ;;  %v5724_v47 = vmul.f32 %v5722_v3, %v8722_v53 }
 0x74e   :  { %5703 = vmatpush.msra.mxu3 %v5627_v55 }
 0x74f   :  { %5563 = vmatpush.msrb.mxu1 %v5525_v63  ;;  %5583 = vmatpush.msrb.mxu2 %v5526_v1 }
 0x750   :  { %6393 = vmatmul.msk.f32.vlgmr.msrb.gmra.mxu0 %vm133_vm2, %v6470_v62  ;;  %6394 = vmatmul.msk.f32.vlgmr.msrb.gmra.mxu1 %vm133_vm2, %v6470_v62 }
 0x751   :  { %6395 = vmatmul.msk.f32.vlgmr.msrb.gmra.mxu2 %vm133_vm2, %v6470_v62  ;;  %6396 = vmatmul.msk.f32.vlgmr.msrb.gmra.mxu3 %vm133_vm2, %v6470_v62 }
 0x752   :  { %5683 = vmatpush.msra.mxu2 %v5626_v34  ;;  %v5717_v50 = vpop.permute.xlu0 %5716 }
 0x753   :  { %v5615_v30 = vpop.permute.xlu1 %5614  ;;  %v5721_v41 = vsel %vm972_vm8, %v5715_v36, %v5717_v50 }
 0x754   :  { %v5621_v37 = vsel %vm857_vm7, %v5615_v30, %v5617_v51  ;;  %v5622_v11 = vsel %vm857_vm7, %v5613_v22, %v5615_v30  ;;  %v5725_v49 = vmul.f32 %v5721_v41, %v8721_v39  ;;  %v6474_v22 = vld [vmem:[%s8507_s6 + $0x40] sm:$0xff] }
 0x755   :  { %v5624_v23 = vmul.f32 %v5622_v11, %v8719_v57  ;;  %v5625_v21 = vmul.f32 %v5621_v37, %v8720_v54 }
 0x757   :  { %5643 = vmatpush.msra.mxu0 %v5624_v23  ;;  %5663 = vmatpush.msra.mxu1 %v5625_v21 }
 0x758   :  { %6397 = vmatmul.msk.f32.vlgmr.msra.gmra.mxu0 %vm133_vm2, %v6471_v26  ;;  %6398 = vmatmul.msk.f32.vlgmr.msra.gmra.mxu1 %vm133_vm2, %v6471_v26 }
 0x759   :  { %6399 = vmatmul.msk.f32.vlgmr.msra.gmra.mxu2 %vm133_vm2, %v6471_v26  ;;  %6400 = vmatmul.msk.f32.vlgmr.msra.gmra.mxu3 %vm133_vm2, %v6471_v26 }
 0x75a   :  { %5743 = vmatpush.msrb.mxu0 %v5724_v47  ;;  %5763 = vmatpush.msrb.mxu1 %v5725_v49 }
 0x75b   :  { %v5719_v27 = vpop.permute.xlu1 %5718 }
 0x75c   :  { %5848 = vmatpush.msra.mxu0 %v6472_v13  ;;  %5868 = vmatpush.msra.mxu1 %v6473_v40  ;;  %v5720_v8 = vsel %vm972_vm8, %v5717_v50, %v5719_v27  ;;  %v5723_v5 = vsel %vm972_vm8, %v5719_v27, %v5713_v14 }
 0x75d   :  { %v5726_v9 = vmul.f32 %v5720_v8, %v8723_v32  ;;  %v5727_v58 = vmul.f32 %v5723_v5, %v8724_v25 }
 0x75f   :  { %5783 = vmatpush.msrb.mxu2 %v5726_v9  ;;  %5803 = vmatpush.msrb.mxu3 %v5727_v58 }
 0x760   :  { %6401 = vmatmul.msk.f32.vlgmr.msrb.gmra.mxu0 %vm133_vm2, %v6474_v22  ;;  %6402 = vmatmul.msk.f32.vlgmr.msrb.gmra.mxu1 %vm133_vm2, %v6474_v22 }
 0x761   :  { %6403 = vmatmul.msk.f32.vlgmr.msrb.gmra.mxu2 %vm133_vm2, %v6474_v22  ;;  %6404 = vmatmul.msk.f32.vlgmr.msrb.gmra.mxu3 %vm133_vm2, %v6474_v22 }
 0x762   :  { %5888 = vmatpush.msra.mxu2 %v6475_v29  ;;  %5908 = vmatpush.msra.mxu3 %v6476_v28 }
 0x768   :  { %6405 = vmatmul.msk.f32.vlgmr.msra.gmra.mxu0 %vm133_vm2, %v5824_v4  ;;  %6406 = vmatmul.msk.f32.vlgmr.msra.gmra.mxu1 %vm133_vm2, %v5824_v4 }
 0x769   :  { %6407 = vmatmul.msk.f32.vlgmr.msra.gmra.mxu2 %vm133_vm2, %v5824_v4  ;;  %6408 = vmatmul.msk.f32.vlgmr.msra.gmra.mxu3 %vm133_vm2, %v5824_v4 }
 0x793   :  { %v5025_v24 = vpop.f32.mrf.mxu2 }
 0x795   :  { %v5005_v51 = vpop.f32.mrf.mxu1  ;;  %v4985_v0 = vpop.f32.mrf.mxu0 }
 0x79c   :  { %v5045_v46 = vpop.f32.mrf.mxu3 }
 0x79d   :  { %v5085_v45 = vpop.f32.mrf.mxu1 }
 0x79e   :  { %v5086_v52 = vadd.f32 %v5085_v45, %v5005_v51 }
 0x7a2   :  { %v5105_v61 = vpop.f32.mrf.mxu2 }
 0x7a3   :  { %v5106_v3 = vadd.f32 %v5105_v61, %v5025_v24 }
 0x7a5   :  { %v5065_v44 = vpop.f32.mrf.mxu0 }
 0x7a6   :  { %v5181_v59 = vpop.f32.mrf.mxu1  ;;  %v5066_v63 = vadd.f32 %v5065_v44, %v4985_v0 }
 0x7a7   :  { %v5225_v31 = vadd.f32 %v5181_v59, %v5086_v52 }
 0x7ab   :  { %v5125_v16 = vpop.f32.mrf.mxu3 }
 0x7ac   :  { %v5126_v50 = vadd.f32 %v5125_v16, %v5045_v46 }
 0x7ad   :  { %v5161_v19 = vpop.f32.mrf.mxu0 }
 0x7ae   :  { %v5224_v1 = vadd.f32 %v5161_v19, %v5066_v63 }
 0x7b3   :  { %v5201_v60 = vpop.f32.mrf.mxu2 }
 0x7b4   :  { %v5221_v43 = vpop.f32.mrf.mxu3  ;;  %v5226_v54 = vadd.f32 %v5201_v60, %v5106_v3  ;;  %v6016_v3 = vld [vmem:[#allocation2 + $0xf8] sm:$0xff] }
 0x7b5   :  { %v5261_v2 = vpop.f32.mrf.mxu0  ;;  %v5281_v42 = vpop.f32.mrf.mxu1  ;;  %v5227_v21 = vadd.f32 %v5221_v43, %v5126_v50  ;;  %v6032_v50 = vld [vmem:[#allocation2 + $0x178] sm:$0xff]  ;;  %6072 = vmatpush.msrb.mxu1 %v6016_v3  ;;  %v6042_v3 = vld [vmem:[#allocation2 + $0x1c8] sm:$0xff] }
 0x7b6   :  { %v5324_v33 = vadd.f32 %v5261_v2, %v5224_v1  ;;  %v5325_v34 = vadd.f32 %v5281_v42, %v5225_v31  ;;  %6095 = vmatpush.msrb.mxu2 %v6032_v50  ;;  %v5995_v50 = vld [vmem:[#allocation2 + $0x50] sm:$0xff] }
 0x7bc   :  { %v5301_v56 = vpop.f32.mrf.mxu2  ;;  %v5321_v15 = vpop.f32.mrf.mxu3 }
 0x7bd   :  { %v5345_v14 = vpop.f32.mrf.mxu0  ;;  %v5365_v17 = vpop.f32.mrf.mxu1  ;;  %v5326_v53 = vadd.f32 %v5301_v56, %v5226_v54  ;;  %v5327_v47 = vadd.f32 %v5321_v15, %v5227_v21  ;;  %v6027_v54 = vld [vmem:[#allocation2 + $0x150] sm:$0xff]  ;;  %v6026_v21 = vld [vmem:[#allocation2 + $0x148] sm:$0xff] }
 0x7be   :  { %v5408_v37 = vadd.f32 %v5345_v14, %v5324_v33  ;;  %v5409_v11 = vadd.f32 %v5365_v17, %v5325_v34  ;;  %v5828_v56 = vpop.permute.xlu0 %5827 }
 0x7c4   :  { %v5385_v35 = vpop.f32.mrf.mxu2  ;;  %v5405_v20 = vpop.f32.mrf.mxu3 }
 0x7c5   :  { %v5445_v38 = vpop.f32.mrf.mxu0  ;;  %v5465_v12 = vpop.f32.mrf.mxu1  ;;  %v5410_v8 = vadd.f32 %v5385_v35, %v5326_v53  ;;  %v5411_v5 = vadd.f32 %v5405_v20, %v5327_v47  ;;  %v6024_v53 = vld [vmem:[#allocation2 + $0x138] sm:$0xff] }
 0x7c6   :  { %v5508_v57 = vadd.f32 %v5445_v38, %v5408_v37  ;;  %v5509_v23 = vadd.f32 %v5465_v12, %v5409_v11  ;;  %v6029_v37 = vld [vmem:[#allocation2 + $0x160] sm:$0xff]  ;;  %v6000_v11 = vld [vmem:[#allocation2 + $0x78] sm:$0xff] }
 0x7c7   :  { %6049 = vmatpush.msrb.mxu0 %v6000_v11  ;;  %v6010_v11 = vld [vmem:[#allocation2 + $0xc8] sm:$0xff] }
 0x7cc   :  { %v5485_v18 = vpop.f32.mrf.mxu2  ;;  %v5505_v6 = vpop.f32.mrf.mxu3 }
 0x7cd   :  { %v5545_v55 = vpop.f32.mrf.mxu0  ;;  %v5565_v7 = vpop.f32.mrf.mxu1  ;;  %v5510_v22 = vadd.f32 %v5485_v18, %v5410_v8  ;;  %v5511_v29 = vadd.f32 %v5505_v6, %v5411_v5  ;;  %v6022_v5 = vld [vmem:[#allocation2 + $0x128] sm:$0xff] }
 0x7ce   :  { %v5608_v39 = vadd.f32 %v5545_v55, %v5508_v57  ;;  %v5609_v49 = vadd.f32 %v5565_v7, %v5509_v23  ;;  %v6048_v57 = vld [vmem:[#allocation2 + $0x1f8] sm:$0xff] }
 0x7cf   :  { %v6028_v23 = vld [vmem:[#allocation2 + $0x158] sm:$0xff]  ;;  %6118 = vmatpush.msrb.mxu3 %v6048_v57  ;;  %v5993_v57 = vld [vmem:[#allocation2 + $0x40] sm:$0xff] }
 0x7d4   :  { %v5585_v62 = vpop.f32.mrf.mxu2  ;;  %v5605_v36 = vpop.f32.mrf.mxu3 }
 0x7d5   :  { %v5645_v30 = vpop.f32.mrf.mxu0  ;;  %v5665_v41 = vpop.f32.mrf.mxu1  ;;  %v5610_v51 = vadd.f32 %v5585_v62, %v5510_v22  ;;  %v5611_v0 = vadd.f32 %v5605_v36, %v5511_v29 }
 0x7d6   :  { %v5708_v26 = vadd.f32 %v5645_v30, %v5608_v39  ;;  %v5709_v27 = vadd.f32 %v5665_v41, %v5609_v49  ;;  %v6031_v30 = vld [vmem:[#allocation2 + $0x170] sm:$0xff]  ;;  %v6030_v41 = vld [vmem:[#allocation2 + $0x168] sm:$0xff]  ;;  %v6025_v39 = vld [vmem:[#allocation2 + $0x140] sm:$0xff] }
 0x7d7   :  { %6096 = vmatpush.msrb.mxu2 %v6031_v30  ;;  %v6011_v30 = vld [vmem:[#allocation2 + $0xd0] sm:$0xff] }
 0x7d9   :  { %6097 = vmatpush.msrb.mxu2 %v6030_v41  ;;  %v6043_v41 = vld [vmem:[#allocation2 + $0x1d0] sm:$0xff] }
 0x7db   :  { %6098 = vmatpush.msrb.mxu2 %v6029_v37  ;;  %v5994_v37 = vld [vmem:[#allocation2 + $0x48] sm:$0xff] }
 0x7dc   :  { %v5685_v13 = vpop.f32.mrf.mxu2  ;;  %v5705_v40 = vpop.f32.mrf.mxu3 }
 0x7dd   :  { %v5745_v32 = vpop.f32.mrf.mxu0  ;;  %v5765_v9 = vpop.f32.mrf.mxu1  ;;  %v5710_v45 = vadd.f32 %v5685_v13, %v5610_v51  ;;  %v5711_v44 = vadd.f32 %v5705_v40, %v5611_v0  ;;  %6099 = vmatpush.msrb.mxu2 %v6028_v23  ;;  %v6021_v51 = vld [vmem:[#allocation2 + $0x120] sm:$0xff] }
 0x7de   :  { %v5808_v25 = vadd.f32 %v5745_v32, %v5708_v26  ;;  %v5809_v58 = vadd.f32 %v5765_v9, %v5709_v27  ;;  %v6023_v26 = vld [vmem:[#allocation2 + $0x130] sm:$0xff]  ;;  %v6009_v23 = vld [vmem:[#allocation2 + $0xc0] sm:$0xff] }
 0x7df   :  { %6100 = vmatpush.msrb.mxu2 %v6027_v54  ;;  %v6041_v54 = vld [vmem:[#allocation2 + $0x1c0] sm:$0xff] }
 0x7e0   :  { %v5812_v28 = vadd.f32 %v5808_v25, %v7844_v48  ;;  %v5813_v4 = vadd.f32 %v5809_v58, %v7844_v48 }
 0x7e1   :  { %6101 = vmatpush.msrb.mxu2 %v6026_v21  ;;  %v5992_v21 = vld [vmem:[#allocation2 + $0x38] sm:$0xff] }
 0x7e2   :  { %v8385_v24 = vmax.f32 %v5812_v28, 0.0  ;;  %v8387_v46 = vmax.f32 %v5813_v4, 0.0 }
 0x7e3   :  { %6102 = vmatpush.msrb.mxu2 %v6025_v39  ;;  %v6008_v39 = vld [vmem:[#allocation2 + $0xb8] sm:$0xff] }
 0x7e4   :  { %5820 = vst [vmem:[%s8512_s11] sm:$0xff] %v8385_v24  ;;  %v5785_v61 = vpop.f32.mrf.mxu2  ;;  %v5805_v16 = vpop.f32.mrf.mxu3 }
 0x7e5   :  { %5821 = vst [vmem:[%s8512_s11 + $0x8] sm:$0xff] %v8387_v46  ;;  %v5810_v59 = vadd.f32 %v5785_v61, %v5710_v45  ;;  %v5811_v19 = vadd.f32 %v5805_v16, %v5711_v44  ;;  %v5850_v60 = vpop.f32.mrf.mxu0  ;;  %v5870_v43 = vpop.f32.mrf.mxu1  ;;  %6103 = vmatpush.msrb.mxu2 %v6024_v53  ;;  %v6020_v61 = vld [vmem:[#allocation2 + $0x118] sm:$0xff]  ;;  %v5991_v53 = vld [vmem:[#allocation2 + $0x30] sm:$0xff] }
 0x7e6   :  { %v5851_v17 = vadd.f32 %v5850_v60, %v5828_v56  ;;  %v5871_v35 = vadd.f32 %v5870_v43, %v5828_v56 }
 0x7e7   :  { %v5814_v2 = vadd.f32 %v5810_v59, %v7844_v48  ;;  %v5815_v42 = vadd.f32 %v5811_v19, %v7844_v48  ;;  %6104 = vmatpush.msrb.mxu2 %v6023_v26  ;;  %v6039_v26 = vld [vmem:[#allocation2 + $0x1b0] sm:$0xff] }
 0x7e8   :  { %v5913_v12 = vadd.f32 %v5851_v17, %v8385_v24  ;;  %v5914_v52 = vadd.f32 %v5871_v35, %v8387_v46 }
 0x7e9   :  { %v8399_v15 = vmax.f32 %v5814_v2, 0.0  ;;  %v8401_v14 = vmax.f32 %v5815_v42, 0.0  ;;  %6105 = vmatpush.msrb.mxu2 %v6022_v5  ;;  %v6005_v5 = vld [vmem:[#allocation2 + $0xa0] sm:$0xff] }
 0x7ea   :  { %v5917_v63 = vmax.f32 %v5913_v12, 0.0  ;;  %v5918_v31 = vmax.f32 %v5914_v52, 0.0 }
 0x7eb   :  { %5822 = vst [vmem:[%s8512_s11 + $0x10] sm:$0xff] %v8399_v15  ;;  %v6434_v20 = vpack.i.bf16 %v8399_v15, %v8385_v24  ;;  %v6439_v36 = vpack.i.bf16 %v8387_v46, %v8401_v14  ;;  %6106 = vmatpush.msrb.mxu2 %v6021_v51  ;;  %v5987_v51 = vld [vmem:[#allocation2 + $0x10] sm:$0xff] }
 0x7ec   :  { %5823 = vst [vmem:[%s8512_s11 + $0x18] sm:$0xff] %v8401_v14  ;;  %v5890_v48 = vpop.f32.mrf.mxu2  ;;  %v5910_v38 = vpop.f32.mrf.mxu3 }
 0x7ed   :  { %v5891_v18 = vadd.f32 %v5890_v48, %v5828_v56  ;;  %v5911_v6 = vadd.f32 %v5910_v38, %v5828_v56  ;;  %6435 = vrot.lane.b32.xlu0 %v6434_v20, %s6510_s16  ;;  %6107 = vmatpush.msrb.mxu2 %v6020_v61  ;;  %v6002_v61 = vld [vmem:[#allocation2 + $0x88] sm:$0xff] }
 0x7ef   :  { %v5915_v55 = vadd.f32 %v5891_v18, %v8399_v15  ;;  %v5916_v7 = vadd.f32 %v5911_v6, %v8401_v14  ;;  %v6015_v18 = vld [vmem:[#allocation2 + $0xf0] sm:$0xff]  ;;  %v6014_v6 = vld [vmem:[#allocation2 + $0xe8] sm:$0xff] }
 0x7f0   :  { %6073 = vmatpush.msrb.mxu1 %v6015_v18 }
 0x7f1   :  { %v5919_v1 = vmax.f32 %v5915_v55, 0.0  ;;  %v5920_v33 = vmax.f32 %v5916_v7, 0.0  ;;  %v6018_v55 = vld [vmem:[#allocation2 + $0x108] sm:$0xff] }
 0x7f2   :  { %6074 = vmatpush.msrb.mxu1 %v6014_v6  ;;  %v6046_v7 = vld [vmem:[#allocation2 + $0x1e8] sm:$0xff] }
 0x7f3   :  { %v6424_v34 = vpack.i.bf16 %v5919_v1, %v5917_v63  ;;  %v6429_v62 = vpack.i.bf16 %v5918_v31, %v5920_v33 }
 0x7f5   :  { %6425 = vrot.lane.b32.xlu1 %v6424_v34, %s6510_s16  ;;  %6430 = vrot.lane.b32.xlu2 %v6429_v62, %s6510_s16  ;;  %v5996_v34 = vld [vmem:[#allocation2 + $0x58] sm:$0xff] }
 0x7f6   :  { %v6012_v62 = vld [vmem:[#allocation2 + $0xd8] sm:$0xff] }
 0x7fd   :  { %6440 = vrot.lane.b32.xlu1 %v6439_v36, %s6510_s16  ;;  %v6044_v36 = vld [vmem:[#allocation2 + $0x1d8] sm:$0xff] }
 0x84f   :  { %v6431_v49 = vpop.permute.xlu2 %6430 }
 0x850   :  { %v6433_v27 = vunpack.i.h.bf16 %v6431_v49  ;;  %v6432_v13 = vunpack.i.l.bf16 %v6431_v49  ;;  %v6040_v49 = vld [vmem:[#allocation2 + $0x1b8] sm:$0xff] }
 0x85f   :  { %v6436_v0 = vpop.permute.xlu0 %6435 }
 0x860   :  { %v6438_v59 = vunpack.i.h.bf16 %v6436_v0  ;;  %v6437_v19 = vunpack.i.l.bf16 %v6436_v0  ;;  %v6003_v0 = vld [vmem:[#allocation2 + $0x90] sm:$0xff] }
 0x867   :  { %v6426_v47 = vpop.permute.xlu1 %6425 }
 0x868   :  { %v6428_v40 = vunpack.i.h.bf16 %v6426_v47  ;;  %v6427_v8 = vunpack.i.l.bf16 %v6426_v47  ;;  %v6007_v47 = vld [vmem:[#allocation2 + $0xb0] sm:$0xff] }
 0x86a   :  { %v5937_v32 = vsel %vm627_vm5, %v6428_v40, %v6432_v13  ;;  %v5939_v9 = vsel %vm627_vm5, %v6433_v27, %v6428_v40  ;;  %v5941_v25 = vsel %vm627_vm5, %v6427_v8, %v6433_v27  ;;  %v5943_v58 = vsel %vm627_vm5, %v6432_v13, %v6427_v8  ;;  %v5990_v27 = vld [vmem:[#allocation2 + $0x28] sm:$0xff]  ;;  %v5989_v8 = vld [vmem:[#allocation2 + $0x20] sm:$0xff] }
 0x86b   :  { %v8431_v22 = vmax.f32 %v5917_v63, %v5941_v25  ;;  %v8433_v29 = vmax.f32 %v5918_v31, %v5939_v9  ;;  %v8435_v28 = vmax.f32 %v5919_v1, %v5937_v32  ;;  %v8437_v4 = vmax.f32 %v5920_v33, %v5943_v58  ;;  %v5997_v63 = vld [vmem:[#allocation2 + $0x60] sm:$0xff]  ;;  %v6006_v13 = vld [vmem:[#allocation2 + $0xa8] sm:$0xff]  ;;  %v5988_v9 = vld [vmem:[#allocation2 + $0x18] sm:$0xff] }
 0x86c   :  { %v6013_v31 = vld [vmem:[#allocation2 + $0xe0] sm:$0xff]  ;;  %v6038_v40 = vld [vmem:[#allocation2 + $0x1a8] sm:$0xff]  ;;  %v6004_v25 = vld [vmem:[#allocation2 + $0x98] sm:$0xff] }
 0x86d   :  { %v6449_v45 = vpack.i.bf16 %v8433_v29, %v8431_v22  ;;  %v6444_v44 = vpack.i.bf16 %v8437_v4, %v8435_v28  ;;  %v6017_v1 = vld [vmem:[#allocation2 + $0x100] sm:$0xff]  ;;  %6075 = vmatpush.msrb.mxu1 %v6013_v31  ;;  %v6036_v58 = vld [vmem:[#allocation2 + $0x198] sm:$0xff] }
 0x86e   :  { %v6045_v33 = vld [vmem:[#allocation2 + $0x1e0] sm:$0xff] }
 0x86f   :  { %v6441_v16 = vpop.permute.xlu1 %6440  ;;  %6450 = vrot.lane.b32.xlu0 %v6449_v45, %s6512_s18  ;;  %6445 = vrot.lane.b32.xlu2 %v6444_v44, %s6512_s18  ;;  %v6037_v32 = vld [vmem:[#allocation2 + $0x1a0] sm:$0xff]  ;;  %v6035_v45 = vld [vmem:[#allocation2 + $0x190] sm:$0xff]  ;;  %v5986_v44 = vld [vmem:[#allocation2 + $0x8] sm:$0xff] }
 0x870   :  { %v6443_v60 = vunpack.i.h.bf16 %v6441_v16  ;;  %v6442_v43 = vunpack.i.l.bf16 %v6441_v16  ;;  %6076 = vmatpush.msrb.mxu1 %v6012_v62  ;;  %v6034_v16 = vld [vmem:[#allocation2 + $0x188] sm:$0xff] }
 0x872   :  { %v5940_v2 = vsel %vm627_vm5, %v6443_v60, %v6438_v59  ;;  %v5942_v42 = vsel %vm627_vm5, %v6437_v19, %v6443_v60  ;;  %v5938_v56 = vsel %vm627_vm5, %v6438_v59, %v6442_v43  ;;  %v5944_v17 = vsel %vm627_vm5, %v6442_v43, %v6437_v19  ;;  %6077 = vmatpush.msrb.mxu1 %v6011_v30  ;;  %v5985_v59 = vld [vmem:[#allocation2] sm:$0xff] }
 0x873   :  { %v8454_v35 = vmax.f32 %v8385_v24, %v5942_v42  ;;  %v8457_v20 = vmax.f32 %v8387_v46, %v5940_v2  ;;  %v8460_v48 = vmax.f32 %v8399_v15, %v5938_v56  ;;  %v8463_v38 = vmax.f32 %v8401_v14, %v5944_v17  ;;  %v5999_v24 = vld [vmem:[#allocation2 + $0x70] sm:$0xff]  ;;  %v5998_v14 = vld [vmem:[#allocation2 + $0x68] sm:$0xff]  ;;  %v6001_v19 = vld [vmem:[#allocation2 + $0x80] sm:$0xff] }
 0x874   :  { %v6019_v46 = vld [vmem:[#allocation2 + $0x110] sm:$0xff]  ;;  %6050 = vmatpush.msrb.mxu0 %v5999_v24  ;;  %6078 = vmatpush.msrb.mxu1 %v6010_v11  ;;  %v6033_v60 = vld [vmem:[#allocation2 + $0x180] sm:$0xff] }
 0x875   :  { %v6454_v12 = vpack.i.bf16 %v8463_v38, %v8460_v48  ;;  %v6459_v52 = vpack.i.bf16 %v8457_v20, %v8454_v35  ;;  %v6047_v15 = vld [vmem:[#allocation2 + $0x1f0] sm:$0xff]  ;;  %6108 = vmatpush.msrb.mxu2 %v6019_v46 }
 0x876   :  { %6119 = vmatpush.msrb.mxu3 %v6047_v15  ;;  %6051 = vmatpush.msrb.mxu0 %v5998_v14 }
 0x877   :  { %6455 = vrot.lane.b32.xlu1 %v6454_v12, %s6512_s18  ;;  %6460 = vrot.lane.b32.xlu2 %v6459_v52, %s6512_s18 }
 0x878   :  { %6109 = vmatpush.msrb.mxu2 %v6018_v55  ;;  %6120 = vmatpush.msrb.mxu3 %v6046_v7 }
 0x879   :  { %6052 = vmatpush.msrb.mxu0 %v5997_v63  ;;  %6079 = vmatpush.msrb.mxu1 %v6009_v23 }
 0x87a   :  { %6110 = vmatpush.msrb.mxu2 %v6017_v1  ;;  %6121 = vmatpush.msrb.mxu3 %v6045_v33 }
 0x87b   :  { %6053 = vmatpush.msrb.mxu0 %v5996_v34  ;;  %6080 = vmatpush.msrb.mxu1 %v6008_v39 }
 0x87c   :  { %6122 = vmatpush.msrb.mxu3 %v6044_v36 }
 0x87d   :  { %6054 = vmatpush.msrb.mxu0 %v5995_v50  ;;  %6081 = vmatpush.msrb.mxu1 %v6007_v47 }
 0x87e   :  { %6123 = vmatpush.msrb.mxu3 %v6043_v41 }
 0x87f   :  { %6055 = vmatpush.msrb.mxu0 %v5994_v37  ;;  %6082 = vmatpush.msrb.mxu1 %v6006_v13 }
 0x880   :  { %6124 = vmatpush.msrb.mxu3 %v6042_v3 }
 0x881   :  { %6056 = vmatpush.msrb.mxu0 %v5993_v57  ;;  %6083 = vmatpush.msrb.mxu1 %v6005_v5 }
 0x882   :  { %6125 = vmatpush.msrb.mxu3 %v6041_v54 }
 0x883   :  { %6057 = vmatpush.msrb.mxu0 %v5992_v21  ;;  %6084 = vmatpush.msrb.mxu1 %v6004_v25 }
 0x884   :  { %6126 = vmatpush.msrb.mxu3 %v6040_v49 }
 0x885   :  { %6058 = vmatpush.msrb.mxu0 %v5991_v53  ;;  %6085 = vmatpush.msrb.mxu1 %v6003_v0 }
 0x886   :  { %6127 = vmatpush.msrb.mxu3 %v6039_v26 }
 0x887   :  { %6059 = vmatpush.msrb.mxu0 %v5990_v27  ;;  %6086 = vmatpush.msrb.mxu1 %v6002_v61 }
 0x888   :  { %6128 = vmatpush.msrb.mxu3 %v6038_v40 }
 0x889   :  { %6060 = vmatpush.msrb.mxu0 %v5989_v8  ;;  %6087 = vmatpush.msrb.mxu1 %v6001_v19 }
 0x88a   :  { %6129 = vmatpush.msrb.mxu3 %v6037_v32 }
 0x88b   :  { %6061 = vmatpush.msrb.mxu0 %v5988_v9 }
 0x88c   :  { %6130 = vmatpush.msrb.mxu3 %v6036_v58 }
 0x88d   :  { %6062 = vmatpush.msrb.mxu0 %v5987_v51 }
 0x88e   :  { %6131 = vmatpush.msrb.mxu3 %v6035_v45 }
 0x88f   :  { %6063 = vmatpush.msrb.mxu0 %v5986_v44 }
 0x890   :  { %6132 = vmatpush.msrb.mxu3 %v6034_v16 }
 0x891   :  { %6064 = vmatpush.msrb.mxu0 %v5985_v59 }
 0x892   :  { %6133 = vmatpush.msrb.mxu3 %v6033_v60 }
 0x8c9   :  { %v6446_v43 = vpop.permute.xlu2 %6445 }
 0x8ca   :  { %v6448_v2 = vunpack.i.h.bf16 %v6446_v43  ;;  %v6447_v42 = vunpack.i.l.bf16 %v6446_v43 }
 0x8cc   :  { %v5969_v56 = vsel %vm857_vm7, %v6447_v42, %v6448_v2 }
 0x8cd   :  { %v5979_v17 = vmax.f32 %v8435_v28, %v5969_v56 }
 0x8cf   :  { %6111 = vmatmul.f32.vlgmr.msrb.gmra.mxu2 %v5979_v17 }
 0x8d1   :  { %v6461_v18 = vpop.permute.xlu2 %6460 }
 0x8d2   :  { %v6463_v7 = vunpack.i.h.bf16 %v6461_v18  ;;  %v6462_v63 = vunpack.i.l.bf16 %v6461_v18 }
 0x8d4   :  { %v5974_v34 = vsel %vm857_vm7, %v6462_v63, %v6463_v7 }
 0x8e1   :  { %v6451_v12 = vpop.permute.xlu0 %6450 }
 0x8e2   :  { %v6453_v52 = vunpack.i.h.bf16 %v6451_v12  ;;  %v6452_v24 = vunpack.i.l.bf16 %v6451_v12 }
 0x8e4   :  { %v5971_v46 = vsel %vm857_vm7, %v6453_v52, %v6447_v42  ;;  %v5973_v15 = vsel %vm857_vm7, %v6452_v24, %v6453_v52  ;;  %v5975_v14 = vsel %vm857_vm7, %v6448_v2, %v6452_v24 }
 0x8e5   :  { %v5977_v6 = vmax.f32 %v8431_v22, %v5973_v15  ;;  %v5978_v55 = vmax.f32 %v8433_v29, %v5971_v46  ;;  %v5980_v28 = vmax.f32 %v8437_v4, %v5975_v14  ;;  %v5981_v4 = vmax.f32 %v8454_v35, %v5974_v34 }
 0x8e7   :  { %6065 = vmatmul.f32.vlgmr.msrb.gmra.mxu0 %v5977_v6  ;;  %6088 = vmatmul.f32.vlgmr.msrb.gmra.mxu1 %v5978_v55 }
 0x8e8   :  { %6134 = vmatmul.f32.vlgmr.msrb.gmra.mxu3 %v5980_v28 }
 0x8e9   :  { %v6456_v31 = vpop.permute.xlu1 %6455 }
 0x8ea   :  { %v6458_v1 = vunpack.i.h.bf16 %v6456_v31  ;;  %v6457_v33 = vunpack.i.l.bf16 %v6456_v31 }
 0x8ec   :  { %v5972_v62 = vsel %vm857_vm7, %v6463_v7, %v6457_v33  ;;  %v5970_v22 = vsel %vm857_vm7, %v6457_v33, %v6458_v1  ;;  %v5976_v29 = vsel %vm857_vm7, %v6458_v1, %v6462_v63 }
 0x8ed   :  { %v5982_v36 = vmax.f32 %v8457_v20, %v5972_v62  ;;  %v5983_v50 = vmax.f32 %v8460_v48, %v5970_v22  ;;  %v5984_v30 = vmax.f32 %v8463_v38, %v5976_v29 }
 0x8ef   :  { %6068 = vmatmul.f32.gmra.mxu0 %v5981_v4  ;;  %6091 = vmatmul.f32.gmra.mxu1 %v5982_v36 }
 0x8f0   :  { %6114 = vmatmul.f32.gmra.mxu2 %v5983_v50  ;;  %6137 = vmatmul.f32.gmra.mxu3 %v5984_v30 }
 0x952   :  { %v6112_v3 = vpop.f32.mrf.mxu2 }
 0x964   :  { %v6066_v41 = vpop.f32.mrf.mxu0  ;;  %v6089_v37 = vpop.f32.mrf.mxu1 }
 0x965   :  { %v6090_v11 = vadd.f32 %v6089_v37, %v6066_v41 }
 0x967   :  { %v6113_v57 = vadd.f32 %v6112_v3, %v6090_v11 }
 0x96b   :  { %v6135_v23 = vpop.f32.mrf.mxu3 }
 0x96c   :  { %v6136_v10 = vadd.f32 %v6135_v23, %v6113_v57  ;;  %v6069_v35 = vpop.f32.mrf.mxu0  ;;  %v6092_v20 = vpop.f32.mrf.mxu1 }
 0x96d   :  { %v6093_v48 = vadd.f32 %v6092_v20, %v6069_v35 }
 0x96e   :  { %6141 = vst [vmem:[%s8511_s10] sm:$0xff] %v6136_v10 }
 0x973   :  { %v6115_v54 = vpop.f32.mrf.mxu2  ;;  %v6138_v21 = vpop.f32.mrf.mxu3 }
 0x974   :  { %v6116_v38 = vadd.f32 %v6115_v54, %v6093_v48 }
 0x976   :  { %v6139_v39 = vadd.f32 %v6138_v21, %v6116_v38 }
 0x978   :  { %6142 = vst [vmem:[%s8511_s10 + $0x8] sm:$0xff] %v6139_v39 }
 0x979   :  { %6151 = vsyncpa [#allocation3], 1 }

</bundles_post_ra>
